<compile_context>
chip_gen: v5e
topology: v5e:2x2
jax: 0.10.0
libtpu: 0.0.40
codegen_flags: <defaults>
</compile_context>

<pallas_src>
import jax
import jax.numpy as jnp
from jax.experimental import pallas as pl
from jax.experimental.pallas import tpu as pltpu

# Model hyper-parameters (the `args` of the PyTorch module).
BATCH = 2
CHANNELS = 4       # args.channels
VOCAB_SIZE = 8     # args.vocab_size
IMAGE_SIZE = 16    # args.image_size
LATENT_DIM = 4     # args.latent_dim


# ---------------------------------------------------------------------------
# Fused Pallas kernel: conv+ReLU -> fc_mu/fc_logvar -> reparam -> fc_decode
#                      -> conv_transpose + sigmoid, all on one batch tile.
# ---------------------------------------------------------------------------
def _vae_fused_kernel(x_ref, eps_ref,
                      w_enc_ref, b_enc_ref,
                      w_mu_ref, b_mu_ref,
                      w_lv_ref, b_lv_ref,
                      w_fd_ref, b_fd_ref,
                      w_dec_ref, b_dec_ref,
                      o_ref):
    # ---- encoder: stride-2 conv + bias + ReLU as one lane-dense matmul -----
    w_enc = w_enc_ref[...]                               # [C*S*S, F]  bf16
    x = x_ref[...]                                       # [TB, C*S*S] f32
    h = jnp.dot(x.astype(w_enc.dtype), w_enc,
                preferred_element_type=jnp.float32)      # f32 accumulate
    h = jnp.maximum(h + b_enc_ref[...], 0.0)             # [TB, F]

    # ---- fc_mu / fc_logvar (f32) -------------------------------------------
    mu = jnp.dot(h, w_mu_ref[...],
                 preferred_element_type=jnp.float32) + b_mu_ref[...]
    logvar = jnp.dot(h, w_lv_ref[...],
                     preferred_element_type=jnp.float32) + b_lv_ref[...]

    # ---- reparameterize: z = mu + eps * exp(0.5 * logvar) ------------------
    z = mu + eps_ref[...] * jnp.exp(0.5 * logvar)        # [TB, L]

    # ---- fc_decode ----------------------------------------------------------
    d = jnp.dot(z, w_fd_ref[...],
                preferred_element_type=jnp.float32) + b_fd_ref[...]  # [TB, F]

    # ---- decoder: ConvTranspose2d + bias + sigmoid as one matmul -----------
    w_dec = w_dec_ref[...]                               # [F, C*S*S] bf16
    y = jnp.dot(d.astype(w_dec.dtype), w_dec,
                preferred_element_type=jnp.float32) + b_dec_ref[...]
    o_ref[...] = 1.0 / (1.0 + jnp.exp(-y))               # sigmoid, f32


# ---------------------------------------------------------------------------
# Parameter preparation: fold conv / conv_transpose into NCHW-flat matrices.
# ---------------------------------------------------------------------------
def conv2d_as_matrix(W, Cin, Cout, Hi, Wi, Ho, Wo, stride, pad):
    """M s.t. flat_out = flat_in @ M reproduces Conv2d (NCHW flatten order).
    W: [Cout, Cin, k, k] (PyTorch layout)."""
    k = W.shape[-1]
    M = jnp.zeros((Cin * Hi * Wi, Cout * Ho * Wo), jnp.float32)
    oh, ow = jnp.meshgrid(jnp.arange(Ho), jnp.arange(Wo), indexing="ij")
    oh, ow = oh.reshape(-1), ow.reshape(-1)
    pout = oh * Wo + ow                                   # [P]
    for kh in range(k):
        for kw in range(k):
            ih = stride * oh - pad + kh
            iw = stride * ow - pad + kw
            valid = (ih >= 0) & (ih < Hi) & (iw >= 0) & (iw < Wi)
            pin = jnp.where(valid, ih * Wi + iw, 0)
            rows = jnp.arange(Cin)[:, None] * (Hi * Wi) + pin[None, :]    # [Cin, P]
            cols = jnp.arange(Cout)[:, None] * (Ho * Wo) + pout[None, :]  # [Cout, P]
            vals = W[:, :, kh, kw][:, :, None] * valid[None, None, :].astype(W.dtype)
            R = jnp.broadcast_to(rows[None, :, :], vals.shape)
            Cc = jnp.broadcast_to(cols[:, None, :], vals.shape)
            M = M.at[R.reshape(-1), Cc.reshape(-1)].add(vals.reshape(-1))
    return M


def convtranspose2d_as_matrix(W, Cin, Cout, Hi, Wi, Ho, Wo, stride, pad):
    """M s.t. flat_out = flat_in @ M reproduces ConvTranspose2d
    (stride, pad; output size Ho x Wo already includes output_padding).
    W: [Cin, Cout, k, k] (PyTorch ConvTranspose2d layout)."""
    k = W.shape[-1]
    M = jnp.zeros((Cin * Hi * Wi, Cout * Ho * Wo), jnp.float32)
    ih, iw = jnp.meshgrid(jnp.arange(Hi), jnp.arange(Wi), indexing="ij")
    ih, iw = ih.reshape(-1), iw.reshape(-1)
    pin = ih * Wi + iw                                    # [P]
    for kh in range(k):
        for kw in range(k):
            oh = stride * ih - pad + kh
            ow = stride * iw - pad + kw
            valid = (oh >= 0) & (oh < Ho) & (ow >= 0) & (ow < Wo)
            pout = jnp.where(valid, oh * Wo + ow, 0)
            rows = jnp.arange(Cin)[:, None] * (Hi * Wi) + pin[None, :]    # [Cin, P]
            cols = jnp.arange(Cout)[:, None] * (Ho * Wo) + pout[None, :]  # [Cout, P]
            vals = W[:, :, kh, kw][:, :, None] * valid[None, None, :].astype(W.dtype)
            R = jnp.broadcast_to(rows[:, None, :], vals.shape)
            Cc = jnp.broadcast_to(cols[None, :, :], vals.shape)
            M = M.at[R.reshape(-1), Cc.reshape(-1)].add(vals.reshape(-1))
    return M


def init_params(key):
    """Synthetic parameters in PyTorch layouts (deterministic)."""
    C, V, L, S = CHANNELS, VOCAB_SIZE, LATENT_DIM, IMAGE_SIZE
    F = V * (S // 2) * (S // 2)
    ks = jax.random.split(key, 8)

    def nrm(k, shape, scale):
        return scale * jax.random.normal(k, shape, jnp.float32)

    return {
        "w_conv":   nrm(ks[0], (V, C, 3, 3), (9 * C) ** -0.5),
        "b_conv":   nrm(ks[1], (V,), 0.1),
        "w_mu":     nrm(ks[2], (F, L), F ** -0.5),
        "b_mu":     jnp.zeros((L,), jnp.float32),
        "w_logvar": nrm(ks[3], (F, L), 0.1 * F ** -0.5),  # small logvar head
        "b_logvar": jnp.zeros((L,), jnp.float32),
        "w_fcdec":  nrm(ks[4], (L, F), L ** -0.5),
        "b_fcdec":  nrm(ks[5], (F,), 0.1),
        "w_tconv":  nrm(ks[6], (V, C, 3, 3), (9 * V) ** -0.5),
        "b_tconv":  nrm(ks[7], (C,), 0.1),
    }


def prepare_params(p):
    """Fold convs into lane-dense NCHW-flat operator matrices (done once)."""
    C, V, S = CHANNELS, VOCAB_SIZE, IMAGE_SIZE
    Ho = S // 2
    m_enc = conv2d_as_matrix(p["w_conv"], C, V, S, S, Ho, Ho, stride=2, pad=1)
    m_dec = convtranspose2d_as_matrix(p["w_tconv"], V, C, Ho, Ho, S, S,
                                      stride=2, pad=1)
    return {
        "w_enc": m_enc.astype(jnp.bfloat16),                              # [C*S*S, F]
        "b_enc": jnp.repeat(p["b_conv"], Ho * Ho).reshape(1, -1),         # [1, F]
        "w_mu": p["w_mu"], "b_mu": p["b_mu"].reshape(1, -1),
        "w_logvar": p["w_logvar"], "b_logvar": p["b_logvar"].reshape(1, -1),
        "w_fcdec": p["w_fcdec"], "b_fcdec": p["b_fcdec"].reshape(1, -1),
        "w_dec": m_dec.astype(jnp.bfloat16),                              # [F, C*S*S]
        "b_dec": jnp.repeat(p["b_tconv"], S * S).reshape(1, -1),          # [1, C*S*S]
    }


# ---------------------------------------------------------------------------
# Forward pass wrapper
# ---------------------------------------------------------------------------
def small_vae_forward(x_nchw, eps, prep):
    B = x_nchw.shape[0]
    C, V, L, S = CHANNELS, VOCAB_SIZE, LATENT_DIM, IMAGE_SIZE
    CHW = C * S * S
    F = V * (S // 2) * (S // 2)

    # NCHW flatten is a free reshape (operator matrices are NCHW-flat).
    x_flat = x_nchw.reshape(B, CHW).astype(jnp.float32)

    # Batch tiling: pad to a (8,128)-friendly tile, grid over batch tiles.
    TB = 128 if B >= 128 else ((B + 7) // 8) * 8
    B_pad = ((B + TB - 1) // TB) * TB
    if B_pad != B:
        x_flat = jnp.pad(x_flat, ((0, B_pad - B), (0, 0)))
        eps = jnp.pad(eps, ((0, B_pad - B), (0, 0)))

    def row_spec(n):
        return pl.BlockSpec((TB, n), lambda i: (i, 0))

    def full_spec(arr):
        return pl.BlockSpec(arr.shape, lambda i: (0, 0))

    operands = (x_flat, eps,
                prep["w_enc"], prep["b_enc"],
                prep["w_mu"], prep["b_mu"],
                prep["w_logvar"], prep["b_logvar"],
                prep["w_fcdec"], prep["b_fcdec"],
                prep["w_dec"], prep["b_dec"])
    in_specs = [row_spec(CHW), row_spec(L)] + [full_spec(a) for a in operands[2:]]

    flops = 2 * B_pad * (CHW * F + 2 * F * L + L * F + F * CHW)
    transcendentals = B_pad * (L + CHW)
    bytes_accessed = (sum(int(a.size) * a.dtype.itemsize for a in operands)
                      + B_pad * CHW * 4)

    out = pl.pallas_call(
        _vae_fused_kernel,
        out_shape=jax.ShapeDtypeStruct((B_pad, CHW), jnp.float32),
        grid=(B_pad // TB,),
        in_specs=in_specs,
        out_specs=row_spec(CHW),
        compiler_params=pltpu.CompilerParams(
            dimension_semantics=("parallel",),
            vmem_limit_bytes=32 * 1024 * 1024),
        cost_estimate=pl.CostEstimate(flops=flops,
                                      transcendentals=transcendentals,
                                      bytes_accessed=bytes_accessed),
    )(*operands)

    return out[:B].reshape(B, C, S, S)


# ---------------------------------------------------------------------------
# Pure-JAX (XLA) reference, used only for a correctness self-check.
# ---------------------------------------------------------------------------
@jax.jit
def reference_forward(x, eps, p):
    B = x.shape[0]
    V, S = VOCAB_SIZE, IMAGE_SIZE
    hp = jax.lax.Precision.HIGHEST
    h = jax.lax.conv_general_dilated(
        x, p["w_conv"], window_strides=(2, 2), padding=((1, 1), (1, 1)),
        dimension_numbers=("NCHW", "OIHW", "NCHW"), precision=hp)
    h = jnp.maximum(h + p["b_conv"][None, :, None, None], 0.0)
    hf = h.reshape(B, -1)                                  # torch .view(B, -1)
    mu = jnp.dot(hf, p["w_mu"], precision=hp) + p["b_mu"]
    logvar = jnp.dot(hf, p["w_logvar"], precision=hp) + p["b_logvar"]
    z = mu + eps * jnp.exp(0.5 * logvar)
    d = jnp.dot(z, p["w_fcdec"], precision=hp) + p["b_fcdec"]
    d = d.reshape(B, V, S // 2, S // 2)
    # ConvTranspose2d(s=2, p=1, output_padding=1) == lhs-dilated conv with the
    # flipped, in/out-swapped kernel and asymmetric padding (k-1-p, k-1-p+op).
    wt = jnp.flip(jnp.transpose(p["w_tconv"], (1, 0, 2, 3)), axis=(2, 3))
    y = jax.lax.conv_general_dilated(
        d, wt, window_strides=(1, 1), padding=((1, 2), (1, 2)),
        lhs_dilation=(2, 2), dimension_numbers=("NCHW", "OIHW", "NCHW"),
        precision=hp)
    y = y + p["b_tconv"][None, :, None, None]
    return 1.0 / (1.0 + jnp.exp(-y))


# ---------------------------------------------------------------------------
if __name__ == "__main__":
    key = jax.random.PRNGKey(0)
    kx, ke, kp = jax.random.split(key, 3)

    x = jax.random.normal(kx, (BATCH, CHANNELS, IMAGE_SIZE, IMAGE_SIZE),
                          jnp.float32)
    # Reparameterization noise (torch.randn_like equivalent), passed in.
    eps = jax.random.normal(ke, (BATCH, LATENT_DIM), jnp.float32)

    params = init_params(kp)
    prep = prepare_params(params)

    fwd = jax.jit(small_vae_forward)
    out = fwd(x, eps, prep)
    jax.block_until_ready(out)

    assert out.shape == (BATCH, CHANNELS, IMAGE_SIZE, IMAGE_SIZE), out.shape
    assert bool(jnp.all(jnp.isfinite(out)))

    # Correctness self-check against the XLA reference (bf16 operator matrices
    # in the kernel -> allow a loose tolerance on the sigmoid outputs).
    ref = reference_forward(x, eps, params)
    max_err = float(jnp.max(jnp.abs(out - ref)))
    assert max_err < 5e-2, f"max abs error vs reference = {max_err}"

    print("KERNEL_OK")
</pallas_src>

<mosaic_0001>
module attributes {stable_mosaic.version = 11 : i64} {
  func.func @_vae_fused_kernel(%arg0: i32, %arg1: memref<8x1024xf32, #tpu.memory_space<vmem>>, %arg2: memref<8x4xf32, #tpu.memory_space<vmem>>, %arg3: memref<1024x512xbf16, #tpu.memory_space<vmem>>, %arg4: memref<1x512xf32, #tpu.memory_space<vmem>>, %arg5: memref<512x4xf32, #tpu.memory_space<vmem>>, %arg6: memref<1x4xf32, #tpu.memory_space<vmem>>, %arg7: memref<512x4xf32, #tpu.memory_space<vmem>>, %arg8: memref<1x4xf32, #tpu.memory_space<vmem>>, %arg9: memref<4x512xf32, #tpu.memory_space<vmem>>, %arg10: memref<1x512xf32, #tpu.memory_space<vmem>>, %arg11: memref<512x1024xbf16, #tpu.memory_space<vmem>>, %arg12: memref<1x1024xf32, #tpu.memory_space<vmem>>, %arg13: memref<8x1024xf32, #tpu.memory_space<vmem>>) attributes {dimension_semantics = [#tpu.dimension_semantics<parallel>], iteration_bounds = array<i64: 1>, scalar_prefetch = 0 : i64, scratch_operands = 0 : i64, tpu.core_type = #tpu.core_type<tc>, window_params = [{transform_indices = @transform_0, window_bounds = array<i64: 8, 1024>}, {transform_indices = @transform_1, window_bounds = array<i64: 8, 4>}, {pipeline_mode = #tpu.pipeline_mode<synchronous>, transform_indices = @transform_2, window_bounds = array<i64: 1024, 512>}, {pipeline_mode = #tpu.pipeline_mode<synchronous>, transform_indices = @transform_3, window_bounds = array<i64: 1, 512>}, {pipeline_mode = #tpu.pipeline_mode<synchronous>, transform_indices = @transform_4, window_bounds = array<i64: 512, 4>}, {pipeline_mode = #tpu.pipeline_mode<synchronous>, transform_indices = @transform_5, window_bounds = array<i64: 1, 4>}, {pipeline_mode = #tpu.pipeline_mode<synchronous>, transform_indices = @transform_6, window_bounds = array<i64: 512, 4>}, {pipeline_mode = #tpu.pipeline_mode<synchronous>, transform_indices = @transform_7, window_bounds = array<i64: 1, 4>}, {pipeline_mode = #tpu.pipeline_mode<synchronous>, transform_indices = @transform_8, window_bounds = array<i64: 4, 512>}, {pipeline_mode = #tpu.pipeline_mode<synchronous>, transform_indices = @transform_9, window_bounds = array<i64: 1, 512>}, {pipeline_mode = #tpu.pipeline_mode<synchronous>, transform_indices = @transform_10, window_bounds = array<i64: 512, 1024>}, {pipeline_mode = #tpu.pipeline_mode<synchronous>, transform_indices = @transform_11, window_bounds = array<i64: 1, 1024>}, {transform_indices = @transform_12, window_bounds = array<i64: 8, 1024>}]} {
    %c0 = arith.constant 0 : index
    %c0_0 = arith.constant 0 : index
    %0 = vector.load %arg3[%c0, %c0_0] : memref<1024x512xbf16, #tpu.memory_space<vmem>>, vector<1024x512xbf16>
    %c0_1 = arith.constant 0 : index
    %c0_2 = arith.constant 0 : index
    %1 = vector.load %arg1[%c0_1, %c0_2] : memref<8x1024xf32, #tpu.memory_space<vmem>>, vector<8x1024xf32>
    %2 = arith.truncf %1 : vector<8x1024xf32> to vector<8x1024xbf16>
    %cst = arith.constant dense<0.000000e+00> : vector<8x512xf32>
    %3 = tpu.matmul %2, %0, %cst {dimension_numbers = #tpu.dot_dimension_numbers<[1], [0], [0], [1], [0, 0, 1, 1], [], []>} : vector<8x1024xbf16>, vector<1024x512xbf16>, vector<8x512xf32> -> vector<8x512xf32>
    %c0_3 = arith.constant 0 : index
    %c0_4 = arith.constant 0 : index
    %4 = vector.load %arg4[%c0_3, %c0_4] : memref<1x512xf32, #tpu.memory_space<vmem>>, vector<1x512xf32>
    %5 = vector.broadcast %4 : vector<1x512xf32> to vector<8x512xf32>
    %6 = arith.addf %3, %5 : vector<8x512xf32>
    %cst_5 = arith.constant 0.000000e+00 : f32
    %7 = vector.broadcast %cst_5 : f32 to vector<8x512xf32>
    %8 = arith.maximumf %6, %7 : vector<8x512xf32>
    %c0_6 = arith.constant 0 : index
    %c0_7 = arith.constant 0 : index
    %9 = vector.load %arg5[%c0_6, %c0_7] : memref<512x4xf32, #tpu.memory_space<vmem>>, vector<512x4xf32>
    %cst_8 = arith.constant dense<0.000000e+00> : vector<8x4xf32>
    %10 = tpu.matmul %8, %9, %cst_8 {dimension_numbers = #tpu.dot_dimension_numbers<[1], [0], [0], [1], [0, 0, 1, 1], [], []>} : vector<8x512xf32>, vector<512x4xf32>, vector<8x4xf32> -> vector<8x4xf32>
    %c0_9 = arith.constant 0 : index
    %c0_10 = arith.constant 0 : index
    %11 = vector.load %arg6[%c0_9, %c0_10] : memref<1x4xf32, #tpu.memory_space<vmem>>, vector<1x4xf32>
    %12 = vector.broadcast %11 : vector<1x4xf32> to vector<8x4xf32>
    %13 = arith.addf %10, %12 : vector<8x4xf32>
    %c0_11 = arith.constant 0 : index
    %c0_12 = arith.constant 0 : index
    %14 = vector.load %arg7[%c0_11, %c0_12] : memref<512x4xf32, #tpu.memory_space<vmem>>, vector<512x4xf32>
    %cst_13 = arith.constant dense<0.000000e+00> : vector<8x4xf32>
    %15 = tpu.matmul %8, %14, %cst_13 {dimension_numbers = #tpu.dot_dimension_numbers<[1], [0], [0], [1], [0, 0, 1, 1], [], []>} : vector<8x512xf32>, vector<512x4xf32>, vector<8x4xf32> -> vector<8x4xf32>
    %c0_14 = arith.constant 0 : index
    %c0_15 = arith.constant 0 : index
    %16 = vector.load %arg8[%c0_14, %c0_15] : memref<1x4xf32, #tpu.memory_space<vmem>>, vector<1x4xf32>
    %17 = vector.broadcast %16 : vector<1x4xf32> to vector<8x4xf32>
    %18 = arith.addf %15, %17 : vector<8x4xf32>
    %c0_16 = arith.constant 0 : index
    %c0_17 = arith.constant 0 : index
    %19 = vector.load %arg2[%c0_16, %c0_17] : memref<8x4xf32, #tpu.memory_space<vmem>>, vector<8x4xf32>
    %cst_18 = arith.constant 5.000000e-01 : f32
    %20 = vector.broadcast %cst_18 : f32 to vector<8x4xf32>
    %21 = arith.mulf %20, %18 : vector<8x4xf32>
    %22 = math.exp %21 : vector<8x4xf32>
    %23 = arith.mulf %19, %22 : vector<8x4xf32>
    %24 = arith.addf %13, %23 : vector<8x4xf32>
    %c0_19 = arith.constant 0 : index
    %c0_20 = arith.constant 0 : index
    %25 = vector.load %arg9[%c0_19, %c0_20] : memref<4x512xf32, #tpu.memory_space<vmem>>, vector<4x512xf32>
    %cst_21 = arith.constant dense<0.000000e+00> : vector<8x512xf32>
    %26 = tpu.matmul %24, %25, %cst_21 {dimension_numbers = #tpu.dot_dimension_numbers<[1], [0], [0], [1], [0, 0, 1, 1], [], []>} : vector<8x4xf32>, vector<4x512xf32>, vector<8x512xf32> -> vector<8x512xf32>
    %c0_22 = arith.constant 0 : index
    %c0_23 = arith.constant 0 : index
    %27 = vector.load %arg10[%c0_22, %c0_23] : memref<1x512xf32, #tpu.memory_space<vmem>>, vector<1x512xf32>
    %28 = vector.broadcast %27 : vector<1x512xf32> to vector<8x512xf32>
    %29 = arith.addf %26, %28 : vector<8x512xf32>
    %c0_24 = arith.constant 0 : index
    %c0_25 = arith.constant 0 : index
    %30 = vector.load %arg11[%c0_24, %c0_25] : memref<512x1024xbf16, #tpu.memory_space<vmem>>, vector<512x1024xbf16>
    %31 = arith.truncf %29 : vector<8x512xf32> to vector<8x512xbf16>
    %cst_26 = arith.constant dense<0.000000e+00> : vector<8x1024xf32>
    %32 = tpu.matmul %31, %30, %cst_26 {dimension_numbers = #tpu.dot_dimension_numbers<[1], [0], [0], [1], [0, 0, 1, 1], [], []>} : vector<8x512xbf16>, vector<512x1024xbf16>, vector<8x1024xf32> -> vector<8x1024xf32>
    %c0_27 = arith.constant 0 : index
    %c0_28 = arith.constant 0 : index
    %33 = vector.load %arg12[%c0_27, %c0_28] : memref<1x1024xf32, #tpu.memory_space<vmem>>, vector<1x1024xf32>
    %34 = vector.broadcast %33 : vector<1x1024xf32> to vector<8x1024xf32>
    %35 = arith.addf %32, %34 : vector<8x1024xf32>
    %cst_29 = arith.constant 0.000000e+00 : f32
    %36 = vector.broadcast %cst_29 : f32 to vector<8x1024xf32>
    %37 = arith.subf %36, %35 : vector<8x1024xf32>
    %38 = math.exp %37 : vector<8x1024xf32>
    %cst_30 = arith.constant 1.000000e+00 : f32
    %39 = vector.broadcast %cst_30 : f32 to vector<8x1024xf32>
    %40 = arith.addf %39, %38 : vector<8x1024xf32>
    %cst_31 = arith.constant 1.000000e+00 : f32
    %41 = vector.broadcast %cst_31 : f32 to vector<8x1024xf32>
    %42 = arith.divf %41, %40 : vector<8x1024xf32>
    %c0_32 = arith.constant 0 : index
    %c0_33 = arith.constant 0 : index
    %43 = vector.load %arg13[%c0_32, %c0_33] : memref<8x1024xf32, #tpu.memory_space<vmem>>, vector<8x1024xf32>
    tpu.vector_store %arg13[%c0_32, %c0_33], %42 {strides = array<i32>} : memref<8x1024xf32, #tpu.memory_space<vmem>>, vector<8x1024xf32>,
    return
  }
  func.func @transform_0(%arg0: i32) -> (i32, i32) {
    %c0_i32 = arith.constant 0 : i32
    %c0_i32_0 = arith.constant 0 : i32
    return %arg0, %c0_i32 : i32, i32
  }
  func.func @transform_1(%arg0: i32) -> (i32, i32) {
    %c0_i32 = arith.constant 0 : i32
    %c0_i32_0 = arith.constant 0 : i32
    return %arg0, %c0_i32 : i32, i32
  }
  func.func @transform_2(%arg0: i32) -> (i32, i32) {
    %c0_i32 = arith.constant 0 : i32
    %c0_i32_0 = arith.constant 0 : i32
    %c0_i32_1 = arith.constant 0 : i32
    return %c0_i32, %c0_i32_0 : i32, i32
  }
  func.func @transform_3(%arg0: i32) -> (i32, i32) {
    %c0_i32 = arith.constant 0 : i32
    %c0_i32_0 = arith.constant 0 : i32
    %c0_i32_1 = arith.constant 0 : i32
    return %c0_i32, %c0_i32_0 : i32, i32
  }
  func.func @transform_4(%arg0: i32) -> (i32, i32) {
    %c0_i32 = arith.constant 0 : i32
    %c0_i32_0 = arith.constant 0 : i32
    %c0_i32_1 = arith.constant 0 : i32
    return %c0_i32, %c0_i32_0 : i32, i32
  }
  func.func @transform_5(%arg0: i32) -> (i32, i32) {
    %c0_i32 = arith.constant 0 : i32
    %c0_i32_0 = arith.constant 0 : i32
    %c0_i32_1 = arith.constant 0 : i32
    return %c0_i32, %c0_i32_0 : i32, i32
  }
  func.func @transform_6(%arg0: i32) -> (i32, i32) {
    %c0_i32 = arith.constant 0 : i32
    %c0_i32_0 = arith.constant 0 : i32
    %c0_i32_1 = arith.constant 0 : i32
    return %c0_i32, %c0_i32_0 : i32, i32
  }
  func.func @transform_7(%arg0: i32) -> (i32, i32) {
    %c0_i32 = arith.constant 0 : i32
    %c0_i32_0 = arith.constant 0 : i32
    %c0_i32_1 = arith.constant 0 : i32
    return %c0_i32, %c0_i32_0 : i32, i32
  }
  func.func @transform_8(%arg0: i32) -> (i32, i32) {
    %c0_i32 = arith.constant 0 : i32
    %c0_i32_0 = arith.constant 0 : i32
    %c0_i32_1 = arith.constant 0 : i32
    return %c0_i32, %c0_i32_0 : i32, i32
  }
  func.func @transform_9(%arg0: i32) -> (i32, i32) {
    %c0_i32 = arith.constant 0 : i32
    %c0_i32_0 = arith.constant 0 : i32
    %c0_i32_1 = arith.constant 0 : i32
    return %c0_i32, %c0_i32_0 : i32, i32
  }
  func.func @transform_10(%arg0: i32) -> (i32, i32) {
    %c0_i32 = arith.constant 0 : i32
    %c0_i32_0 = arith.constant 0 : i32
    %c0_i32_1 = arith.constant 0 : i32
    return %c0_i32, %c0_i32_0 : i32, i32
  }
  func.func @transform_11(%arg0: i32) -> (i32, i32) {
    %c0_i32 = arith.constant 0 : i32
    %c0_i32_0 = arith.constant 0 : i32
    %c0_i32_1 = arith.constant 0 : i32
    return %c0_i32, %c0_i32_0 : i32, i32
  }
  func.func @transform_12(%arg0: i32) -> (i32, i32) {
    %c0_i32 = arith.constant 0 : i32
    %c0_i32_0 = arith.constant 0 : i32
    return %arg0, %c0_i32 : i32, i32
  }
}

</mosaic_0001>

<bundles_post_ra>
// kernel: small_vae_forward.1
= control target key start
LH: loop header
LB: loop body
LE: loop exit
PB: predicated region body
PF: predicated region fallthrough
CT: control target
= control target key end

     0   :  { %17 = vsyncpa [#allocation3], 0  ;;  %s8011_s0 = inlined_call_operand.vmem [shape: f32[8,1024], index: 0, kind: input, shape index: {}]   ;;  %s8012_s1 = inlined_call_operand.vmem [shape: f32[8,4], index: 1, kind: input, shape index: {}]   ;;  %s8013_s2 = inlined_call_operand.hbm [shape: bf16[1024,512], index: 2, kind: input, shape index: {}]   ;;  %s8014_s3 = inlined_call_operand.vmem [shape: f32[1,512], index: 3, kind: input, shape index: {}]   ;;  %s8015_s4 = inlined_call_operand.vmem [shape: f32[512,4], index: 4, kind: input, shape index: {}]   ;;  %s8016_s5 = inlined_call_operand.vmem [shape: f32[1,4], index: 5, kind: input, shape index: {}]   ;;  %s8017_s6 = inlined_call_operand.vmem [shape: f32[512,4], index: 6, kind: input, shape index: {}]   ;;  %s8018_s7 = inlined_call_operand.vmem [shape: f32[1,4], index: 7, kind: input, shape index: {}]   ;;  %s8019_s8 = inlined_call_operand.vmem [shape: f32[4,512], index: 8, kind: input, shape index: {}]   ;;  %s8020_s9 = inlined_call_operand.vmem [shape: f32[1,512], index: 9, kind: input, shape index: {}]   ;;  %s8021_s10 = inlined_call_operand.hbm [shape: bf16[512,1024], index: 10, kind: input, shape index: {}]   ;;  %s8022_s11 = inlined_call_operand.vmem [shape: f32[1,1024], index: 11, kind: input, shape index: {}]   ;;  %s8023_s12 = inlined_call_operand.vmem [shape: f32[8,1024], index: 12, kind: output, shape index: {}]  }
   0x1   :  { %s27_s23 = sshll.u32 %s8013_s2, 4  ;;  %s28_s23 = int_to_ptr.hbm [resolvable:$true] %s27_s23 }
   0x2   :  { %18 = vsyncpa [#allocation5], 0  ;;  %s7273_s24 = smov [#allocation2]   ;;  %s54_s28 = sshll.u32 %s8021_s10, 4  ;;  %s55_s28 = int_to_ptr.hbm [resolvable:$true] %s54_s28 }
   0x3   :  { %s29_s25 = sshll.u32 %s7273_s24, 4  ;;  %s7274_s29 = smov 256   ;;  %s30_s25 = int_to_ptr.vmem [resolvable:$true] %s29_s25 }
   0x4   :  { %s7275_s30 = smov 16   ;;  %s7276_s13 = smov [#allocation4]  }
   0x5   :  { %35 = dma.hbm_to_vmem [thread:$0]  %s28_s23, 32768, %s30_s25, [#allocation3], %s7274_s29, %s7274_s29, %s7275_s30  }
   0x6   :  { %s56_s14 = sshll.u32 %s7276_s13, 4  ;;  %s7277_s15 = smov 512   ;;  %s57_s14 = int_to_ptr.vmem [resolvable:$true] %s56_s14 }
   0x7   :  { %s7278_s16 = smov 32  }
   0x8   :  { %62 = dma.hbm_to_vmem [thread:$0]  %s55_s28, 32768, %s57_s14, [#allocation5], %s7277_s15, %s7277_s15, %s7278_s16  }
   0x9   :  { %7269 = dma.done.wait [#allocation3], 32768  }
   0xa   :  { %7270 = vsyncadd [#allocation3], 4294934528 }
   0xb   :  { %7271 = dma.done.wait [#allocation5], 32768  }
   0xc   :  { %7272 = vsyncadd [#allocation5], 4294934528  ;;  %v4725_v0 = vld [vmem:[#allocation2 + $0xe0] sm:$0xf]  ;;  %v6697_v1 = vld [vmem:[#allocation2 + $0xec] sm:$0xf0] }
   0xd   :  { %v4853_v2 = vld [vmem:[#allocation2 + $0x1e0] sm:$0xf]  ;;  %v4726_v3 = vor.u32 %v6697_v1, %v4725_v0  ;;  %v6729_v4 = vld [vmem:[#allocation2 + $0x1ec] sm:$0xf0]  ;;  %vm2382_vm0 = vcmask 1043456   ;;  %vm2378_vm1 = vcmask 31744  }
   0xe   :  { %v4981_v5 = vld [vmem:[#allocation2 + $0x2e0] sm:$0xf]  ;;  %v6761_v6 = vld [vmem:[#allocation2 + $0x2ec] sm:$0xf0]  ;;  %v4854_v7 = vor.u32 %v6729_v4, %v4853_v2 }
   0xf   :  { %v4982_v8 = vor.u32 %v6761_v6, %v4981_v5  ;;  %v5109_v9 = vld [vmem:[#allocation2 + $0x3e0] sm:$0xf]  ;;  %v6793_v10 = vld [vmem:[#allocation2 + $0x3ec] sm:$0xf0]  ;;  %1635 = vmatpush.bf16.msra.mxu0 %v4726_v3 }
  0x10   :  { %v4709_v11 = vld [vmem:[#allocation2 + $0xc0] sm:$0xf]  ;;  %v5110_v12 = vor.u32 %v6793_v10, %v5109_v9  ;;  %v6693_v13 = vld [vmem:[#allocation2 + $0xcc] sm:$0xf0]  ;;  %1648 = vmatpush.bf16.msra.mxu1 %v4854_v7 }
  0x11   :  { %v4837_v14 = vld [vmem:[#allocation2 + $0x1c0] sm:$0xf]  ;;  %v6725_v15 = vld [vmem:[#allocation2 + $0x1cc] sm:$0xf0]  ;;  %1661 = vmatpush.bf16.msra.mxu2 %v4982_v8  ;;  %v4710_v16 = vor.u32 %v6693_v13, %v4709_v11 }
  0x12   :  { %v4838_v17 = vor.u32 %v6725_v15, %v4837_v14  ;;  %v4965_v18 = vld [vmem:[#allocation2 + $0x2c0] sm:$0xf]  ;;  %v6757_v19 = vld [vmem:[#allocation2 + $0x2cc] sm:$0xf0]  ;;  %1674 = vmatpush.bf16.msra.mxu3 %v5110_v12 }
  0x13   :  { %v5093_v20 = vld [vmem:[#allocation2 + $0x3c0] sm:$0xf]  ;;  %v4966_v21 = vor.u32 %v6757_v19, %v4965_v18  ;;  %v6789_v22 = vld [vmem:[#allocation2 + $0x3cc] sm:$0xf0]  ;;  %1636 = vmatpush.bf16.msra.mxu0 %v4710_v16 }
  0x14   :  { %v4693_v23 = vld [vmem:[#allocation2 + $0xa0] sm:$0xf]  ;;  %v6689_v24 = vld [vmem:[#allocation2 + $0xac] sm:$0xf0]  ;;  %v5094_v25 = vor.u32 %v6789_v22, %v5093_v20  ;;  %1649 = vmatpush.bf16.msra.mxu1 %v4838_v17 }
  0x15   :  { %v4821_v26 = vld [vmem:[#allocation2 + $0x1a0] sm:$0xf]  ;;  %v6721_v27 = vld [vmem:[#allocation2 + $0x1ac] sm:$0xf0]  ;;  %v4694_v29 = vor.u32 %v6689_v24, %v4693_v23  ;;  %1662 = vmatpush.bf16.msra.mxu2 %v4966_v21 }
  0x16   :  { %v4949_v28 = vld [vmem:[#allocation2 + $0x2a0] sm:$0xf]  ;;  %v6753_v30 = vld [vmem:[#allocation2 + $0x2ac] sm:$0xf0]  ;;  %v4822_v33 = vor.u32 %v6721_v27, %v4821_v26  ;;  %1675 = vmatpush.bf16.msra.mxu3 %v5094_v25 }
  0x17   :  { %v5077_v31 = vld [vmem:[#allocation2 + $0x3a0] sm:$0xf]  ;;  %v6785_v32 = vld [vmem:[#allocation2 + $0x3ac] sm:$0xf0]  ;;  %v4950_v34 = vor.u32 %v6753_v30, %v4949_v28  ;;  %1637 = vmatpush.bf16.msra.mxu0 %v4694_v29 }
  0x18   :  { %v4677_v35 = vld [vmem:[#allocation2 + $0x80] sm:$0xf]  ;;  %v6685_v36 = vld [vmem:[#allocation2 + $0x8c] sm:$0xf0]  ;;  %v5078_v38 = vor.u32 %v6785_v32, %v5077_v31  ;;  %1650 = vmatpush.bf16.msra.mxu1 %v4822_v33 }
  0x19   :  { %v4805_v37 = vld [vmem:[#allocation2 + $0x180] sm:$0xf]  ;;  %v6717_v39 = vld [vmem:[#allocation2 + $0x18c] sm:$0xf0]  ;;  %v4678_v44 = vor.u32 %v6685_v36, %v4677_v35  ;;  %1663 = vmatpush.bf16.msra.mxu2 %v4950_v34 }
  0x1a   :  { %v4933_v40 = vld [vmem:[#allocation2 + $0x280] sm:$0xf]  ;;  %v6749_v41 = vld [vmem:[#allocation2 + $0x28c] sm:$0xf0]  ;;  %v4806_v45 = vor.u32 %v6717_v39, %v4805_v37  ;;  %1676 = vmatpush.bf16.msra.mxu3 %v5078_v38 }
  0x1b   :  { %v5061_v42 = vld [vmem:[#allocation2 + $0x380] sm:$0xf]  ;;  %v6781_v43 = vld [vmem:[#allocation2 + $0x38c] sm:$0xf0]  ;;  %v4934_v46 = vor.u32 %v6749_v41, %v4933_v40  ;;  %1638 = vmatpush.bf16.msra.mxu0 %v4678_v44 }
  0x1c   :  { %v4661_v47 = vld [vmem:[#allocation2 + $0x60] sm:$0xf]  ;;  %v6681_v48 = vld [vmem:[#allocation2 + $0x6c] sm:$0xf0]  ;;  %v5062_v50 = vor.u32 %v6781_v43, %v5061_v42  ;;  %1651 = vmatpush.bf16.msra.mxu1 %v4806_v45 }
  0x1d   :  { %v4789_v49 = vld [vmem:[#allocation2 + $0x160] sm:$0xf]  ;;  %v6713_v51 = vld [vmem:[#allocation2 + $0x16c] sm:$0xf0]  ;;  %v4662_v56 = vor.u32 %v6681_v48, %v4661_v47  ;;  %1664 = vmatpush.bf16.msra.mxu2 %v4934_v46 }
  0x1e   :  { %v4917_v52 = vld [vmem:[#allocation2 + $0x260] sm:$0xf]  ;;  %v6745_v53 = vld [vmem:[#allocation2 + $0x26c] sm:$0xf0]  ;;  %v4790_v57 = vor.u32 %v6713_v51, %v4789_v49  ;;  %1677 = vmatpush.bf16.msra.mxu3 %v5062_v50 }
  0x1f   :  { %v5045_v54 = vld [vmem:[#allocation2 + $0x360] sm:$0xf]  ;;  %v6777_v55 = vld [vmem:[#allocation2 + $0x36c] sm:$0xf0]  ;;  %v4918_v58 = vor.u32 %v6745_v53, %v4917_v52  ;;  %1639 = vmatpush.bf16.msra.mxu0 %v4662_v56 }
  0x20   :  { %v4645_v59 = vld [vmem:[#allocation2 + $0x40] sm:$0xf]  ;;  %v6677_v60 = vld [vmem:[#allocation2 + $0x4c] sm:$0xf0]  ;;  %v5046_v62 = vor.u32 %v6777_v55, %v5045_v54  ;;  %1652 = vmatpush.bf16.msra.mxu1 %v4790_v57 }
  0x21   :  { %v4773_v61 = vld [vmem:[#allocation2 + $0x140] sm:$0xf]  ;;  %v6709_v63 = vld [vmem:[#allocation2 + $0x14c] sm:$0xf0]  ;;  %v4646_v4 = vor.u32 %v6677_v60, %v4645_v59  ;;  %1665 = vmatpush.bf16.msra.mxu2 %v4918_v58 }
  0x22   :  { %v4901_v0 = vld [vmem:[#allocation2 + $0x240] sm:$0xf]  ;;  %v6741_v1 = vld [vmem:[#allocation2 + $0x24c] sm:$0xf0]  ;;  %v4774_v5 = vor.u32 %v6709_v63, %v4773_v61  ;;  %1678 = vmatpush.bf16.msra.mxu3 %v5046_v62 }
  0x23   :  { %v5029_v2 = vld [vmem:[#allocation2 + $0x340] sm:$0xf]  ;;  %v6773_v3 = vld [vmem:[#allocation2 + $0x34c] sm:$0xf0]  ;;  %v4902_v6 = vor.u32 %v6741_v1, %v4901_v0  ;;  %1640 = vmatpush.bf16.msra.mxu0 %v4646_v4  ;;  %v329_v4 = vld [vmem:[%s8011_s0] sm:$0xff] }
  0x24   :  { %v4629_v7 = vld [vmem:[#allocation2 + $0x20] sm:$0xf]  ;;  %v6673_v8 = vld [vmem:[#allocation2 + $0x2c] sm:$0xf0]  ;;  %v5030_v10 = vor.u32 %v6773_v3, %v5029_v2  ;;  %1653 = vmatpush.bf16.msra.mxu1 %v4774_v5  ;;  %v331_v3 = vld [vmem:[%s8011_s0 + $0x10] sm:$0xff] }
  0x25   :  { %v4757_v9 = vld [vmem:[#allocation2 + $0x120] sm:$0xf]  ;;  %v6705_v11 = vld [vmem:[#allocation2 + $0x12c] sm:$0xf0]  ;;  %v4630_v16 = vor.u32 %v6673_v8, %v4629_v7  ;;  %1666 = vmatpush.bf16.msra.mxu2 %v4902_v6  ;;  %v7356_v8 = vpack.c.bf16 %v331_v3, %v331_v3 }
  0x26   :  { %v4885_v12 = vld [vmem:[#allocation2 + $0x220] sm:$0xf]  ;;  %v6737_v13 = vld [vmem:[#allocation2 + $0x22c] sm:$0xf0]  ;;  %v4758_v19 = vor.u32 %v6705_v11, %v4757_v9  ;;  %1679 = vmatpush.bf16.msra.mxu3 %v5030_v10  ;;  %v7358_v9 = vpack.c.bf16 %v329_v4, %v329_v4  ;;  %v6695_v4 = vld [vmem:[#allocation2 + $0xe4] sm:$0xf] }
  0x27   :  { %v5013_v14 = vld [vmem:[#allocation2 + $0x320] sm:$0xf]  ;;  %v6769_v15 = vld [vmem:[#allocation2 + $0x32c] sm:$0xf0]  ;;  %v4886_v20 = vor.u32 %v6737_v13, %v4885_v12  ;;  %1641 = vmatpush.bf16.msra.mxu0 %v4630_v16 }
  0x28   :  { %v4613_v17 = vld [vmem:[#allocation2] sm:$0xf]  ;;  %v6669_v18 = vld [vmem:[#allocation2 + $0xc] sm:$0xf0]  ;;  %v5014_v24 = vor.u32 %v6769_v15, %v5013_v14  ;;  %1654 = vmatpush.bf16.msra.mxu1 %v4758_v19 }
  0x29   :  { %v4741_v21 = vld [vmem:[#allocation2 + $0x100] sm:$0xf]  ;;  %v6701_v22 = vld [vmem:[#allocation2 + $0x10c] sm:$0xf0]  ;;  %v4614_v31 = vor.u32 %v6669_v18, %v4613_v17  ;;  %1667 = vmatpush.bf16.msra.mxu2 %v4886_v20 }
  0x2a   :  { %v4869_v23 = vld [vmem:[#allocation2 + $0x200] sm:$0xf]  ;;  %v6733_v25 = vld [vmem:[#allocation2 + $0x20c] sm:$0xf0]  ;;  %v4742_v35 = vor.u32 %v6701_v22, %v4741_v21  ;;  %1680 = vmatpush.bf16.msra.mxu3 %v5014_v24 }
  0x2b   :  { %v4997_v26 = vld [vmem:[#allocation2 + $0x300] sm:$0xf]  ;;  %v6765_v27 = vld [vmem:[#allocation2 + $0x30c] sm:$0xf0]  ;;  %v4870_v36 = vor.u32 %v6733_v25, %v4869_v23  ;;  %1642 = vmatpush.bf16.msra.mxu0 %v4614_v31 }
  0x2c   :  { %v5237_v28 = vld [vmem:[#allocation2 + $0x4e0] sm:$0xf]  ;;  %v6825_v29 = vld [vmem:[#allocation2 + $0x4ec] sm:$0xf0]  ;;  %v4998_v39 = vor.u32 %v6765_v27, %v4997_v26  ;;  %1655 = vmatpush.bf16.msra.mxu1 %v4742_v35 }
  0x2d   :  { %v5365_v30 = vld [vmem:[#allocation2 + $0x5e0] sm:$0xf]  ;;  %v6857_v32 = vld [vmem:[#allocation2 + $0x5ec] sm:$0xf0]  ;;  %v5238_v40 = vor.u32 %v6825_v29, %v5237_v28  ;;  %1668 = vmatpush.bf16.msra.mxu2 %v4870_v36 }
  0x2e   :  { %v5493_v33 = vld [vmem:[#allocation2 + $0x6e0] sm:$0xf]  ;;  %v6889_v34 = vld [vmem:[#allocation2 + $0x6ec] sm:$0xf0]  ;;  %v5366_v41 = vor.u32 %v6857_v32, %v5365_v30  ;;  %1681 = vmatpush.bf16.msra.mxu3 %v4998_v39  ;;  %1643 = vmatmul.bf16.vlgmr.msra.gmra.mxu0 %v7358_v9 }
  0x2f   :  { %v5621_v37 = vld [vmem:[#allocation2 + $0x7e0] sm:$0xf]  ;;  %v6921_v38 = vld [vmem:[#allocation2 + $0x7ec] sm:$0xf0]  ;;  %v5494_v42 = vor.u32 %v6889_v34, %v5493_v33  ;;  %1687 = vmatpush.bf16.msrb.mxu0 %v5238_v40 }
  0x30   :  { %v5221_v43 = vld [vmem:[#allocation2 + $0x4c0] sm:$0xf]  ;;  %v6821_v44 = vld [vmem:[#allocation2 + $0x4cc] sm:$0xf0]  ;;  %v5622_v46 = vor.u32 %v6921_v38, %v5621_v37  ;;  %1700 = vmatpush.bf16.msrb.mxu1 %v5366_v41  ;;  %1669 = vmatmul.bf16.vlgmr.msra.gmra.mxu2 %v7356_v8 }
  0x31   :  { %v5349_v45 = vld [vmem:[#allocation2 + $0x5c0] sm:$0xf]  ;;  %v6853_v47 = vld [vmem:[#allocation2 + $0x5cc] sm:$0xf0]  ;;  %v5222_v52 = vor.u32 %v6821_v44, %v5221_v43  ;;  %1713 = vmatpush.bf16.msrb.mxu2 %v5494_v42 }
  0x32   :  { %v5477_v48 = vld [vmem:[#allocation2 + $0x6c0] sm:$0xf]  ;;  %v6885_v49 = vld [vmem:[#allocation2 + $0x6cc] sm:$0xf0]  ;;  %v5350_v54 = vor.u32 %v6853_v47, %v5349_v45  ;;  %1726 = vmatpush.bf16.msrb.mxu3 %v5622_v46 }
  0x33   :  { %v5605_v50 = vld [vmem:[#allocation2 + $0x7c0] sm:$0xf]  ;;  %v6917_v51 = vld [vmem:[#allocation2 + $0x7cc] sm:$0xf0]  ;;  %v5478_v55 = vor.u32 %v6885_v49, %v5477_v48  ;;  %1688 = vmatpush.bf16.msrb.mxu0 %v5222_v52 }
  0x34   :  { %v5205_v53 = vld [vmem:[#allocation2 + $0x4a0] sm:$0xf]  ;;  %v6817_v56 = vld [vmem:[#allocation2 + $0x4ac] sm:$0xf0]  ;;  %v5606_v59 = vor.u32 %v6917_v51, %v5605_v50  ;;  %1701 = vmatpush.bf16.msrb.mxu1 %v5350_v54 }
  0x35   :  { %v5333_v57 = vld [vmem:[#allocation2 + $0x5a0] sm:$0xf]  ;;  %v6849_v58 = vld [vmem:[#allocation2 + $0x5ac] sm:$0xf0]  ;;  %v5206_v0 = vor.u32 %v6817_v56, %v5205_v53  ;;  %1714 = vmatpush.bf16.msrb.mxu2 %v5478_v55 }
  0x36   :  { %v5461_v60 = vld [vmem:[#allocation2 + $0x6a0] sm:$0xf]  ;;  %v6881_v61 = vld [vmem:[#allocation2 + $0x6ac] sm:$0xf0]  ;;  %v5334_v1 = vor.u32 %v6849_v58, %v5333_v57  ;;  %1727 = vmatpush.bf16.msrb.mxu3 %v5606_v59 }
  0x37   :  { %v5589_v62 = vld [vmem:[#allocation2 + $0x7a0] sm:$0xf]  ;;  %v6913_v63 = vld [vmem:[#allocation2 + $0x7ac] sm:$0xf0]  ;;  %v5462_v5 = vor.u32 %v6881_v61, %v5461_v60  ;;  %1689 = vmatpush.bf16.msrb.mxu0 %v5206_v0 }
  0x38   :  { %v5189_v2 = vld [vmem:[#allocation2 + $0x480] sm:$0xf]  ;;  %v6813_v6 = vld [vmem:[#allocation2 + $0x48c] sm:$0xf0]  ;;  %v5590_v11 = vor.u32 %v6913_v63, %v5589_v62  ;;  %1702 = vmatpush.bf16.msrb.mxu1 %v5334_v1 }
  0x39   :  { %v5317_v7 = vld [vmem:[#allocation2 + $0x580] sm:$0xf]  ;;  %v332_v10 = vld [vmem:[%s8011_s0 + $0x18] sm:$0xff]  ;;  %v5190_v18 = vor.u32 %v6813_v6, %v5189_v2  ;;  %1715 = vmatpush.bf16.msrb.mxu2 %v5462_v5  ;;  %v6727_v6 = vld [vmem:[#allocation2 + $0x1e4] sm:$0xf] }
  0x3a   :  { %v6845_v12 = vld [vmem:[#allocation2 + $0x58c] sm:$0xf0]  ;;  %v5445_v13 = vld [vmem:[#allocation2 + $0x680] sm:$0xf]  ;;  %v7363_v15 = vpack.c.bf16 %v332_v10, %v332_v10  ;;  %1728 = vmatpush.bf16.msrb.mxu3 %v5590_v11  ;;  %v4727_v5 = vld [vmem:[#allocation2 + $0xf0] sm:$0xf0] }
  0x3b   :  { %v6877_v14 = vld [vmem:[#allocation2 + $0x68c] sm:$0xf0]  ;;  %v5573_v16 = vld [vmem:[#allocation2 + $0x780] sm:$0xf]  ;;  %v5318_v20 = vor.u32 %v6845_v12, %v5317_v7  ;;  %1690 = vmatpush.bf16.msrb.mxu0 %v5190_v18  ;;  %v4855_v10 = vld [vmem:[#allocation2 + $0x1f0] sm:$0xf0] }
  0x3c   :  { %v6909_v17 = vld [vmem:[#allocation2 + $0x78c] sm:$0xf0]  ;;  %1682 = vmatmul.bf16.vlgmr.msra.gmra.mxu3 %v7363_v15  ;;  %v330_v19 = vld [vmem:[%s8011_s0 + $0x8] sm:$0xff]  ;;  %v5446_v21 = vor.u32 %v6877_v14, %v5445_v13  ;;  %v4983_v12 = vld [vmem:[#allocation2 + $0x2f0] sm:$0xf0] }
  0x3d   :  { %v5173_v22 = vld [vmem:[#allocation2 + $0x460] sm:$0xf]  ;;  %v6809_v23 = vld [vmem:[#allocation2 + $0x46c] sm:$0xf0]  ;;  %v7371_v25 = vpack.c.bf16 %v330_v19, %v330_v19  ;;  %v5574_v26 = vor.u32 %v6909_v17, %v5573_v16  ;;  %1703 = vmatpush.bf16.msrb.mxu1 %v5318_v20  ;;  %v6759_v11 = vld [vmem:[#allocation2 + $0x2e4] sm:$0xf]  ;;  %v4730_v20 = vor.u32 %v6695_v4, %v4727_v5 }
  0x3e   :  { %v5301_v24 = vld [vmem:[#allocation2 + $0x560] sm:$0xf]  ;;  %v6841_v27 = vld [vmem:[#allocation2 + $0x56c] sm:$0xf0]  ;;  %v5174_v32 = vor.u32 %v6809_v23, %v5173_v22  ;;  %1716 = vmatpush.bf16.msrb.mxu2 %v5446_v21  ;;  %v6791_v16 = vld [vmem:[#allocation2 + $0x3e4] sm:$0xf] }
  0x3f   :  { %v5429_v28 = vld [vmem:[#allocation2 + $0x660] sm:$0xf]  ;;  %v6873_v29 = vld [vmem:[#allocation2 + $0x66c] sm:$0xf0]  ;;  %1656 = vmatmul.bf16.vlgmr.msra.gmra.mxu1 %v7371_v25  ;;  %v5302_v33 = vor.u32 %v6841_v27, %v5301_v24  ;;  %1729 = vmatpush.bf16.msrb.mxu3 %v5574_v26  ;;  %v5111_v17 = vld [vmem:[#allocation2 + $0x3f0] sm:$0xf0]  ;;  %v4858_v24 = vor.u32 %v6727_v6, %v4855_v10  ;;  %v4986_v26 = vor.u32 %v6759_v11, %v4983_v12 }
  0x40   :  { %v5557_v30 = vld [vmem:[#allocation2 + $0x760] sm:$0xf]  ;;  %v6905_v31 = vld [vmem:[#allocation2 + $0x76c] sm:$0xf0]  ;;  %v5430_v34 = vor.u32 %v6873_v29, %v5429_v28  ;;  %1691 = vmatpush.bf16.msrb.mxu0 %v5174_v32  ;;  %v335_v18 = vld [vmem:[%s8011_s0 + $0x30] sm:$0xff] }
  0x41   :  { %v5157_v35 = vld [vmem:[#allocation2 + $0x440] sm:$0xf]  ;;  %v6805_v36 = vld [vmem:[#allocation2 + $0x44c] sm:$0xf0]  ;;  %v5558_v38 = vor.u32 %v6905_v31, %v5557_v30  ;;  %1704 = vmatpush.bf16.msrb.mxu1 %v5302_v33  ;;  %v6691_v21 = vld [vmem:[#allocation2 + $0xc4] sm:$0xf]  ;;  %v5114_v30 = vor.u32 %v6791_v16, %v5111_v17 }
  0x42   :  { %v5285_v37 = vld [vmem:[#allocation2 + $0x540] sm:$0xf]  ;;  %v6837_v39 = vld [vmem:[#allocation2 + $0x54c] sm:$0xf0]  ;;  %v5158_v44 = vor.u32 %v6805_v36, %v5157_v35  ;;  %1717 = vmatpush.bf16.msrb.mxu2 %v5430_v34  ;;  %v333_v22 = vld [vmem:[%s8011_s0 + $0x20] sm:$0xff]  ;;  %v7386_v34 = vpack.c.bf16 %v335_v18, %v335_v18 }
  0x43   :  { %v5413_v40 = vld [vmem:[#allocation2 + $0x640] sm:$0xf]  ;;  %v6869_v41 = vld [vmem:[#allocation2 + $0x64c] sm:$0xf0]  ;;  %v5286_v45 = vor.u32 %v6837_v39, %v5285_v37  ;;  %1730 = vmatpush.bf16.msrb.mxu3 %v5558_v38  ;;  %v4711_v27 = vld [vmem:[#allocation2 + $0xd0] sm:$0xf0]  ;;  %v7388_v37 = vpack.c.bf16 %v333_v22, %v333_v22 }
  0x44   :  { %v5541_v42 = vld [vmem:[#allocation2 + $0x740] sm:$0xf]  ;;  %v6901_v43 = vld [vmem:[#allocation2 + $0x74c] sm:$0xf0]  ;;  %v5414_v46 = vor.u32 %v6869_v41, %v5413_v40  ;;  %1692 = vmatpush.bf16.msrb.mxu0 %v5158_v44  ;;  %v6723_v28 = vld [vmem:[#allocation2 + $0x1c4] sm:$0xf]  ;;  %v4714_v39 = vor.u32 %v6691_v21, %v4711_v27 }
  0x45   :  { %v5141_v47 = vld [vmem:[#allocation2 + $0x420] sm:$0xf]  ;;  %v6801_v48 = vld [vmem:[#allocation2 + $0x42c] sm:$0xf0]  ;;  %v5542_v50 = vor.u32 %v6901_v43, %v5541_v42  ;;  %1705 = vmatpush.bf16.msrb.mxu1 %v5286_v45  ;;  %v4839_v31 = vld [vmem:[#allocation2 + $0x1d0] sm:$0xf0] }
  0x46   :  { %v5269_v49 = vld [vmem:[#allocation2 + $0x520] sm:$0xf]  ;;  %v6833_v51 = vld [vmem:[#allocation2 + $0x52c] sm:$0xf0]  ;;  %v5142_v56 = vor.u32 %v6801_v48, %v5141_v47  ;;  %1718 = vmatpush.bf16.msrb.mxu2 %v5414_v46  ;;  %v6755_v32 = vld [vmem:[#allocation2 + $0x2c4] sm:$0xf]  ;;  %v4842_v41 = vor.u32 %v6723_v28, %v4839_v31 }
  0x47   :  { %v5397_v52 = vld [vmem:[#allocation2 + $0x620] sm:$0xf]  ;;  %v6865_v53 = vld [vmem:[#allocation2 + $0x62c] sm:$0xf0]  ;;  %v5270_v59 = vor.u32 %v6833_v51, %v5269_v49  ;;  %1731 = vmatpush.bf16.msrb.mxu3 %v5542_v50  ;;  %v4967_v33 = vld [vmem:[#allocation2 + $0x2d0] sm:$0xf0] }
  0x48   :  { %v5525_v54 = vld [vmem:[#allocation2 + $0x720] sm:$0xf]  ;;  %v6897_v55 = vld [vmem:[#allocation2 + $0x72c] sm:$0xf0]  ;;  %v5398_v60 = vor.u32 %v6865_v53, %v5397_v52  ;;  %1693 = vmatpush.bf16.msrb.mxu0 %v5142_v56  ;;  %v6787_v35 = vld [vmem:[#allocation2 + $0x3c4] sm:$0xf]  ;;  %v4970_v42 = vor.u32 %v6755_v32, %v4967_v33 }
  0x49   :  { %v5125_v57 = vld [vmem:[#allocation2 + $0x400] sm:$0xf]  ;;  %v6797_v58 = vld [vmem:[#allocation2 + $0x40c] sm:$0xf0]  ;;  %v5526_v0 = vor.u32 %v6897_v55, %v5525_v54  ;;  %1706 = vmatpush.bf16.msrb.mxu1 %v5270_v59  ;;  %v5095_v36 = vld [vmem:[#allocation2 + $0x3d0] sm:$0xf0] }
  0x4a   :  { %v5253_v61 = vld [vmem:[#allocation2 + $0x500] sm:$0xf]  ;;  %v6829_v62 = vld [vmem:[#allocation2 + $0x50c] sm:$0xf0]  ;;  %v5126_v7 = vor.u32 %v6797_v58, %v5125_v57  ;;  %1719 = vmatpush.bf16.msrb.mxu2 %v5398_v60  ;;  %v6687_v43 = vld [vmem:[#allocation2 + $0xa4] sm:$0xf]  ;;  %v5098_v46 = vor.u32 %v6787_v35, %v5095_v36 }
  0x4b   :  { %v5381_v63 = vld [vmem:[#allocation2 + $0x600] sm:$0xf]  ;;  %v6861_v1 = vld [vmem:[#allocation2 + $0x60c] sm:$0xf0]  ;;  %v5254_v13 = vor.u32 %v6829_v62, %v5253_v61  ;;  %1732 = vmatpush.bf16.msrb.mxu3 %v5526_v0  ;;  %v4695_v44 = vld [vmem:[#allocation2 + $0xb0] sm:$0xf0] }
  0x4c   :  { %v5509_v2 = vld [vmem:[#allocation2 + $0x700] sm:$0xf]  ;;  %v6893_v3 = vld [vmem:[#allocation2 + $0x70c] sm:$0xf0]  ;;  %v5382_v14 = vor.u32 %v6861_v1, %v5381_v63  ;;  %1694 = vmatpush.bf16.msrb.mxu0 %v5126_v7  ;;  %v6719_v45 = vld [vmem:[#allocation2 + $0x1a4] sm:$0xf]  ;;  %v4698_v52 = vor.u32 %v6687_v43, %v4695_v44 }
  0x4d   :  { %v5510_v19 = vor.u32 %v6893_v3, %v5509_v2  ;;  %v336_v23 = vld [vmem:[%s8011_s0 + $0x38] sm:$0xff]  ;;  %v334_v29 = vld [vmem:[%s8011_s0 + $0x28] sm:$0xff]  ;;  %1707 = vmatpush.bf16.msrb.mxu1 %v5254_v13 }
  0x4e   :  { %1720 = vmatpush.bf16.msrb.mxu2 %v5382_v14  ;;  %v7390_v38 = vpack.c.bf16 %v336_v23, %v336_v23  ;;  %v7392_v40 = vpack.c.bf16 %v334_v29, %v334_v29  ;;  %v4823_v47 = vld [vmem:[#allocation2 + $0x1b0] sm:$0xf0]  ;;  %v6751_v48 = vld [vmem:[#allocation2 + $0x2a4] sm:$0xf] }
  0x4f   :  { %1733 = vmatpush.bf16.msrb.mxu3 %v5510_v19  ;;  %v4951_v49 = vld [vmem:[#allocation2 + $0x2b0] sm:$0xf0]  ;;  %v6783_v50 = vld [vmem:[#allocation2 + $0x3a4] sm:$0xf]  ;;  %1695 = vmatmul.bf16.vlgmr.msrb.gmra.mxu0 %v7388_v37  ;;  %v4826_v53 = vor.u32 %v6719_v45, %v4823_v47 }
  0x50   :  { %1739 = vmatpush.bf16.msra.mxu0 %v4730_v20  ;;  %v5079_v51 = vld [vmem:[#allocation2 + $0x3b0] sm:$0xf0]  ;;  %1708 = vmatmul.bf16.vlgmr.msrb.gmra.mxu1 %v7392_v40  ;;  %v4954_v54 = vor.u32 %v6751_v48, %v4951_v49  ;;  %v6683_v55 = vld [vmem:[#allocation2 + $0x84] sm:$0xf] }
  0x51   :  { %1752 = vmatpush.bf16.msra.mxu1 %v4858_v24  ;;  %1721 = vmatmul.bf16.vlgmr.msrb.gmra.mxu2 %v7386_v34  ;;  %v4679_v56 = vld [vmem:[#allocation2 + $0x90] sm:$0xf0]  ;;  %v6715_v57 = vld [vmem:[#allocation2 + $0x184] sm:$0xf]  ;;  %v5082_v58 = vor.u32 %v6783_v50, %v5079_v51 }
  0x52   :  { %1765 = vmatpush.bf16.msra.mxu2 %v4986_v26  ;;  %1734 = vmatmul.bf16.vlgmr.msrb.gmra.mxu3 %v7390_v38  ;;  %v4807_v59 = vld [vmem:[#allocation2 + $0x190] sm:$0xf0]  ;;  %v6747_v60 = vld [vmem:[#allocation2 + $0x284] sm:$0xf]  ;;  %v4682_v0 = vor.u32 %v6683_v55, %v4679_v56 }
  0x53   :  { %1778 = vmatpush.bf16.msra.mxu3 %v5114_v30  ;;  %v4935_v61 = vld [vmem:[#allocation2 + $0x290] sm:$0xf0]  ;;  %v6779_v62 = vld [vmem:[#allocation2 + $0x384] sm:$0xf]  ;;  %v4810_v1 = vor.u32 %v6715_v57, %v4807_v59 }
  0x54   :  { %1740 = vmatpush.bf16.msra.mxu0 %v4714_v39  ;;  %v5063_v63 = vld [vmem:[#allocation2 + $0x390] sm:$0xf0]  ;;  %v4938_v2 = vor.u32 %v6747_v60, %v4935_v61  ;;  %v6679_v3 = vld [vmem:[#allocation2 + $0x64] sm:$0xf] }
  0x55   :  { %1753 = vmatpush.bf16.msra.mxu1 %v4842_v41  ;;  %v4663_v4 = vld [vmem:[#allocation2 + $0x70] sm:$0xf0]  ;;  %v6711_v5 = vld [vmem:[#allocation2 + $0x164] sm:$0xf]  ;;  %v5066_v6 = vor.u32 %v6779_v62, %v5063_v63 }
  0x56   :  { %1766 = vmatpush.bf16.msra.mxu2 %v4970_v42  ;;  %v4791_v7 = vld [vmem:[#allocation2 + $0x170] sm:$0xf0]  ;;  %v6743_v10 = vld [vmem:[#allocation2 + $0x264] sm:$0xf]  ;;  %v4666_v14 = vor.u32 %v6679_v3, %v4663_v4 }
  0x57   :  { %1779 = vmatpush.bf16.msra.mxu3 %v5098_v46  ;;  %v4919_v11 = vld [vmem:[#allocation2 + $0x270] sm:$0xf0]  ;;  %v6775_v12 = vld [vmem:[#allocation2 + $0x364] sm:$0xf]  ;;  %v4794_v16 = vor.u32 %v6711_v5, %v4791_v7 }
  0x58   :  { %1741 = vmatpush.bf16.msra.mxu0 %v4698_v52  ;;  %v5047_v13 = vld [vmem:[#allocation2 + $0x370] sm:$0xf0]  ;;  %v4922_v17 = vor.u32 %v6743_v10, %v4919_v11  ;;  %v6675_v18 = vld [vmem:[#allocation2 + $0x44] sm:$0xf] }
  0x59   :  { %1754 = vmatpush.bf16.msra.mxu1 %v4826_v53  ;;  %v4647_v19 = vld [vmem:[#allocation2 + $0x50] sm:$0xf0]  ;;  %v6707_v20 = vld [vmem:[#allocation2 + $0x144] sm:$0xf]  ;;  %v5050_v21 = vor.u32 %v6775_v12, %v5047_v13 }
  0x5a   :  { %1767 = vmatpush.bf16.msra.mxu2 %v4954_v54  ;;  %v4775_v22 = vld [vmem:[#allocation2 + $0x150] sm:$0xf0]  ;;  %v6739_v23 = vld [vmem:[#allocation2 + $0x244] sm:$0xf]  ;;  %v4650_v28 = vor.u32 %v6675_v18, %v4647_v19 }
  0x5b   :  { %1780 = vmatpush.bf16.msra.mxu3 %v5082_v58  ;;  %v4903_v24 = vld [vmem:[#allocation2 + $0x250] sm:$0xf0]  ;;  %v6771_v26 = vld [vmem:[#allocation2 + $0x344] sm:$0xf]  ;;  %v4778_v29 = vor.u32 %v6707_v20, %v4775_v22 }
  0x5c   :  { %1742 = vmatpush.bf16.msra.mxu0 %v4682_v0  ;;  %v5031_v27 = vld [vmem:[#allocation2 + $0x350] sm:$0xf0]  ;;  %v4906_v30 = vor.u32 %v6739_v23, %v4903_v24  ;;  %v6671_v31 = vld [vmem:[#allocation2 + $0x24] sm:$0xf] }
  0x5d   :  { %1755 = vmatpush.bf16.msra.mxu1 %v4810_v1  ;;  %v4631_v32 = vld [vmem:[#allocation2 + $0x30] sm:$0xf0]  ;;  %v6703_v33 = vld [vmem:[#allocation2 + $0x124] sm:$0xf]  ;;  %v5034_v35 = vor.u32 %v6771_v26, %v5031_v27 }
  0x5e   :  { %1768 = vmatpush.bf16.msra.mxu2 %v4938_v2  ;;  %v4759_v36 = vld [vmem:[#allocation2 + $0x130] sm:$0xf0]  ;;  %v6735_v39 = vld [vmem:[#allocation2 + $0x224] sm:$0xf]  ;;  %v4634_v44 = vor.u32 %v6671_v31, %v4631_v32 }
  0x5f   :  { %1781 = vmatpush.bf16.msra.mxu3 %v5066_v6  ;;  %v4887_v41 = vld [vmem:[#allocation2 + $0x230] sm:$0xf0]  ;;  %v6767_v42 = vld [vmem:[#allocation2 + $0x324] sm:$0xf]  ;;  %v4762_v47 = vor.u32 %v6703_v33, %v4759_v36 }
  0x60   :  { %1743 = vmatpush.bf16.msra.mxu0 %v4666_v14  ;;  %v5015_v43 = vld [vmem:[#allocation2 + $0x330] sm:$0xf0]  ;;  %v6667_v45 = vld [vmem:[#allocation2 + $0x4] sm:$0xf]  ;;  %v4890_v48 = vor.u32 %v6735_v39, %v4887_v41 }
  0x61   :  { %1756 = vmatpush.bf16.msra.mxu1 %v4794_v16  ;;  %v4615_v46 = vld [vmem:[#allocation2 + $0x10] sm:$0xf0]  ;;  %v6699_v49 = vld [vmem:[#allocation2 + $0x104] sm:$0xf]  ;;  %v5018_v52 = vor.u32 %v6767_v42, %v5015_v43 }
  0x62   :  { %1769 = vmatpush.bf16.msra.mxu2 %v4922_v17  ;;  %v4743_v50 = vld [vmem:[#allocation2 + $0x110] sm:$0xf0]  ;;  %v6731_v51 = vld [vmem:[#allocation2 + $0x204] sm:$0xf]  ;;  %v4618_v59 = vor.u32 %v6667_v45, %v4615_v46 }
  0x63   :  { %1782 = vmatpush.bf16.msra.mxu3 %v5050_v21  ;;  %v4871_v53 = vld [vmem:[#allocation2 + $0x210] sm:$0xf0]  ;;  %v6763_v54 = vld [vmem:[#allocation2 + $0x304] sm:$0xf]  ;;  %v4746_v63 = vor.u32 %v6699_v49, %v4743_v50 }
  0x64   :  { %1744 = vmatpush.bf16.msra.mxu0 %v4650_v28  ;;  %v4999_v55 = vld [vmem:[#allocation2 + $0x310] sm:$0xf0]  ;;  %v6823_v56 = vld [vmem:[#allocation2 + $0x4e4] sm:$0xf]  ;;  %v4874_v0 = vor.u32 %v6731_v51, %v4871_v53 }
  0x65   :  { %1757 = vmatpush.bf16.msra.mxu1 %v4778_v29  ;;  %v5239_v57 = vld [vmem:[#allocation2 + $0x4f0] sm:$0xf0]  ;;  %v6855_v58 = vld [vmem:[#allocation2 + $0x5e4] sm:$0xf]  ;;  %v5002_v3 = vor.u32 %v6763_v54, %v4999_v55 }
  0x66   :  { %1770 = vmatpush.bf16.msra.mxu2 %v4906_v30  ;;  %v5367_v60 = vld [vmem:[#allocation2 + $0x5f0] sm:$0xf0]  ;;  %v6887_v61 = vld [vmem:[#allocation2 + $0x6e4] sm:$0xf]  ;;  %v5242_v4 = vor.u32 %v6823_v56, %v5239_v57 }
  0x67   :  { %1783 = vmatpush.bf16.msra.mxu3 %v5034_v35  ;;  %v5495_v62 = vld [vmem:[#allocation2 + $0x6f0] sm:$0xf0]  ;;  %v6919_v1 = vld [vmem:[#allocation2 + $0x7e4] sm:$0xf]  ;;  %v5370_v5 = vor.u32 %v6855_v58, %v5367_v60 }
  0x68   :  { %1745 = vmatpush.bf16.msra.mxu0 %v4634_v44  ;;  %v5623_v2 = vld [vmem:[#allocation2 + $0x7f0] sm:$0xf0]  ;;  %v5498_v6 = vor.u32 %v6887_v61, %v5495_v62  ;;  %v6819_v7 = vld [vmem:[#allocation2 + $0x4c4] sm:$0xf] }
  0x69   :  { %1758 = vmatpush.bf16.msra.mxu1 %v4762_v47  ;;  %v5223_v10 = vld [vmem:[#allocation2 + $0x4d0] sm:$0xf0]  ;;  %v6851_v11 = vld [vmem:[#allocation2 + $0x5c4] sm:$0xf]  ;;  %v5626_v12 = vor.u32 %v6919_v1, %v5623_v2 }
  0x6a   :  { %1771 = vmatpush.bf16.msra.mxu2 %v4890_v48  ;;  %v5351_v13 = vld [vmem:[#allocation2 + $0x5d0] sm:$0xf0]  ;;  %v6883_v14 = vld [vmem:[#allocation2 + $0x6c4] sm:$0xf]  ;;  %v5226_v19 = vor.u32 %v6819_v7, %v5223_v10 }
  0x6b   :  { %1784 = vmatpush.bf16.msra.mxu3 %v5018_v52  ;;  %v5479_v16 = vld [vmem:[#allocation2 + $0x6d0] sm:$0xf0]  ;;  %v6915_v17 = vld [vmem:[#allocation2 + $0x7c4] sm:$0xf]  ;;  %v5354_v20 = vor.u32 %v6851_v11, %v5351_v13 }
  0x6c   :  { %1746 = vmatpush.bf16.msra.mxu0 %v4618_v59  ;;  %v5607_v18 = vld [vmem:[#allocation2 + $0x7d0] sm:$0xf0]  ;;  %v5482_v21 = vor.u32 %v6883_v14, %v5479_v16  ;;  %v6815_v22 = vld [vmem:[#allocation2 + $0x4a4] sm:$0xf] }
  0x6d   :  { %1759 = vmatpush.bf16.msra.mxu1 %v4746_v63  ;;  %v5207_v23 = vld [vmem:[#allocation2 + $0x4b0] sm:$0xf0]  ;;  %v6847_v24 = vld [vmem:[#allocation2 + $0x5a4] sm:$0xf]  ;;  %v5610_v26 = vor.u32 %v6915_v17, %v5607_v18 }
  0x6e   :  { %1772 = vmatpush.bf16.msra.mxu2 %v4874_v0  ;;  %v5335_v27 = vld [vmem:[#allocation2 + $0x5b0] sm:$0xf0]  ;;  %v6879_v28 = vld [vmem:[#allocation2 + $0x6a4] sm:$0xf]  ;;  %v5210_v32 = vor.u32 %v6815_v22, %v5207_v23 }
  0x6f   :  { %1785 = vmatpush.bf16.msra.mxu3 %v5002_v3  ;;  %v5463_v29 = vld [vmem:[#allocation2 + $0x6b0] sm:$0xf0]  ;;  %v6911_v30 = vld [vmem:[#allocation2 + $0x7a4] sm:$0xf]  ;;  %1747 = vmatmul.bf16.vlgmr.msra.gmra.mxu0 %v7358_v9  ;;  %v5338_v33 = vor.u32 %v6847_v24, %v5335_v27 }
  0x70   :  { %1791 = vmatpush.bf16.msrb.mxu0 %v5242_v4  ;;  %v5591_v31 = vld [vmem:[#allocation2 + $0x7b0] sm:$0xf0]  ;;  %1760 = vmatmul.bf16.vlgmr.msra.gmra.mxu1 %v7371_v25  ;;  %v5466_v35 = vor.u32 %v6879_v28, %v5463_v29  ;;  %v6811_v36 = vld [vmem:[#allocation2 + $0x484] sm:$0xf] }
  0x71   :  { %1804 = vmatpush.bf16.msrb.mxu1 %v5370_v5  ;;  %1773 = vmatmul.bf16.vlgmr.msra.gmra.mxu2 %v7356_v8  ;;  %v5191_v39 = vld [vmem:[#allocation2 + $0x490] sm:$0xf0]  ;;  %v6843_v41 = vld [vmem:[#allocation2 + $0x584] sm:$0xf]  ;;  %v5594_v42 = vor.u32 %v6911_v30, %v5591_v31 }
  0x72   :  { %1817 = vmatpush.bf16.msrb.mxu2 %v5498_v6  ;;  %1786 = vmatmul.bf16.vlgmr.msra.gmra.mxu3 %v7363_v15  ;;  %v5319_v43 = vld [vmem:[#allocation2 + $0x590] sm:$0xf0]  ;;  %v6875_v44 = vld [vmem:[#allocation2 + $0x684] sm:$0xf]  ;;  %v5194_v48 = vor.u32 %v6811_v36, %v5191_v39  ;;  %v4733_v39 = vld [vmem:[#allocation2 + $0xe8] sm:$0xf] }
  0x73   :  { %1830 = vmatpush.bf16.msrb.mxu3 %v5626_v12  ;;  %v5447_v45 = vld [vmem:[#allocation2 + $0x690] sm:$0xf0]  ;;  %v6907_v46 = vld [vmem:[#allocation2 + $0x784] sm:$0xf]  ;;  %v5322_v49 = vor.u32 %v6843_v41, %v5319_v43  ;;  %v6698_v41 = vld [vmem:[#allocation2 + $0xf4] sm:$0xf0] }
  0x74   :  { %1792 = vmatpush.bf16.msrb.mxu0 %v5226_v19  ;;  %v5575_v47 = vld [vmem:[#allocation2 + $0x790] sm:$0xf0]  ;;  %v5450_v50 = vor.u32 %v6875_v44, %v5447_v45  ;;  %v6807_v51 = vld [vmem:[#allocation2 + $0x464] sm:$0xf]  ;;  %v6730_v44 = vld [vmem:[#allocation2 + $0x1f4] sm:$0xf0] }
  0x75   :  { %1805 = vmatpush.bf16.msrb.mxu1 %v5354_v20  ;;  %v5175_v52 = vld [vmem:[#allocation2 + $0x470] sm:$0xf0]  ;;  %v6839_v53 = vld [vmem:[#allocation2 + $0x564] sm:$0xf]  ;;  %v5578_v54 = vor.u32 %v6907_v46, %v5575_v47  ;;  %v4989_v45 = vld [vmem:[#allocation2 + $0x2e8] sm:$0xf] }
  0x76   :  { %1818 = vmatpush.bf16.msrb.mxu2 %v5482_v21  ;;  %v5303_v55 = vld [vmem:[#allocation2 + $0x570] sm:$0xf0]  ;;  %v6871_v56 = vld [vmem:[#allocation2 + $0x664] sm:$0xf]  ;;  %v5178_v60 = vor.u32 %v6807_v51, %v5175_v52  ;;  %v6762_v46 = vld [vmem:[#allocation2 + $0x2f4] sm:$0xf0]  ;;  %v4734_v52 = vor.u32 %v6698_v41, %v4733_v39 }
  0x77   :  { %1831 = vmatpush.bf16.msrb.mxu3 %v5610_v26  ;;  %v5431_v57 = vld [vmem:[#allocation2 + $0x670] sm:$0xf0]  ;;  %v6903_v58 = vld [vmem:[#allocation2 + $0x764] sm:$0xf]  ;;  %v5306_v61 = vor.u32 %v6839_v53, %v5303_v55  ;;  %v4717_v55 = vld [vmem:[#allocation2 + $0xc8] sm:$0xf] }
  0x78   :  { %1793 = vmatpush.bf16.msrb.mxu0 %v5210_v32  ;;  %v5559_v59 = vld [vmem:[#allocation2 + $0x770] sm:$0xf0]  ;;  %v5434_v62 = vor.u32 %v6871_v56, %v5431_v57  ;;  %v6803_v63 = vld [vmem:[#allocation2 + $0x444] sm:$0xf]  ;;  %v6694_v56 = vld [vmem:[#allocation2 + $0xd4] sm:$0xf0] }
  0x79   :  { %1806 = vmatpush.bf16.msrb.mxu1 %v5338_v33  ;;  %v5159_v0 = vld [vmem:[#allocation2 + $0x450] sm:$0xf0]  ;;  %v6835_v1 = vld [vmem:[#allocation2 + $0x544] sm:$0xf]  ;;  %v5562_v2 = vor.u32 %v6903_v58, %v5559_v59  ;;  %v4845_v57 = vld [vmem:[#allocation2 + $0x1c8] sm:$0xf] }
  0x7a   :  { %1819 = vmatpush.bf16.msrb.mxu2 %v5466_v35  ;;  %v5287_v3 = vld [vmem:[#allocation2 + $0x550] sm:$0xf0]  ;;  %v6867_v4 = vld [vmem:[#allocation2 + $0x644] sm:$0xf]  ;;  %v5162_v10 = vor.u32 %v6803_v63, %v5159_v0  ;;  %v6726_v59 = vld [vmem:[#allocation2 + $0x1d4] sm:$0xf0]  ;;  %v4718_v0 = vor.u32 %v6694_v56, %v4717_v55 }
  0x7b   :  { %1832 = vmatpush.bf16.msrb.mxu3 %v5594_v42  ;;  %v5415_v5 = vld [vmem:[#allocation2 + $0x650] sm:$0xf0]  ;;  %v6899_v6 = vld [vmem:[#allocation2 + $0x744] sm:$0xf]  ;;  %v5290_v11 = vor.u32 %v6835_v1, %v5287_v3  ;;  %v4861_v42 = vld [vmem:[#allocation2 + $0x1e8] sm:$0xf]  ;;  %v4846_v1 = vor.u32 %v6726_v59, %v4845_v57 }
  0x7c   :  { %1794 = vmatpush.bf16.msrb.mxu0 %v5194_v48  ;;  %v5543_v7 = vld [vmem:[#allocation2 + $0x750] sm:$0xf0]  ;;  %v5418_v12 = vor.u32 %v6867_v4, %v5415_v5  ;;  %v6799_v13 = vld [vmem:[#allocation2 + $0x424] sm:$0xf]  ;;  %v4862_v53 = vor.u32 %v6730_v44, %v4861_v42  ;;  %v6790_v63 = vld [vmem:[#allocation2 + $0x3d4] sm:$0xf0] }
  0x7d   :  { %1807 = vmatpush.bf16.msrb.mxu1 %v5322_v49  ;;  %v5143_v14 = vld [vmem:[#allocation2 + $0x430] sm:$0xf0]  ;;  %v6831_v16 = vld [vmem:[#allocation2 + $0x524] sm:$0xf]  ;;  %v5546_v17 = vor.u32 %v6899_v6, %v5543_v7  ;;  %v5117_v49 = vld [vmem:[#allocation2 + $0x3e8] sm:$0xf] }
  0x7e   :  { %1820 = vmatpush.bf16.msrb.mxu2 %v5450_v50  ;;  %v5271_v18 = vld [vmem:[#allocation2 + $0x530] sm:$0xf0]  ;;  %v6863_v19 = vld [vmem:[#allocation2 + $0x624] sm:$0xf]  ;;  %v5146_v23 = vor.u32 %v6799_v13, %v5143_v14  ;;  %v6794_v50 = vld [vmem:[#allocation2 + $0x3f4] sm:$0xf0] }
  0x7f   :  { %1833 = vmatpush.bf16.msrb.mxu3 %v5578_v54  ;;  %v5399_v20 = vld [vmem:[#allocation2 + $0x630] sm:$0xf0]  ;;  %v6895_v21 = vld [vmem:[#allocation2 + $0x724] sm:$0xf]  ;;  %v5274_v27 = vor.u32 %v6831_v16, %v5271_v18  ;;  %v4990_v54 = vor.u32 %v6762_v46, %v4989_v45  ;;  %v5118_v58 = vor.u32 %v6794_v50, %v5117_v49  ;;  %v4701_v3 = vld [vmem:[#allocation2 + $0xa8] sm:$0xf] }
  0x80   :  { %1795 = vmatpush.bf16.msrb.mxu0 %v5178_v60  ;;  %v5527_v22 = vld [vmem:[#allocation2 + $0x730] sm:$0xf0]  ;;  %v6795_v24 = vld [vmem:[#allocation2 + $0x404] sm:$0xf]  ;;  %v5402_v28 = vor.u32 %v6863_v19, %v5399_v20  ;;  %v4973_v60 = vld [vmem:[#allocation2 + $0x2c8] sm:$0xf] }
  0x81   :  { %1808 = vmatpush.bf16.msrb.mxu1 %v5306_v61  ;;  %v5127_v26 = vld [vmem:[#allocation2 + $0x410] sm:$0xf0]  ;;  %v6827_v29 = vld [vmem:[#allocation2 + $0x504] sm:$0xf]  ;;  %v5530_v32 = vor.u32 %v6895_v21, %v5527_v22  ;;  %v6758_v61 = vld [vmem:[#allocation2 + $0x2d4] sm:$0xf0] }
  0x82   :  { %1821 = vmatpush.bf16.msrb.mxu2 %v5434_v62  ;;  %v5255_v30 = vld [vmem:[#allocation2 + $0x510] sm:$0xf0]  ;;  %v6859_v31 = vld [vmem:[#allocation2 + $0x604] sm:$0xf]  ;;  %v5130_v43 = vor.u32 %v6795_v24, %v5127_v26  ;;  %v5101_v62 = vld [vmem:[#allocation2 + $0x3c8] sm:$0xf] }
  0x83   :  { %1834 = vmatpush.bf16.msrb.mxu3 %v5562_v2  ;;  %v5383_v33 = vld [vmem:[#allocation2 + $0x610] sm:$0xf0]  ;;  %v6891_v35 = vld [vmem:[#allocation2 + $0x704] sm:$0xf]  ;;  %v5258_v47 = vor.u32 %v6827_v29, %v5255_v30  ;;  %v4974_v2 = vor.u32 %v6758_v61, %v4973_v60  ;;  %v6690_v4 = vld [vmem:[#allocation2 + $0xb4] sm:$0xf0]  ;;  %v5102_v6 = vor.u32 %v6790_v63, %v5101_v62 }
  0x84   :  { %1796 = vmatpush.bf16.msrb.mxu0 %v5162_v10  ;;  %v5511_v36 = vld [vmem:[#allocation2 + $0x710] sm:$0xf0]  ;;  %v5386_v48 = vor.u32 %v6859_v31, %v5383_v33  ;;  %v4829_v5 = vld [vmem:[#allocation2 + $0x1a8] sm:$0xf]  ;;  %v6722_v7 = vld [vmem:[#allocation2 + $0x1b4] sm:$0xf0]  ;;  %v4702_v14 = vor.u32 %v6690_v4, %v4701_v3 }
  0x85   :  { %1809 = vmatpush.bf16.msrb.mxu1 %v5290_v11  ;;  %v5514_v51 = vor.u32 %v6891_v35, %v5511_v36  ;;  %v4957_v10 = vld [vmem:[#allocation2 + $0x2a8] sm:$0xf]  ;;  %v6754_v11 = vld [vmem:[#allocation2 + $0x2b4] sm:$0xf0]  ;;  %v4830_v16 = vor.u32 %v6722_v7, %v4829_v5 }
  0x86   :  { %1822 = vmatpush.bf16.msrb.mxu2 %v5418_v12  ;;  %v5085_v12 = vld [vmem:[#allocation2 + $0x3a8] sm:$0xf]  ;;  %v6786_v13 = vld [vmem:[#allocation2 + $0x3b4] sm:$0xf0] }
  0x87   :  { %1835 = vmatpush.bf16.msrb.mxu3 %v5546_v17  ;;  %v4958_v17 = vor.u32 %v6754_v11, %v4957_v10  ;;  %v4685_v18 = vld [vmem:[#allocation2 + $0x88] sm:$0xf]  ;;  %v6686_v19 = vld [vmem:[#allocation2 + $0x94] sm:$0xf0]  ;;  %v5086_v21 = vor.u32 %v6786_v13, %v5085_v12 }
  0x88   :  { %1797 = vmatpush.bf16.msrb.mxu0 %v5146_v23  ;;  %v4813_v20 = vld [vmem:[#allocation2 + $0x188] sm:$0xf]  ;;  %v6718_v22 = vld [vmem:[#allocation2 + $0x194] sm:$0xf0] }
  0x89   :  { %1810 = vmatpush.bf16.msrb.mxu1 %v5274_v27  ;;  %v4941_v23 = vld [vmem:[#allocation2 + $0x288] sm:$0xf]  ;;  %v6750_v24 = vld [vmem:[#allocation2 + $0x294] sm:$0xf0]  ;;  %v4814_v29 = vor.u32 %v6718_v22, %v4813_v20 }
  0x8a   :  { %1823 = vmatpush.bf16.msrb.mxu2 %v5402_v28  ;;  %v5069_v26 = vld [vmem:[#allocation2 + $0x388] sm:$0xf]  ;;  %v6782_v27 = vld [vmem:[#allocation2 + $0x394] sm:$0xf0]  ;;  %v4686_v28 = vor.u32 %v6686_v19, %v4685_v18  ;;  %v4942_v30 = vor.u32 %v6750_v24, %v4941_v23 }
  0x8b   :  { %1836 = vmatpush.bf16.msrb.mxu3 %v5530_v32  ;;  %v4669_v31 = vld [vmem:[#allocation2 + $0x68] sm:$0xf]  ;;  %v6682_v32 = vld [vmem:[#allocation2 + $0x74] sm:$0xf0]  ;;  %v5070_v35 = vor.u32 %v6782_v27, %v5069_v26 }
  0x8c   :  { %1798 = vmatpush.bf16.msrb.mxu0 %v5130_v43  ;;  %v4797_v33 = vld [vmem:[#allocation2 + $0x168] sm:$0xf]  ;;  %v6714_v36 = vld [vmem:[#allocation2 + $0x174] sm:$0xf0]  ;;  %v4670_v44 = vor.u32 %v6682_v32, %v4669_v31 }
  0x8d   :  { %1811 = vmatpush.bf16.msrb.mxu1 %v5258_v47  ;;  %v4925_v39 = vld [vmem:[#allocation2 + $0x268] sm:$0xf]  ;;  %v6746_v41 = vld [vmem:[#allocation2 + $0x274] sm:$0xf0]  ;;  %v4798_v45 = vor.u32 %v6714_v36, %v4797_v33 }
  0x8e   :  { %1824 = vmatpush.bf16.msrb.mxu2 %v5386_v48  ;;  %v5053_v42 = vld [vmem:[#allocation2 + $0x368] sm:$0xf]  ;;  %v6778_v43 = vld [vmem:[#allocation2 + $0x374] sm:$0xf0]  ;;  %v4926_v46 = vor.u32 %v6746_v41, %v4925_v39 }
  0x8f   :  { %1837 = vmatpush.bf16.msrb.mxu3 %v5514_v51  ;;  %1799 = vmatmul.bf16.vlgmr.msrb.gmra.mxu0 %v7388_v37  ;;  %v4653_v47 = vld [vmem:[#allocation2 + $0x48] sm:$0xf]  ;;  %v6678_v48 = vld [vmem:[#allocation2 + $0x54] sm:$0xf0]  ;;  %v5054_v50 = vor.u32 %v6778_v43, %v5053_v42 }
  0x90   :  { %1843 = vmatpush.bf16.msra.mxu0 %v4734_v52  ;;  %1812 = vmatmul.bf16.vlgmr.msrb.gmra.mxu1 %v7392_v40  ;;  %v4781_v49 = vld [vmem:[#allocation2 + $0x148] sm:$0xf]  ;;  %v6710_v51 = vld [vmem:[#allocation2 + $0x154] sm:$0xf0]  ;;  %v4654_v56 = vor.u32 %v6678_v48, %v4653_v47 }
  0x91   :  { %1856 = vmatpush.bf16.msra.mxu1 %v4862_v53  ;;  %1825 = vmatmul.bf16.vlgmr.msrb.gmra.mxu2 %v7386_v34  ;;  %v4909_v52 = vld [vmem:[#allocation2 + $0x248] sm:$0xf]  ;;  %v6742_v53 = vld [vmem:[#allocation2 + $0x254] sm:$0xf0]  ;;  %v4782_v57 = vor.u32 %v6710_v51, %v4781_v49 }
  0x92   :  { %1869 = vmatpush.bf16.msra.mxu2 %v4990_v54  ;;  %1838 = vmatmul.bf16.vlgmr.msrb.gmra.mxu3 %v7390_v38  ;;  %v5037_v54 = vld [vmem:[#allocation2 + $0x348] sm:$0xf]  ;;  %v6774_v55 = vld [vmem:[#allocation2 + $0x354] sm:$0xf0] }
  0x93   :  { %1882 = vmatpush.bf16.msra.mxu3 %v5118_v58  ;;  %v4910_v58 = vor.u32 %v6742_v53, %v4909_v52  ;;  %v4637_v59 = vld [vmem:[#allocation2 + $0x28] sm:$0xf]  ;;  %v6674_v60 = vld [vmem:[#allocation2 + $0x34] sm:$0xf0]  ;;  %v5038_v62 = vor.u32 %v6774_v55, %v5037_v54 }
  0x94   :  { %1844 = vmatpush.bf16.msra.mxu0 %v4718_v0  ;;  %v4765_v61 = vld [vmem:[#allocation2 + $0x128] sm:$0xf]  ;;  %v6706_v63 = vld [vmem:[#allocation2 + $0x134] sm:$0xf0]  ;;  %v4638_v4 = vor.u32 %v6674_v60, %v4637_v59 }
  0x95   :  { %1857 = vmatpush.bf16.msra.mxu1 %v4846_v1  ;;  %v4893_v0 = vld [vmem:[#allocation2 + $0x228] sm:$0xf]  ;;  %v6738_v1 = vld [vmem:[#allocation2 + $0x234] sm:$0xf0]  ;;  %v4766_v7 = vor.u32 %v6706_v63, %v4765_v61 }
  0x96   :  { %1870 = vmatpush.bf16.msra.mxu2 %v4974_v2  ;;  %v5021_v2 = vld [vmem:[#allocation2 + $0x328] sm:$0xf]  ;;  %v6770_v3 = vld [vmem:[#allocation2 + $0x334] sm:$0xf0]  ;;  %v4894_v10 = vor.u32 %v6738_v1, %v4893_v0 }
  0x97   :  { %1883 = vmatpush.bf16.msra.mxu3 %v5102_v6  ;;  %v4621_v5 = vld [vmem:[#allocation2 + $0x8] sm:$0xf]  ;;  %v6670_v6 = vld [vmem:[#allocation2 + $0x14] sm:$0xf0] }
  0x98   :  { %1845 = vmatpush.bf16.msra.mxu0 %v4702_v14  ;;  %v4749_v11 = vld [vmem:[#allocation2 + $0x108] sm:$0xf]  ;;  %v6702_v12 = vld [vmem:[#allocation2 + $0x114] sm:$0xf0]  ;;  %v5022_v14 = vor.u32 %v6770_v3, %v5021_v2  ;;  %v4622_v22 = vor.u32 %v6670_v6, %v4621_v5 }
  0x99   :  { %1858 = vmatpush.bf16.msra.mxu1 %v4830_v16  ;;  %v4877_v13 = vld [vmem:[#allocation2 + $0x208] sm:$0xf]  ;;  %v6734_v16 = vld [vmem:[#allocation2 + $0x214] sm:$0xf0]  ;;  %v4750_v27 = vor.u32 %v6702_v12, %v4749_v11 }
  0x9a   :  { %1871 = vmatpush.bf16.msra.mxu2 %v4958_v17  ;;  %v5005_v17 = vld [vmem:[#allocation2 + $0x308] sm:$0xf]  ;;  %v6766_v18 = vld [vmem:[#allocation2 + $0x314] sm:$0xf0] }
  0x9b   :  { %1884 = vmatpush.bf16.msra.mxu3 %v5086_v21  ;;  %v5245_v19 = vld [vmem:[#allocation2 + $0x4e8] sm:$0xf]  ;;  %v6826_v20 = vld [vmem:[#allocation2 + $0x4f4] sm:$0xf0]  ;;  %v5006_v31 = vor.u32 %v6766_v18, %v5005_v17 }
  0x9c   :  { %1846 = vmatpush.bf16.msra.mxu0 %v4686_v28  ;;  %v5373_v21 = vld [vmem:[#allocation2 + $0x5e8] sm:$0xf]  ;;  %v6858_v23 = vld [vmem:[#allocation2 + $0x5f4] sm:$0xf0]  ;;  %v4878_v28 = vor.u32 %v6734_v16, %v4877_v13  ;;  %v5246_v32 = vor.u32 %v6826_v20, %v5245_v19 }
  0x9d   :  { %1859 = vmatpush.bf16.msra.mxu1 %v4814_v29  ;;  %v5501_v24 = vld [vmem:[#allocation2 + $0x6e8] sm:$0xf]  ;;  %v6890_v26 = vld [vmem:[#allocation2 + $0x6f4] sm:$0xf0]  ;;  %v5374_v33 = vor.u32 %v6858_v23, %v5373_v21 }
  0x9e   :  { %1872 = vmatpush.bf16.msra.mxu2 %v4942_v30  ;;  %v5629_v29 = vld [vmem:[#allocation2 + $0x7e8] sm:$0xf]  ;;  %v6922_v30 = vld [vmem:[#allocation2 + $0x7f4] sm:$0xf0] }
  0x9f   :  { %1885 = vmatpush.bf16.msra.mxu3 %v5070_v35  ;;  %v5502_v35 = vor.u32 %v6890_v26, %v5501_v24  ;;  %v5229_v36 = vld [vmem:[#allocation2 + $0x4c8] sm:$0xf]  ;;  %v6822_v39 = vld [vmem:[#allocation2 + $0x4d4] sm:$0xf0]  ;;  %v5630_v42 = vor.u32 %v6922_v30, %v5629_v29 }
  0xa0   :  { %1847 = vmatpush.bf16.msra.mxu0 %v4670_v44  ;;  %v5357_v41 = vld [vmem:[#allocation2 + $0x5c8] sm:$0xf]  ;;  %v6854_v43 = vld [vmem:[#allocation2 + $0x5d4] sm:$0xf0]  ;;  %v5230_v48 = vor.u32 %v6822_v39, %v5229_v36 }
  0xa1   :  { %1860 = vmatpush.bf16.msra.mxu1 %v4798_v45  ;;  %v5485_v44 = vld [vmem:[#allocation2 + $0x6c8] sm:$0xf]  ;;  %v6886_v45 = vld [vmem:[#allocation2 + $0x6d4] sm:$0xf0]  ;;  %v5358_v49 = vor.u32 %v6854_v43, %v5357_v41 }
  0xa2   :  { %1873 = vmatpush.bf16.msra.mxu2 %v4926_v46  ;;  %v5613_v46 = vld [vmem:[#allocation2 + $0x7c8] sm:$0xf]  ;;  %v6918_v47 = vld [vmem:[#allocation2 + $0x7d4] sm:$0xf0] }
  0xa3   :  { %1886 = vmatpush.bf16.msra.mxu3 %v5054_v50  ;;  %v5486_v50 = vor.u32 %v6886_v45, %v5485_v44  ;;  %v5213_v51 = vld [vmem:[#allocation2 + $0x4a8] sm:$0xf]  ;;  %v6818_v52 = vld [vmem:[#allocation2 + $0x4b4] sm:$0xf0]  ;;  %v5614_v54 = vor.u32 %v6918_v47, %v5613_v46 }
  0xa4   :  { %1848 = vmatpush.bf16.msra.mxu0 %v4654_v56  ;;  %v5341_v53 = vld [vmem:[#allocation2 + $0x5a8] sm:$0xf]  ;;  %v6850_v55 = vld [vmem:[#allocation2 + $0x5b4] sm:$0xf0]  ;;  %v5214_v60 = vor.u32 %v6818_v52, %v5213_v51 }
  0xa5   :  { %1861 = vmatpush.bf16.msra.mxu1 %v4782_v57  ;;  %v5469_v56 = vld [vmem:[#allocation2 + $0x6a8] sm:$0xf]  ;;  %v6882_v57 = vld [vmem:[#allocation2 + $0x6b4] sm:$0xf0]  ;;  %v5342_v61 = vor.u32 %v6850_v55, %v5341_v53 }
  0xa6   :  { %1874 = vmatpush.bf16.msra.mxu2 %v4910_v58  ;;  %v5597_v58 = vld [vmem:[#allocation2 + $0x7a8] sm:$0xf]  ;;  %v6914_v59 = vld [vmem:[#allocation2 + $0x7b4] sm:$0xf0] }
  0xa7   :  { %1887 = vmatpush.bf16.msra.mxu3 %v5038_v62  ;;  %v5470_v62 = vor.u32 %v6882_v57, %v5469_v56  ;;  %v5197_v63 = vld [vmem:[#allocation2 + $0x488] sm:$0xf]  ;;  %v6814_v0 = vld [vmem:[#allocation2 + $0x494] sm:$0xf0]  ;;  %v5598_v2 = vor.u32 %v6914_v59, %v5597_v58 }
  0xa8   :  { %1849 = vmatpush.bf16.msra.mxu0 %v4638_v4  ;;  %v5325_v1 = vld [vmem:[#allocation2 + $0x588] sm:$0xf]  ;;  %v6846_v3 = vld [vmem:[#allocation2 + $0x594] sm:$0xf0] }
  0xa9   :  { %1862 = vmatpush.bf16.msra.mxu1 %v4766_v7  ;;  %v5453_v4 = vld [vmem:[#allocation2 + $0x688] sm:$0xf]  ;;  %v6878_v5 = vld [vmem:[#allocation2 + $0x694] sm:$0xf0]  ;;  %v5326_v11 = vor.u32 %v6846_v3, %v5325_v1 }
  0xaa   :  { %1875 = vmatpush.bf16.msra.mxu2 %v4894_v10  ;;  %v5581_v6 = vld [vmem:[#allocation2 + $0x788] sm:$0xf]  ;;  %v6910_v7 = vld [vmem:[#allocation2 + $0x794] sm:$0xf0]  ;;  %v5198_v10 = vor.u32 %v6814_v0, %v5197_v63  ;;  %v5454_v12 = vor.u32 %v6878_v5, %v5453_v4  ;;  %v6696_v5 = vld [vmem:[#allocation2 + $0xec] sm:$0xf] }
  0xab   :  { %1888 = vmatpush.bf16.msra.mxu3 %v5022_v14  ;;  %v5181_v13 = vld [vmem:[#allocation2 + $0x468] sm:$0xf]  ;;  %v6810_v14 = vld [vmem:[#allocation2 + $0x474] sm:$0xf0]  ;;  %v5582_v17 = vor.u32 %v6910_v7, %v5581_v6  ;;  %v7410_v24 = vpop.f32.mrf.mxu0  ;;  %v4735_v6 = vld [vmem:[#allocation2 + $0xf8] sm:$0xf0] }
  0xac   :  { %1850 = vmatpush.bf16.msra.mxu0 %v4622_v22  ;;  %v5309_v16 = vld [vmem:[#allocation2 + $0x568] sm:$0xf]  ;;  %v6842_v18 = vld [vmem:[#allocation2 + $0x574] sm:$0xf0]  ;;  %v5182_v23 = vor.u32 %v6810_v14, %v5181_v13  ;;  %v6728_v7 = vld [vmem:[#allocation2 + $0x1ec] sm:$0xf] }
  0xad   :  { %1863 = vmatpush.bf16.msra.mxu1 %v4750_v27  ;;  %v5437_v19 = vld [vmem:[#allocation2 + $0x668] sm:$0xf]  ;;  %v6874_v20 = vld [vmem:[#allocation2 + $0x674] sm:$0xf0]  ;;  %v5310_v26 = vor.u32 %v6842_v18, %v5309_v16  ;;  %v4991_v13 = vld [vmem:[#allocation2 + $0x2f8] sm:$0xf0] }
  0xae   :  { %1876 = vmatpush.bf16.msra.mxu2 %v4878_v28  ;;  %v5565_v21 = vld [vmem:[#allocation2 + $0x768] sm:$0xf]  ;;  %v6906_v22 = vld [vmem:[#allocation2 + $0x774] sm:$0xf0]  ;;  %v5438_v27 = vor.u32 %v6874_v20, %v5437_v19  ;;  %v6792_v18 = vld [vmem:[#allocation2 + $0x3ec] sm:$0xf] }
  0xaf   :  { %1889 = vmatpush.bf16.msra.mxu3 %v5006_v31  ;;  %1851 = vmatmul.bf16.vlgmr.msra.gmra.mxu0 %v7358_v9  ;;  %v5165_v28 = vld [vmem:[#allocation2 + $0x448] sm:$0xf]  ;;  %v6806_v29 = vld [vmem:[#allocation2 + $0x454] sm:$0xf0]  ;;  %v5566_v31 = vor.u32 %v6906_v22, %v5565_v21  ;;  %v5119_v19 = vld [vmem:[#allocation2 + $0x3f8] sm:$0xf0]  ;;  %v4738_v21 = vor.u32 %v6696_v5, %v4735_v6 }
  0xb0   :  { %1895 = vmatpush.bf16.msrb.mxu0 %v5246_v32  ;;  %1864 = vmatmul.bf16.vlgmr.msra.gmra.mxu1 %v7371_v25  ;;  %v5293_v30 = vld [vmem:[#allocation2 + $0x548] sm:$0xf]  ;;  %v6838_v32 = vld [vmem:[#allocation2 + $0x554] sm:$0xf0]  ;;  %v5166_v41 = vor.u32 %v6806_v29, %v5165_v28  ;;  %v4719_v28 = vld [vmem:[#allocation2 + $0xd8] sm:$0xf0] }
  0xb1   :  { %1908 = vmatpush.bf16.msrb.mxu1 %v5374_v33  ;;  %1877 = vmatmul.bf16.vlgmr.msra.gmra.mxu2 %v7356_v8  ;;  %v5421_v33 = vld [vmem:[#allocation2 + $0x648] sm:$0xf]  ;;  %v6902_v39 = vld [vmem:[#allocation2 + $0x754] sm:$0xf0]  ;;  %v5294_v43 = vor.u32 %v6838_v32, %v5293_v30  ;;  %v6724_v29 = vld [vmem:[#allocation2 + $0x1cc] sm:$0xf] }
  0xb2   :  { %1921 = vmatpush.bf16.msrb.mxu2 %v5502_v35  ;;  %1890 = vmatmul.bf16.vlgmr.msra.gmra.mxu3 %v7363_v15  ;;  %v6870_v35 = vld [vmem:[#allocation2 + $0x654] sm:$0xf0]  ;;  %v5549_v36 = vld [vmem:[#allocation2 + $0x748] sm:$0xf]  ;;  %v4847_v32 = vld [vmem:[#allocation2 + $0x1d8] sm:$0xf0] }
  0xb3   :  { %1934 = vmatpush.bf16.msrb.mxu3 %v5630_v42  ;;  %v5422_v44 = vor.u32 %v6870_v35, %v5421_v33  ;;  %v5149_v45 = vld [vmem:[#allocation2 + $0x428] sm:$0xf]  ;;  %v6802_v46 = vld [vmem:[#allocation2 + $0x434] sm:$0xf0]  ;;  %v7414_v52 = vpop.f32.mrf.mxu2  ;;  %v1646_v59 = vpop.f32.mrf.mxu0  ;;  %v6756_v33 = vld [vmem:[#allocation2 + $0x2cc] sm:$0xf] }
  0xb4   :  { %1896 = vmatpush.bf16.msrb.mxu0 %v5230_v48  ;;  %v5277_v47 = vld [vmem:[#allocation2 + $0x528] sm:$0xf]  ;;  %v5550_v48 = vor.u32 %v6902_v39, %v5549_v36  ;;  %v6866_v51 = vld [vmem:[#allocation2 + $0x634] sm:$0xf0]  ;;  %v5150_v56 = vor.u32 %v6802_v46, %v5149_v45  ;;  %v4975_v35 = vld [vmem:[#allocation2 + $0x2d8] sm:$0xf0] }
  0xb5   :  { %1909 = vmatpush.bf16.msrb.mxu1 %v5358_v49  ;;  %v6834_v49 = vld [vmem:[#allocation2 + $0x534] sm:$0xf0]  ;;  %v5533_v53 = vld [vmem:[#allocation2 + $0x728] sm:$0xf]  ;;  %v6788_v36 = vld [vmem:[#allocation2 + $0x3cc] sm:$0xf] }
  0xb6   :  { %1922 = vmatpush.bf16.msrb.mxu2 %v5486_v50  ;;  %v5405_v50 = vld [vmem:[#allocation2 + $0x628] sm:$0xf]  ;;  %v6798_v58 = vld [vmem:[#allocation2 + $0x414] sm:$0xf0]  ;;  %v5103_v39 = vld [vmem:[#allocation2 + $0x3d8] sm:$0xf0] }
  0xb7   :  { %1935 = vmatpush.bf16.msrb.mxu3 %v5614_v54  ;;  %v6898_v54 = vld [vmem:[#allocation2 + $0x734] sm:$0xf0]  ;;  %v5133_v57 = vld [vmem:[#allocation2 + $0x408] sm:$0xf]  ;;  %v6688_v45 = vld [vmem:[#allocation2 + $0xac] sm:$0xf] }
  0xb8   :  { %1897 = vmatpush.bf16.msrb.mxu0 %v5214_v60  ;;  %v5278_v60 = vor.u32 %v6834_v49, %v5277_v47  ;;  %v6830_v63 = vld [vmem:[#allocation2 + $0x514] sm:$0xf0]  ;;  %v5389_v0 = vld [vmem:[#allocation2 + $0x608] sm:$0xf]  ;;  %v5534_v1 = vor.u32 %v6898_v54, %v5533_v53  ;;  %v4703_v46 = vld [vmem:[#allocation2 + $0xb8] sm:$0xf0] }
  0xb9   :  { %1910 = vmatpush.bf16.msrb.mxu1 %v5342_v61  ;;  %v5406_v61 = vor.u32 %v6866_v51, %v5405_v50  ;;  %v5517_v3 = vld [vmem:[#allocation2 + $0x708] sm:$0xf]  ;;  %v6894_v4 = vld [vmem:[#allocation2 + $0x714] sm:$0xf0]  ;;  %v6720_v47 = vld [vmem:[#allocation2 + $0x1ac] sm:$0xf] }
  0xba   :  { %1923 = vmatpush.bf16.msrb.mxu2 %v5470_v62  ;;  %v5261_v62 = vld [vmem:[#allocation2 + $0x508] sm:$0xf]  ;;  %v5518_v20 = vor.u32 %v6894_v4, %v5517_v3  ;;  %v4831_v49 = vld [vmem:[#allocation2 + $0x1b8] sm:$0xf0]  ;;  %v6752_v50 = vld [vmem:[#allocation2 + $0x2ac] sm:$0xf] }
  0xbb   :  { %1936 = vmatpush.bf16.msrb.mxu3 %v5598_v2  ;;  %v6862_v2 = vld [vmem:[#allocation2 + $0x614] sm:$0xf0]  ;;  %v5262_v16 = vor.u32 %v6830_v63, %v5261_v62  ;;  %v1672_v22 = vpop.f32.mrf.mxu2  ;;  %v4959_v51 = vld [vmem:[#allocation2 + $0x2b8] sm:$0xf0]  ;;  %v6784_v53 = vld [vmem:[#allocation2 + $0x3ac] sm:$0xf] }
  0xbc   :  { %1898 = vmatpush.bf16.msrb.mxu0 %v5198_v10  ;;  %v7412_v42 = vpop.f32.mrf.mxu1  ;;  %v5134_v10 = vor.u32 %v6798_v58, %v5133_v57  ;;  %v5087_v54 = vld [vmem:[#allocation2 + $0x3b8] sm:$0xf0]  ;;  %v4834_v57 = vor.u32 %v6720_v47, %v4831_v49  ;;  %v4962_v58 = vor.u32 %v6752_v50, %v4959_v51  ;;  %v6684_v59 = vld [vmem:[#allocation2 + $0x8c] sm:$0xf] }
  0xbd   :  { %1911 = vmatpush.bf16.msrb.mxu1 %v5326_v11  ;;  %v4863_v11 = vld [vmem:[#allocation2 + $0x1f8] sm:$0xf0]  ;;  %v5090_v62 = vor.u32 %v6784_v53, %v5087_v54  ;;  %v6736_v53 = vld [vmem:[#allocation2 + $0x22c] sm:$0xf] }
  0xbe   :  { %1924 = vmatpush.bf16.msrb.mxu2 %v5454_v12  ;;  %v6760_v12 = vld [vmem:[#allocation2 + $0x2ec] sm:$0xf]  ;;  %v4815_v63 = vld [vmem:[#allocation2 + $0x198] sm:$0xf0] }
  0xbf   :  { %1937 = vmatpush.bf16.msrb.mxu3 %v5582_v17  ;;  %v7416_v55 = vpop.f32.mrf.mxu3  ;;  %v5390_v17 = vor.u32 %v6862_v2, %v5389_v0  ;;  %v6748_v0 = vld [vmem:[#allocation2 + $0x28c] sm:$0xf]  ;;  %v5071_v3 = vld [vmem:[#allocation2 + $0x398] sm:$0xf0] }
  0xc0   :  { %1899 = vmatpush.bf16.msrb.mxu0 %v5182_v23  ;;  %v4866_v23 = vor.u32 %v6728_v7, %v4863_v11  ;;  %v6780_v2 = vld [vmem:[#allocation2 + $0x38c] sm:$0xf]  ;;  %v4671_v11 = vld [vmem:[#allocation2 + $0x78] sm:$0xf0] }
  0xc1   :  { %1912 = vmatpush.bf16.msrb.mxu1 %v5310_v26  ;;  %v4994_v26 = vor.u32 %v6760_v12, %v4991_v13  ;;  %v6712_v12 = vld [vmem:[#allocation2 + $0x16c] sm:$0xf]  ;;  %v4639_v47 = vld [vmem:[#allocation2 + $0x38] sm:$0xf0] }
  0xc2   :  { %1925 = vmatpush.bf16.msrb.mxu2 %v5438_v27  ;;  %v6692_v27 = vld [vmem:[#allocation2 + $0xcc] sm:$0xf]  ;;  %v4767_v51 = vld [vmem:[#allocation2 + $0x138] sm:$0xf0] }
  0xc3   :  { %1938 = vmatpush.bf16.msrb.mxu3 %v5566_v31  ;;  %v5122_v31 = vor.u32 %v6792_v18, %v5119_v19  ;;  %v4927_v18 = vld [vmem:[#allocation2 + $0x278] sm:$0xf0]  ;;  %v6776_v19 = vld [vmem:[#allocation2 + $0x36c] sm:$0xf] }
  0xc4   :  { %1900 = vmatpush.bf16.msrb.mxu0 %v5166_v41  ;;  %v1659_v14 = vpop.f32.mrf.mxu1  ;;  %v4722_v41 = vor.u32 %v6692_v27, %v4719_v28  ;;  %v4655_v27 = vld [vmem:[#allocation2 + $0x58] sm:$0xf0]  ;;  %v6708_v28 = vld [vmem:[#allocation2 + $0x14c] sm:$0xf] }
  0xc5   :  { %1913 = vmatpush.bf16.msrb.mxu1 %v5294_v43  ;;  %v4850_v43 = vor.u32 %v6724_v29, %v4847_v32  ;;  %v5074_v14 = vor.u32 %v6780_v2, %v5071_v3  ;;  %v6740_v32 = vld [vmem:[#allocation2 + $0x24c] sm:$0xf]  ;;  %v4895_v54 = vld [vmem:[#allocation2 + $0x238] sm:$0xf0] }
  0xc6   :  { %1926 = vmatpush.bf16.msrb.mxu2 %v5422_v44  ;;  %v4978_v44 = vor.u32 %v6756_v33, %v4975_v35  ;;  %v4911_v33 = vld [vmem:[#allocation2 + $0x258] sm:$0xf0] }
  0xc7   :  { %1939 = vmatpush.bf16.msrb.mxu3 %v5550_v48  ;;  %v1685_v30 = vpop.f32.mrf.mxu3  ;;  %v5106_v48 = vor.u32 %v6788_v36, %v5103_v39  ;;  %v6772_v36 = vld [vmem:[#allocation2 + $0x34c] sm:$0xf]  ;;  %v5039_v39 = vld [vmem:[#allocation2 + $0x358] sm:$0xf0] }
  0xc8   :  { %1901 = vmatpush.bf16.msrb.mxu0 %v5150_v56  ;;  %v4706_v56 = vor.u32 %v6688_v45, %v4703_v46  ;;  %v4914_v45 = vor.u32 %v6740_v32, %v4911_v33  ;;  %v6672_v46 = vld [vmem:[#allocation2 + $0x2c] sm:$0xf]  ;;  %v5042_v50 = vor.u32 %v6772_v36, %v5039_v39  ;;  %v5231_v32 = vld [vmem:[#allocation2 + $0x4d8] sm:$0xf0] }
  0xc9   :  { %1914 = vmatpush.bf16.msrb.mxu1 %v5278_v60  ;;  %v4687_v60 = vld [vmem:[#allocation2 + $0x98] sm:$0xf0]  ;;  %v6852_v33 = vld [vmem:[#allocation2 + $0x5cc] sm:$0xf] }
  0xca   :  { %1927 = vmatpush.bf16.msrb.mxu2 %v5406_v61  ;;  %v6716_v61 = vld [vmem:[#allocation2 + $0x18c] sm:$0xf]  ;;  %v4690_v4 = vor.u32 %v6684_v59, %v4687_v60  ;;  %v4623_v60 = vld [vmem:[#allocation2 + $0x18] sm:$0xf0] }
  0xcb   :  { %1940 = vmatpush.bf16.msrb.mxu3 %v5534_v1  ;;  %v4943_v1 = vld [vmem:[#allocation2 + $0x298] sm:$0xf0]  ;;  %v4818_v6 = vor.u32 %v6716_v61, %v4815_v63  ;;  %v6668_v59 = vld [vmem:[#allocation2 + $0xc] sm:$0xf] }
  0xcc   :  { %1902 = vmatpush.bf16.msrb.mxu0 %v5134_v10  ;;  %v7422_v5 = vpop.f32.mrf.mxu0  ;;  %v4946_v7 = vor.u32 %v6748_v0, %v4943_v1  ;;  %v6680_v10 = vld [vmem:[#allocation2 + $0x6c] sm:$0xf]  ;;  %v4751_v0 = vld [vmem:[#allocation2 + $0x118] sm:$0xf0] }
  0xcd   :  { %1915 = vmatpush.bf16.msrb.mxu1 %v5262_v16  ;;  %v7424_v13 = vpop.f32.mrf.mxu1  ;;  %v4799_v16 = vld [vmem:[#allocation2 + $0x178] sm:$0xf0]  ;;  %v6700_v63 = vld [vmem:[#allocation2 + $0x10c] sm:$0xf] }
  0xce   :  { %1928 = vmatpush.bf16.msrb.mxu2 %v5390_v17  ;;  %v6744_v17 = vld [vmem:[#allocation2 + $0x26c] sm:$0xf]  ;;  %v4802_v22 = vor.u32 %v6712_v12, %v4799_v16  ;;  %v5247_v12 = vld [vmem:[#allocation2 + $0x4f8] sm:$0xf0]  ;;  %v4626_v16 = vor.u32 %v6668_v59, %v4623_v60 }
  0xcf   :  { %1941 = vmatpush.bf16.msrb.mxu3 %v5518_v20  ;;  %1903 = vmatmul.bf16.vlgmr.msrb.gmra.mxu0 %v7388_v37  ;;  %v5055_v20 = vld [vmem:[#allocation2 + $0x378] sm:$0xf0]  ;;  %v6732_v1 = vld [vmem:[#allocation2 + $0x20c] sm:$0xf] }
  0xd0   :  { %1947 = vmatpush.bf16.msra.mxu0 %v4738_v21  ;;  %1916 = vmatmul.bf16.vlgmr.msrb.gmra.mxu1 %v7392_v40  ;;  %v4674_v21 = vor.u32 %v6680_v10, %v4671_v11  ;;  %v5058_v30 = vor.u32 %v6776_v19, %v5055_v20  ;;  %v6824_v11 = vld [vmem:[#allocation2 + $0x4ec] sm:$0xf]  ;;  %v5503_v19 = vld [vmem:[#allocation2 + $0x6f8] sm:$0xf0]  ;;  %v4754_v20 = vor.u32 %v6700_v63, %v4751_v0 }
  0xd1   :  { %1960 = vmatpush.bf16.msra.mxu1 %v4866_v23  ;;  %1929 = vmatmul.bf16.vlgmr.msrb.gmra.mxu2 %v7386_v34  ;;  %v4930_v23 = vor.u32 %v6744_v17, %v4927_v18  ;;  %v5375_v17 = vld [vmem:[#allocation2 + $0x5f8] sm:$0xf0]  ;;  %v6888_v18 = vld [vmem:[#allocation2 + $0x6ec] sm:$0xf] }
  0xd2   :  { %1973 = vmatpush.bf16.msra.mxu2 %v4994_v26  ;;  %1942 = vmatmul.bf16.vlgmr.msrb.gmra.mxu3 %v7390_v38  ;;  %v6676_v26 = vld [vmem:[#allocation2 + $0x4c] sm:$0xf]  ;;  %v5359_v39 = vld [vmem:[#allocation2 + $0x5d8] sm:$0xf0] }
  0xd3   :  { %1986 = vmatpush.bf16.msra.mxu3 %v5122_v31  ;;  %v4783_v31 = vld [vmem:[#allocation2 + $0x158] sm:$0xf0]  ;;  %v6812_v63 = vld [vmem:[#allocation2 + $0x48c] sm:$0xf] }
  0xd4   :  { %1948 = vmatpush.bf16.msra.mxu0 %v4722_v41  ;;  %v7426_v29 = vpop.f32.mrf.mxu2  ;;  %v4658_v41 = vor.u32 %v6676_v26, %v4655_v27  ;;  %v5250_v27 = vor.u32 %v6824_v11, %v5247_v12  ;;  %v5599_v59 = vld [vmem:[#allocation2 + $0x7b8] sm:$0xf0]  ;;  %v6808_v11 = vld [vmem:[#allocation2 + $0x46c] sm:$0xf] }
  0xd5   :  { %1961 = vmatpush.bf16.msra.mxu1 %v4850_v43  ;;  %v7428_v35 = vpop.f32.mrf.mxu3  ;;  %v1698_v43 = vpop.f32.mrf.mxu0  ;;  %v5199_v0 = vld [vmem:[#allocation2 + $0x498] sm:$0xf0] }
  0xd6   :  { %1974 = vmatpush.bf16.msra.mxu2 %v4978_v44  ;;  %v4786_v44 = vor.u32 %v6708_v28, %v4783_v31  ;;  %v1711_v49 = vpop.f32.mrf.mxu1  ;;  %v6820_v31 = vld [vmem:[#allocation2 + $0x4cc] sm:$0xf]  ;;  %v5487_v43 = vld [vmem:[#allocation2 + $0x6d8] sm:$0xf0] }
  0xd7   :  { %1987 = vmatpush.bf16.msra.mxu3 %v5106_v48  ;;  %v6704_v48 = vld [vmem:[#allocation2 + $0x12c] sm:$0xf]  ;;  %v5183_v12 = vld [vmem:[#allocation2 + $0x478] sm:$0xf0] }
  0xd8   :  { %1949 = vmatpush.bf16.msra.mxu0 %v4706_v56  ;;  %v6768_v56 = vld [vmem:[#allocation2 + $0x32c] sm:$0xf]  ;;  %v4770_v61 = vor.u32 %v6704_v48, %v4767_v51 }
  0xd9   :  { %1962 = vmatpush.bf16.msra.mxu1 %v4834_v57  ;;  %v5023_v57 = vld [vmem:[#allocation2 + $0x338] sm:$0xf0]  ;;  %v6816_v49 = vld [vmem:[#allocation2 + $0x4ac] sm:$0xf] }
  0xda   :  { %1975 = vmatpush.bf16.msra.mxu2 %v4962_v58  ;;  %v4642_v58 = vor.u32 %v6672_v46, %v4639_v47  ;;  %v5026_v3 = vor.u32 %v6768_v56, %v5023_v57  ;;  %v5234_v46 = vor.u32 %v6820_v31, %v5231_v32  ;;  %v5362_v47 = vor.u32 %v6852_v33, %v5359_v39  ;;  %v6848_v51 = vld [vmem:[#allocation2 + $0x5ac] sm:$0xf]  ;;  %v5471_v57 = vld [vmem:[#allocation2 + $0x6b8] sm:$0xf0] }
  0xdb   :  { %1988 = vmatpush.bf16.msra.mxu3 %v5090_v62  ;;  %v4898_v62 = vor.u32 %v6736_v53, %v4895_v54  ;;  %v5343_v54 = vld [vmem:[#allocation2 + $0x5b8] sm:$0xf0]  ;;  %v6880_v56 = vld [vmem:[#allocation2 + $0x6ac] sm:$0xf] }
  0xdc   :  { %1950 = vmatpush.bf16.msra.mxu0 %v4690_v4  ;;  %v1724_v2 = vpop.f32.mrf.mxu2  ;;  %v4879_v4 = vld [vmem:[#allocation2 + $0x218] sm:$0xf0]  ;;  %v6836_v31 = vld [vmem:[#allocation2 + $0x54c] sm:$0xf] }
  0xdd   :  { %1963 = vmatpush.bf16.msra.mxu1 %v4818_v6  ;;  %v6764_v6 = vld [vmem:[#allocation2 + $0x30c] sm:$0xf]  ;;  %v1737_v10 = vpop.f32.mrf.mxu3  ;;  %v5327_v2 = vld [vmem:[#allocation2 + $0x598] sm:$0xf0] }
  0xde   :  { %1976 = vmatpush.bf16.msra.mxu2 %v4946_v7  ;;  %v5007_v7 = vld [vmem:[#allocation2 + $0x318] sm:$0xf0]  ;;  %v6868_v39 = vld [vmem:[#allocation2 + $0x64c] sm:$0xf] }
  0xdf   :  { %1989 = vmatpush.bf16.msra.mxu3 %v5074_v14  ;;  %v6856_v14 = vld [vmem:[#allocation2 + $0x5ec] sm:$0xf]  ;;  %v5010_v26 = vor.u32 %v6764_v6, %v5007_v7 }
  0xe0   :  { %1951 = vmatpush.bf16.msra.mxu0 %v4674_v21  ;;  %v4882_v21 = vor.u32 %v6732_v1, %v4879_v4  ;;  %v5378_v28 = vor.u32 %v6856_v14, %v5375_v17  ;;  %v5455_v4 = vld [vmem:[#allocation2 + $0x698] sm:$0xf0]  ;;  %v6908_v6 = vld [vmem:[#allocation2 + $0x78c] sm:$0xf] }
  0xe1   :  { %1964 = vmatpush.bf16.msra.mxu1 %v4802_v22  ;;  %v6920_v22 = vld [vmem:[#allocation2 + $0x7ec] sm:$0xf] }
  0xe2   :  { %1977 = vmatpush.bf16.msra.mxu2 %v4930_v23  ;;  %v5631_v23 = vld [vmem:[#allocation2 + $0x7f8] sm:$0xf0]  ;;  %v6840_v14 = vld [vmem:[#allocation2 + $0x56c] sm:$0xf] }
  0xe3   :  { %1990 = vmatpush.bf16.msra.mxu3 %v5058_v30  ;;  %v5506_v30 = vor.u32 %v6888_v18, %v5503_v19  ;;  %v5634_v36 = vor.u32 %v6920_v22, %v5631_v23  ;;  %v5311_v18 = vld [vmem:[#allocation2 + $0x578] sm:$0xf0]  ;;  %v6872_v19 = vld [vmem:[#allocation2 + $0x66c] sm:$0xf]  ;;  %v5186_v23 = vor.u32 %v6808_v11, %v5183_v12 }
  0xe4   :  { %1952 = vmatpush.bf16.msra.mxu0 %v4658_v41  ;;  %v6884_v41 = vld [vmem:[#allocation2 + $0x6cc] sm:$0xf]  ;;  %v5567_v22 = vld [vmem:[#allocation2 + $0x778] sm:$0xf0] }
  0xe5   :  { %1965 = vmatpush.bf16.msra.mxu1 %v4786_v44  ;;  %v6916_v44 = vld [vmem:[#allocation2 + $0x7cc] sm:$0xf]  ;;  %v5490_v48 = vor.u32 %v6884_v41, %v5487_v43  ;;  %v5423_v41 = vld [vmem:[#allocation2 + $0x658] sm:$0xf0] }
  0xe6   :  { %1978 = vmatpush.bf16.msra.mxu2 %v4914_v45  ;;  %v5615_v45 = vld [vmem:[#allocation2 + $0x7d8] sm:$0xf0]  ;;  %v6892_v11 = vld [vmem:[#allocation2 + $0x70c] sm:$0xf] }
  0xe7   :  { %1991 = vmatpush.bf16.msra.mxu3 %v5042_v50  ;;  %v5215_v50 = vld [vmem:[#allocation2 + $0x4b8] sm:$0xf0]  ;;  %v5618_v53 = vor.u32 %v6916_v44, %v5615_v45  ;;  %v6900_v44 = vld [vmem:[#allocation2 + $0x74c] sm:$0xf] }
  0xe8   :  { %1953 = vmatpush.bf16.msra.mxu0 %v4642_v58  ;;  %v6912_v58 = vld [vmem:[#allocation2 + $0x7ac] sm:$0xf]  ;;  %v5218_v60 = vor.u32 %v6816_v49, %v5215_v50  ;;  %v5551_v45 = vld [vmem:[#allocation2 + $0x758] sm:$0xf0]  ;;  %v5426_v49 = vor.u32 %v6868_v39, %v5423_v41  ;;  %v2066_v39 = vld [vmem:[%s8015_s4 + $0x58] sm:$0xff] }
  0xe9   :  { %1966 = vmatpush.bf16.msra.mxu1 %v4770_v61  ;;  %v5346_v61 = vor.u32 %v6848_v51, %v5343_v54  ;;  %v5602_v1 = vor.u32 %v6912_v58, %v5599_v59  ;;  %v6800_v50 = vld [vmem:[#allocation2 + $0x42c] sm:$0xf]  ;;  %v5151_v51 = vld [vmem:[#allocation2 + $0x438] sm:$0xf0]  ;;  %v2082_v41 = vld [vmem:[%s8015_s4 + $0xd8] sm:$0xff] }
  0xea   :  { %1979 = vmatpush.bf16.msra.mxu2 %v4898_v62  ;;  %v5474_v62 = vor.u32 %v6880_v56, %v5471_v57  ;;  %v5554_v56 = vor.u32 %v6900_v44, %v5551_v45  ;;  %v5279_v57 = vld [vmem:[#allocation2 + $0x538] sm:$0xf0]  ;;  %v6864_v58 = vld [vmem:[#allocation2 + $0x62c] sm:$0xf] }
  0xeb   :  { %1992 = vmatpush.bf16.msra.mxu3 %v5026_v3  ;;  %v6876_v3 = vld [vmem:[#allocation2 + $0x68c] sm:$0xf]  ;;  %v5407_v59 = vld [vmem:[#allocation2 + $0x638] sm:$0xf0] }
  0xec   :  { %1954 = vmatpush.bf16.msra.mxu0 %v4626_v16  ;;  %v7434_v7 = vpop.f32.mrf.mxu0  ;;  %v5458_v10 = vor.u32 %v6876_v3, %v5455_v4  ;;  %v6828_v3 = vld [vmem:[#allocation2 + $0x50c] sm:$0xf]  ;;  %v5519_v12 = vld [vmem:[#allocation2 + $0x718] sm:$0xf0] }
  0xed   :  { %1967 = vmatpush.bf16.msra.mxu1 %v4754_v20  ;;  %v7436_v16 = vpop.f32.mrf.mxu1  ;;  %v5439_v20 = vld [vmem:[#allocation2 + $0x678] sm:$0xf0] }
  0xee   :  { %1980 = vmatpush.bf16.msra.mxu2 %v4882_v21  ;;  %v6904_v21 = vld [vmem:[#allocation2 + $0x76c] sm:$0xf] }
  0xef   :  { %1993 = vmatpush.bf16.msra.mxu3 %v5010_v26  ;;  %1955 = vmatmul.bf16.vlgmr.msra.gmra.mxu0 %v7358_v9  ;;  %v5583_v9 = vld [vmem:[#allocation2 + $0x798] sm:$0xf0]  ;;  %v5314_v26 = vor.u32 %v6840_v14, %v5311_v18  ;;  %v5570_v33 = vor.u32 %v6904_v21, %v5567_v22  ;;  %v5522_v21 = vor.u32 %v6892_v11, %v5519_v12  ;;  %v2070_v22 = vld [vmem:[%s8015_s4 + $0x78] sm:$0xff]  ;;  %v2092_v12 = vld [vmem:[%s8015_s4 + $0x128] sm:$0xff] }
  0xf0   :  { %1999 = vmatpush.bf16.msrb.mxu0 %v5250_v27  ;;  %1968 = vmatmul.bf16.vlgmr.msra.gmra.mxu1 %v7371_v25  ;;  %v5586_v17 = vor.u32 %v6908_v6, %v5583_v9  ;;  %v5442_v27 = vor.u32 %v6872_v19, %v5439_v20  ;;  %v5263_v9 = vld [vmem:[#allocation2 + $0x518] sm:$0xf0] }
  0xf1   :  { %2012 = vmatpush.bf16.msrb.mxu1 %v5378_v28  ;;  %1981 = vmatmul.bf16.vlgmr.msra.gmra.mxu2 %v7356_v8  ;;  %v6844_v8 = vld [vmem:[#allocation2 + $0x58c] sm:$0xf]  ;;  %v5266_v19 = vor.u32 %v6828_v3, %v5263_v9  ;;  %v2094_v3 = vld [vmem:[%s8015_s4 + $0x138] sm:$0xff]  ;;  %v2076_v9 = vld [vmem:[%s8015_s4 + $0xa8] sm:$0xff] }
  0xf2   :  { %2025 = vmatpush.bf16.msrb.mxu2 %v5506_v30  ;;  %1994 = vmatmul.bf16.vlgmr.msra.gmra.mxu3 %v7363_v15  ;;  %v5202_v15 = vor.u32 %v6812_v63, %v5199_v0  ;;  %v5330_v25 = vor.u32 %v6844_v8, %v5327_v2  ;;  %v6804_v28 = vld [vmem:[#allocation2 + $0x44c] sm:$0xf]  ;;  %v5167_v30 = vld [vmem:[#allocation2 + $0x458] sm:$0xf0]  ;;  %v5154_v63 = vor.u32 %v6800_v50, %v5151_v51  ;;  %v2064_v50 = vld [vmem:[%s8015_s4 + $0x48] sm:$0xff] }
  0xf3   :  { %2038 = vmatpush.bf16.msrb.mxu3 %v5634_v36  ;;  %v5295_v36 = vld [vmem:[#allocation2 + $0x558] sm:$0xf0]  ;;  %v5410_v8 = vor.u32 %v6864_v58, %v5407_v59  ;;  %v2097_v51 = vld [vmem:[%s8015_s4 + $0x150] sm:$0xff]  ;;  %v2062_v59 = vld [vmem:[%s8015_s4 + $0x38] sm:$0xff] }
  0xf4   :  { %2000 = vmatpush.bf16.msrb.mxu0 %v5234_v46  ;;  %v7438_v32 = vpop.f32.mrf.mxu2  ;;  %v5170_v46 = vor.u32 %v6804_v28, %v5167_v30  ;;  %v5135_v2 = vld [vmem:[#allocation2 + $0x418] sm:$0xf0]  ;;  %v2069_v28 = vld [vmem:[%s8015_s4 + $0x70] sm:$0xff]  ;;  %v2102_v30 = vld [vmem:[%s8015_s4 + $0x178] sm:$0xff] }
  0xf5   :  { %2013 = vmatpush.bf16.msrb.mxu1 %v5362_v47  ;;  %v7440_v43 = vpop.f32.mrf.mxu3  ;;  %v1750_v47 = vpop.f32.mrf.mxu0 }
  0xf6   :  { %2026 = vmatpush.bf16.msrb.mxu2 %v5490_v48  ;;  %v5298_v48 = vor.u32 %v6836_v31, %v5295_v36  ;;  %v1763_v54 = vpop.f32.mrf.mxu1 }
  0xf7   :  { %2039 = vmatpush.bf16.msrb.mxu3 %v5618_v53  ;;  %v6832_v53 = vld [vmem:[#allocation2 + $0x52c] sm:$0xf] }
  0xf8   :  { %2001 = vmatpush.bf16.msrb.mxu0 %v5218_v60  ;;  %v6896_v60 = vld [vmem:[#allocation2 + $0x72c] sm:$0xf]  ;;  %v5282_v0 = vor.u32 %v6832_v53, %v5279_v57  ;;  %v2079_v53 = vld [vmem:[%s8015_s4 + $0xc0] sm:$0xff]  ;;  %v2096_v57 = vld [vmem:[%s8015_s4 + $0x148] sm:$0xff] }
  0xf9   :  { %2014 = vmatpush.bf16.msrb.mxu1 %v5346_v61  ;;  %v5535_v61 = vld [vmem:[#allocation2 + $0x738] sm:$0xf0] }
  0xfa   :  { %2027 = vmatpush.bf16.msrb.mxu2 %v5474_v62  ;;  %v7445_v62 = vld [vmem:[%s8014_s3] sm:$0xf]  ;;  %v5538_v6 = vor.u32 %v6896_v60, %v5535_v61  ;;  %v2078_v61 = vld [vmem:[%s8015_s4 + $0xb8] sm:$0xff] }
  0xfb   :  { %2040 = vmatpush.bf16.msrb.mxu3 %v5602_v1  ;;  %v6796_v1 = vld [vmem:[#allocation2 + $0x40c] sm:$0xf]  ;;  %v348_v14 = vperm.slane %v7445_v62, 1 }
  0xfc   :  { %2002 = vmatpush.bf16.msrb.mxu0 %v5202_v15  ;;  %v1776_v4 = vpop.f32.mrf.mxu2  ;;  %v6860_v15 = vld [vmem:[#allocation2 + $0x60c] sm:$0xf]  ;;  %v5138_v18 = vor.u32 %v6796_v1, %v5135_v2 }
  0xfd   :  { %2015 = vmatpush.bf16.msrb.mxu1 %v5330_v25  ;;  %v5391_v25 = vld [vmem:[#allocation2 + $0x618] sm:$0xf0] }
  0xfe   :  { %2028 = vmatpush.bf16.msrb.mxu2 %v5458_v10  ;;  %v1789_v10 = vpop.f32.mrf.mxu3  ;;  %v5394_v20 = vor.u32 %v6860_v15, %v5391_v25  ;;  %v2093_v15 = vld [vmem:[%s8015_s4 + $0x130] sm:$0xff]  ;;  %v2075_v25 = vld [vmem:[%s8015_s4 + $0xa0] sm:$0xff] }
  0xff   :  { %2041 = vmatpush.bf16.msrb.mxu3 %v5586_v17  ;;  %v347_v17 = vperm.slane %v7445_v62, 0 }
 0x100   :  { %2003 = vmatpush.bf16.msrb.mxu0 %v5186_v23  ;;  %v1749_v23 = vadd.f32 %v7434_v7, %v348_v14 }
 0x101   :  { %2016 = vmatpush.bf16.msrb.mxu1 %v5314_v26  ;;  %v1645_v26 = vadd.f32 %v7410_v24, %v347_v17  ;;  %v2085_v24 = vld [vmem:[%s8015_s4 + $0xf0] sm:$0xff]  ;;  %v2058_v17 = vld [vmem:[%s8015_s4 + $0x18] sm:$0xff] }
 0x102   :  { %2029 = vmatpush.bf16.msrb.mxu2 %v5442_v27  ;;  %v2086_v27 = vld [vmem:[%s8015_s4 + $0xf8] sm:$0xff]  ;;  %v1762_v7 = vadd.f32 %v7436_v16, %v1749_v23  ;;  %v2084_v16 = vld [vmem:[%s8015_s4 + $0xe8] sm:$0xff] }
 0x103   :  { %2042 = vmatpush.bf16.msrb.mxu3 %v5570_v33  ;;  %v1658_v31 = vadd.f32 %v7412_v42, %v1645_v26  ;;  %v2101_v33 = vld [vmem:[%s8015_s4 + $0x170] sm:$0xff]  ;;  %v2100_v42 = vld [vmem:[%s8015_s4 + $0x168] sm:$0xff]  ;;  %v2090_v23 = vld [vmem:[%s8015_s4 + $0x118] sm:$0xff] }
 0x104   :  { %2004 = vmatpush.bf16.msrb.mxu0 %v5170_v46  ;;  %v2081_v46 = vld [vmem:[%s8015_s4 + $0xd0] sm:$0xff] }
 0x105   :  { %2017 = vmatpush.bf16.msrb.mxu1 %v5298_v48  ;;  %v1671_v36 = vadd.f32 %v7414_v52, %v1658_v31  ;;  %v2065_v52 = vld [vmem:[%s8015_s4 + $0x50] sm:$0xff]  ;;  %v2098_v48 = vld [vmem:[%s8015_s4 + $0x158] sm:$0xff] }
 0x106   :  { %2030 = vmatpush.bf16.msrb.mxu2 %v5426_v49 }
 0x107   :  { %2043 = vmatpush.bf16.msrb.mxu3 %v5554_v56  ;;  %v1684_v49 = vadd.f32 %v7416_v55, %v1671_v36  ;;  %v2063_v55 = vld [vmem:[%s8015_s4 + $0x40] sm:$0xff]  ;;  %v2250_v36 = vld [vmem:[%s8017_s6 + $0x178] sm:$0xff] }
 0x108   :  { %2005 = vmatpush.bf16.msrb.mxu0 %v5154_v63  ;;  %v2095_v63 = vld [vmem:[%s8015_s4 + $0x140] sm:$0xff] }
 0x109   :  { %2018 = vmatpush.bf16.msrb.mxu1 %v5282_v0  ;;  %v1697_v58 = vadd.f32 %v7422_v5, %v1684_v49  ;;  %v2061_v5 = vld [vmem:[%s8015_s4 + $0x30] sm:$0xff] }
 0x10a   :  { %2031 = vmatpush.bf16.msrb.mxu2 %v5410_v8  ;;  %v2077_v8 = vld [vmem:[%s8015_s4 + $0xb0] sm:$0xff] }
 0x10b   :  { %2044 = vmatpush.bf16.msrb.mxu3 %v5538_v6  ;;  %v1710_v4 = vadd.f32 %v7424_v13, %v1697_v58  ;;  %v2060_v6 = vld [vmem:[%s8015_s4 + $0x28] sm:$0xff]  ;;  %v2059_v13 = vld [vmem:[%s8015_s4 + $0x20] sm:$0xff]  ;;  %v2213_v49 = vld [vmem:[%s8017_s6 + $0x50] sm:$0xff] }
 0x10c   :  { %2006 = vmatpush.bf16.msrb.mxu0 %v5138_v18  ;;  %v1800_v44 = vpop.f32.mrf.mxu0  ;;  %v2245_v58 = vld [vmem:[%s8017_s6 + $0x150] sm:$0xff] }
 0x10d   :  { %2019 = vmatpush.bf16.msrb.mxu1 %v5266_v19  ;;  %v1813_v47 = vpop.f32.mrf.mxu1  ;;  %v1723_v14 = vadd.f32 %v7426_v29, %v1710_v4  ;;  %v2074_v19 = vld [vmem:[%s8015_s4 + $0x98] sm:$0xff]  ;;  %v2057_v29 = vld [vmem:[%s8015_s4 + $0x10] sm:$0xff]  ;;  %v349_v4 = vperm.slane %v7445_v62, 2 }
 0x10e   :  { %2032 = vmatpush.bf16.msrb.mxu2 %v5394_v20  ;;  %v2091_v20 = vld [vmem:[%s8015_s4 + $0x120] sm:$0xff] }
 0x10f   :  { %2045 = vmatpush.bf16.msrb.mxu3 %v5522_v21  ;;  %2007 = vmatmul.bf16.vlgmr.msrb.gmra.mxu0 %v7388_v37  ;;  %v2068_v37 = vld [vmem:[%s8015_s4 + $0x68] sm:$0xff]  ;;  %v7590_v26 = vadd.f32 %v7428_v35, %v1723_v14  ;;  %v2055_v35 = vld [vmem:[%s8015_s4] sm:$0xff]  ;;  %v2241_v14 = vld [vmem:[%s8017_s6 + $0x130] sm:$0xff] }
 0x110   :  { %2123 = vmatpush.msra.mxu0 %v2070_v22  ;;  %2020 = vmatmul.bf16.vlgmr.msrb.gmra.mxu1 %v7392_v40  ;;  %v1775_v40 = vadd.f32 %v7438_v32, %v1762_v7  ;;  %v2099_v32 = vld [vmem:[%s8015_s4 + $0x160] sm:$0xff]  ;;  %v2073_v22 = vld [vmem:[%s8015_s4 + $0x90] sm:$0xff] }
 0x111   :  { %2143 = vmatpush.msra.mxu1 %v2086_v27  ;;  %2033 = vmatmul.bf16.vlgmr.msrb.gmra.mxu2 %v7386_v34  ;;  %v2067_v34 = vld [vmem:[%s8015_s4 + $0x60] sm:$0xff]  ;;  %v2056_v27 = vld [vmem:[%s8015_s4 + $0x8] sm:$0xff]  ;;  %v2051_v31 = vmax.f32 %v7590_v26, 0.0  ;;  %v2110_v26 = vld [vmem:[%s8015_s4 + $0x1b8] sm:$0xff] }
 0x112   :  { %2046 = vmatmul.bf16.vlgmr.msrb.gmra.mxu3 %v7390_v38  ;;  %2124 = vmatpush.msra.mxu0 %v2069_v28  ;;  %v2083_v38 = vld [vmem:[%s8015_s4 + $0xe0] sm:$0xff]  ;;  %v1788_v45 = vadd.f32 %v7440_v43, %v1775_v40  ;;  %v2080_v43 = vld [vmem:[%s8015_s4 + $0xc8] sm:$0xff] }
 0x113   :  { %2144 = vmatpush.msra.mxu1 %v2085_v24  ;;  %2163 = vmatpush.msra.mxu2 %v2102_v30  ;;  %v2072_v28 = vld [vmem:[%s8015_s4 + $0x88] sm:$0xff]  ;;  %v2089_v24 = vld [vmem:[%s8015_s4 + $0x110] sm:$0xff]  ;;  %v2071_v30 = vld [vmem:[%s8015_s4 + $0x80] sm:$0xff] }
 0x114   :  { %2125 = vmatpush.msra.mxu0 %v2068_v37  ;;  %v1801_v54 = vadd.f32 %v1800_v44, %v1788_v45  ;;  %v1826_v56 = vpop.f32.mrf.mxu2  ;;  %v1802_v0 = vpop.f32.mrf.mxu0  ;;  %v2218_v37 = vld [vmem:[%s8017_s6 + $0x78] sm:$0xff]  ;;  %v2087_v40 = vld [vmem:[%s8015_s4 + $0x100] sm:$0xff] }
 0x115   :  { %2145 = vmatpush.msra.mxu1 %v2084_v16  ;;  %2164 = vmatpush.msra.mxu2 %v2101_v33  ;;  %v1839_v60 = vpop.f32.mrf.mxu3  ;;  %v1815_v2 = vpop.f32.mrf.mxu1  ;;  %v2234_v16 = vld [vmem:[%s8017_s6 + $0xf8] sm:$0xff]  ;;  %v2088_v33 = vld [vmem:[%s8015_s4 + $0x108] sm:$0xff] }
 0x116   :  { %2126 = vmatpush.msra.mxu0 %v2067_v34  ;;  %v1814_v1 = vadd.f32 %v1813_v47, %v1801_v54  ;;  %v2217_v34 = vld [vmem:[%s8017_s6 + $0x70] sm:$0xff]  ;;  %v2214_v44 = vld [vmem:[%s8017_s6 + $0x58] sm:$0xff] }
 0x117   :  { %2146 = vmatpush.msra.mxu1 %v2083_v38  ;;  %2165 = vmatpush.msra.mxu2 %v2100_v42  ;;  %v2233_v38 = vld [vmem:[%s8017_s6 + $0xf0] sm:$0xff]  ;;  %v2216_v42 = vld [vmem:[%s8017_s6 + $0x68] sm:$0xff]  ;;  %v2230_v47 = vld [vmem:[%s8017_s6 + $0xd8] sm:$0xff] }
 0x118   :  { %2127 = vmatpush.msra.mxu0 %v2066_v39  ;;  %v1827_v10 = vadd.f32 %v1826_v56, %v1814_v1  ;;  %v2232_v39 = vld [vmem:[%s8017_s6 + $0xe8] sm:$0xff]  ;;  %v2211_v56 = vld [vmem:[%s8017_s6 + $0x40] sm:$0xff]  ;;  %v2118_v2 = vld [vmem:[%s8015_s4 + $0x1f8] sm:$0xff] }
 0x119   :  { %2147 = vmatpush.msra.mxu1 %v2082_v41  ;;  %2166 = vmatpush.msra.mxu2 %v2099_v32  ;;  %v2215_v41 = vld [vmem:[%s8017_s6 + $0x60] sm:$0xff]  ;;  %v2249_v32 = vld [vmem:[%s8017_s6 + $0x170] sm:$0xff] }
 0x11a   :  { %2128 = vmatpush.msra.mxu0 %v2065_v52  ;;  %v7581_v21 = vadd.f32 %v1839_v60, %v1827_v10  ;;  %v2231_v52 = vld [vmem:[%s8017_s6 + $0xe0] sm:$0xff]  ;;  %v2210_v60 = vld [vmem:[%s8017_s6 + $0x38] sm:$0xff]  ;;  %2183 = vmatpush.msra.mxu3 %v2118_v2  ;;  %v2116_v10 = vld [vmem:[%s8015_s4 + $0x1e8] sm:$0xff] }
 0x11b   :  { %2148 = vmatpush.msra.mxu1 %v2081_v46  ;;  %2167 = vmatpush.msra.mxu2 %v2098_v48  ;;  %v2248_v46 = vld [vmem:[%s8017_s6 + $0x168] sm:$0xff]  ;;  %v2243_v1 = vld [vmem:[%s8017_s6 + $0x140] sm:$0xff] }
 0x11c   :  { %2129 = vmatpush.msra.mxu0 %v2064_v50  ;;  %v1828_v11 = vpop.f32.mrf.mxu2  ;;  %v2052_v7 = vmax.f32 %v7581_v21, 0.0  ;;  %v2247_v50 = vld [vmem:[%s8017_s6 + $0x160] sm:$0xff]  ;;  %v2109_v21 = vld [vmem:[%s8015_s4 + $0x1b0] sm:$0xff]  ;;  %v2260_v2 = vld [vmem:[%s8017_s6 + $0x1c8] sm:$0xff] }
 0x11d   :  { %2149 = vmatpush.msra.mxu1 %v2080_v43  ;;  %2168 = vmatpush.msra.mxu2 %v2097_v51  ;;  %v1841_v18 = vpop.f32.mrf.mxu3  ;;  %v2229_v43 = vld [vmem:[%s8017_s6 + $0xd0] sm:$0xff]  ;;  %v2212_v51 = vld [vmem:[%s8017_s6 + $0x48] sm:$0xff]  ;;  %v2207_v11 = vld [vmem:[%s8017_s6 + $0x20] sm:$0xff] }
 0x11e   :  { %2130 = vmatpush.msra.mxu0 %v2063_v55  ;;  %v2246_v55 = vld [vmem:[%s8017_s6 + $0x158] sm:$0xff] }
 0x11f   :  { %2150 = vmatpush.msra.mxu1 %v2079_v53  ;;  %2169 = vmatpush.msra.mxu2 %v2096_v57  ;;  %v2228_v53 = vld [vmem:[%s8017_s6 + $0xc8] sm:$0xff] }
 0x120   :  { %2131 = vmatpush.msra.mxu0 %v2062_v59  ;;  %v2227_v59 = vld [vmem:[%s8017_s6 + $0xc0] sm:$0xff] }
 0x121   :  { %2151 = vmatpush.msra.mxu1 %v2078_v61  ;;  %2170 = vmatpush.msra.mxu2 %v2095_v63  ;;  %v2244_v63 = vld [vmem:[%s8017_s6 + $0x148] sm:$0xff] }
 0x122   :  { %2132 = vmatpush.msra.mxu0 %v2061_v5  ;;  %v2226_v5 = vld [vmem:[%s8017_s6 + $0xb8] sm:$0xff] }
 0x123   :  { %2152 = vmatpush.msra.mxu1 %v2077_v8  ;;  %2171 = vmatpush.msra.mxu2 %v2094_v3  ;;  %v2209_v8 = vld [vmem:[%s8017_s6 + $0x30] sm:$0xff] }
 0x124   :  { %2133 = vmatpush.msra.mxu0 %v2060_v6  ;;  %v2225_v3 = vld [vmem:[%s8017_s6 + $0xb0] sm:$0xff] }
 0x125   :  { %2153 = vmatpush.msra.mxu1 %v2076_v9  ;;  %2172 = vmatpush.msra.mxu2 %v2093_v15  ;;  %v2117_v6 = vld [vmem:[%s8015_s4 + $0x1f0] sm:$0xff]  ;;  %v2208_v9 = vld [vmem:[%s8017_s6 + $0x28] sm:$0xff]  ;;  %v2242_v15 = vld [vmem:[%s8017_s6 + $0x138] sm:$0xff] }
 0x126   :  { %2134 = vmatpush.msra.mxu0 %v2059_v13  ;;  %v2224_v13 = vld [vmem:[%s8017_s6 + $0xa8] sm:$0xff]  ;;  %2184 = vmatpush.msra.mxu3 %v2117_v6  ;;  %v2259_v6 = vld [vmem:[%s8017_s6 + $0x1c0] sm:$0xff] }
 0x127   :  { %2154 = vmatpush.msra.mxu1 %v2075_v25  ;;  %2173 = vmatpush.msra.mxu2 %v2092_v12 }
 0x128   :  { %2135 = vmatpush.msra.mxu0 %v2058_v17  ;;  %v2223_v17 = vld [vmem:[%s8017_s6 + $0xa0] sm:$0xff]  ;;  %2185 = vmatpush.msra.mxu3 %v2116_v10 }
 0x129   :  { %2155 = vmatpush.msra.mxu1 %v2074_v19  ;;  %2174 = vmatpush.msra.mxu2 %v2091_v20  ;;  %v2206_v19 = vld [vmem:[%s8017_s6 + $0x18] sm:$0xff]  ;;  %v2240_v20 = vld [vmem:[%s8017_s6 + $0x128] sm:$0xff] }
 0x12a   :  { %2136 = vmatpush.msra.mxu0 %v2057_v29  ;;  %v2222_v29 = vld [vmem:[%s8017_s6 + $0x98] sm:$0xff] }
 0x12b   :  { %2156 = vmatpush.msra.mxu1 %v2073_v22  ;;  %2175 = vmatpush.msra.mxu2 %v2090_v23  ;;  %v2205_v22 = vld [vmem:[%s8017_s6 + $0x10] sm:$0xff]  ;;  %v2239_v23 = vld [vmem:[%s8017_s6 + $0x120] sm:$0xff] }
 0x12c   :  { %2137 = vmatpush.msra.mxu0 %v2056_v27  ;;  %v1852_v45 = vpop.f32.mrf.mxu0  ;;  %v2115_v27 = vld [vmem:[%s8015_s4 + $0x1e0] sm:$0xff] }
 0x12d   :  { %2157 = vmatpush.msra.mxu1 %v2072_v28  ;;  %2176 = vmatpush.msra.mxu2 %v2089_v24  ;;  %v7658_v48 = vpop.f32.mrf.mxu1  ;;  %v1853_v18 = vadd.f32 %v1852_v45, %v349_v4  ;;  %v2221_v24 = vld [vmem:[%s8017_s6 + $0x90] sm:$0xff] }
 0x12e   :  { %2138 = vmatpush.msra.mxu0 %v2055_v35  ;;  %v2114_v35 = vld [vmem:[%s8015_s4 + $0x1d8] sm:$0xff]  ;;  %2186 = vmatpush.msra.mxu3 %v2115_v27 }
 0x12f   :  { %2158 = vmatpush.msra.mxu1 %v2071_v30  ;;  %2139 = vmatmul.f32.vlgmr.msra.gmra.mxu0 %v2051_v31  ;;  %v1866_v28 = vadd.f32 %v7658_v48, %v1853_v18  ;;  %v2204_v30 = vld [vmem:[%s8017_s6 + $0x8] sm:$0xff]  ;;  %v2107_v48 = vld [vmem:[%s8015_s4 + $0x1a0] sm:$0xff]  ;;  %v2254_v18 = vld [vmem:[%s8017_s6 + $0x198] sm:$0xff] }
 0x130   :  { %2159 = vmatmul.f32.vlgmr.msra.gmra.mxu1 %v2052_v7  ;;  %2271 = vmatpush.msrb.mxu0 %v2218_v37  ;;  %v2238_v37 = vld [vmem:[%s8017_s6 + $0x118] sm:$0xff] }
 0x131   :  { %2291 = vmatpush.msrb.mxu1 %v2234_v16  ;;  %2177 = vmatpush.msra.mxu2 %v2088_v33  ;;  %v2220_v16 = vld [vmem:[%s8017_s6 + $0x88] sm:$0xff]  ;;  %v2113_v33 = vld [vmem:[%s8015_s4 + $0x1d0] sm:$0xff] }
 0x132   :  { %2272 = vmatpush.msrb.mxu0 %v2217_v34  ;;  %v2203_v34 = vld [vmem:[%s8017_s6] sm:$0xff]  ;;  %2187 = vmatpush.msra.mxu3 %v2114_v35 }
 0x133   :  { %2292 = vmatpush.msrb.mxu1 %v2233_v38  ;;  %2178 = vmatpush.msra.mxu2 %v2087_v40  ;;  %v2237_v38 = vld [vmem:[%s8017_s6 + $0x110] sm:$0xff] }
 0x134   :  { %2273 = vmatpush.msrb.mxu0 %v2216_v42  ;;  %v7678_v54 = vpop.f32.mrf.mxu2  ;;  %v1854_v61 = vpop.f32.mrf.mxu0  ;;  %v2219_v42 = vld [vmem:[%s8017_s6 + $0x80] sm:$0xff]  ;;  %2188 = vmatpush.msra.mxu3 %v2113_v33 }
 0x135   :  { %2311 = vmatpush.msrb.mxu2 %v2250_v36  ;;  %2293 = vmatpush.msrb.mxu1 %v2232_v39  ;;  %v7683_v57 = vpop.f32.mrf.mxu3  ;;  %v1867_v0 = vpop.f32.mrf.mxu1  ;;  %v1879_v40 = vadd.f32 %v7678_v54, %v1866_v28  ;;  %v2236_v36 = vld [vmem:[%s8017_s6 + $0x108] sm:$0xff]  ;;  %v2105_v54 = vld [vmem:[%s8015_s4 + $0x190] sm:$0xff]  ;;  %v2266_v61 = vld [vmem:[%s8017_s6 + $0x1f8] sm:$0xff] }
 0x136   :  { %2274 = vmatpush.msrb.mxu0 %v2215_v41  ;;  %v2112_v39 = vld [vmem:[%s8015_s4 + $0x1c8] sm:$0xff]  ;;  %v2235_v41 = vld [vmem:[%s8017_s6 + $0x100] sm:$0xff] }
 0x137   :  { %2312 = vmatpush.msrb.mxu2 %v2249_v32  ;;  %2294 = vmatpush.msrb.mxu1 %v2231_v52  ;;  %v1892_v32 = vadd.f32 %v7683_v57, %v1879_v40  ;;  %v2111_v52 = vld [vmem:[%s8015_s4 + $0x1c0] sm:$0xff]  ;;  %v2104_v57 = vld [vmem:[%s8015_s4 + $0x188] sm:$0xff] }
 0x138   :  { %2275 = vmatpush.msrb.mxu0 %v2214_v44  ;;  %2189 = vmatpush.msra.mxu3 %v2112_v39  ;;  %v2263_v0 = vld [vmem:[%s8017_s6 + $0x1e0] sm:$0xff] }
 0x139   :  { %2313 = vmatpush.msrb.mxu2 %v2248_v46  ;;  %2295 = vmatpush.msrb.mxu1 %v2230_v47  ;;  %v2108_v46 = vld [vmem:[%s8015_s4 + $0x1a8] sm:$0xff] }
 0x13a   :  { %2276 = vmatpush.msrb.mxu0 %v2213_v49  ;;  %2190 = vmatpush.msra.mxu3 %v2111_v52  ;;  %v2357_v52 = vld [vmem:[%s8019_s8] sm:$0xff] }
 0x13b   :  { %2314 = vmatpush.msrb.mxu2 %v2247_v50  ;;  %2296 = vmatpush.msrb.mxu1 %v2229_v43  ;;  %v2106_v43 = vld [vmem:[%s8015_s4 + $0x198] sm:$0xff]  ;;  %2371 = vst [vmem:[#allocation1] ss:$2 sm:$0xff] %v2357_v52 }
 0x13c   :  { %2277 = vmatpush.msrb.mxu0 %v2212_v51  ;;  %v1880_v25 = vpop.f32.mrf.mxu2  ;;  %2191 = vmatpush.msra.mxu3 %v2110_v26  ;;  %v2358_v26 = vld [vmem:[%s8019_s8 + $0x8] sm:$0xff] }
 0x13d   :  { %2315 = vmatpush.msrb.mxu2 %v2246_v55  ;;  %2297 = vmatpush.msrb.mxu1 %v2228_v53  ;;  %v1893_v12 = vpop.f32.mrf.mxu3  ;;  %v2257_v25 = vld [vmem:[%s8017_s6 + $0x1b0] sm:$0xff]  ;;  %2373 = vst [vmem:[#allocation1 + $0x10] ss:$2 sm:$0xff] %v2358_v26  ;;  %v5741_v26 = vld [vmem:[#allocation4 + $0xc0] sm:$0xf] }
 0x13e   :  { %2278 = vmatpush.msrb.mxu0 %v2211_v56  ;;  %2192 = vmatpush.msra.mxu3 %v2109_v21 }
 0x13f   :  { %2316 = vmatpush.msrb.mxu2 %v2245_v58  ;;  %2298 = vmatpush.msrb.mxu1 %v2227_v59  ;;  %v2103_v59 = vld [vmem:[%s8015_s4 + $0x180] sm:$0xff] }
 0x140   :  { %2279 = vmatpush.msrb.mxu0 %v2210_v60  ;;  %2193 = vmatpush.msra.mxu3 %v2108_v46 }
 0x141   :  { %2317 = vmatpush.msrb.mxu2 %v2244_v63  ;;  %2299 = vmatpush.msrb.mxu1 %v2226_v5  ;;  %v2265_v63 = vld [vmem:[%s8017_s6 + $0x1f0] sm:$0xff]  ;;  %v2264_v5 = vld [vmem:[%s8017_s6 + $0x1e8] sm:$0xff] }
 0x142   :  { %2280 = vmatpush.msrb.mxu0 %v2209_v8  ;;  %2194 = vmatpush.msra.mxu3 %v2107_v48  ;;  %v2262_v8 = vld [vmem:[%s8017_s6 + $0x1d8] sm:$0xff]  ;;  %v2374_v21 = vld.sshfl [vmem:[#allocation1] sm:$0xff pattern:$0x75316420] }
 0x143   :  { %2318 = vmatpush.msrb.mxu2 %v2243_v1  ;;  %2300 = vmatpush.msrb.mxu1 %v2225_v3  ;;  %v2261_v1 = vld [vmem:[%s8017_s6 + $0x1d0] sm:$0xff] }
 0x144   :  { %2281 = vmatpush.msrb.mxu0 %v2208_v9  ;;  %2195 = vmatpush.msra.mxu3 %v2106_v43  ;;  %v2377_v48 = vld.sshfl [vmem:[#allocation1 + $0x18] sm:$0xff pattern:$0x75316420]  ;;  %v6125_v43 = vld [vmem:[#allocation4 + $0x3c0] sm:$0xf] }
 0x145   :  { %2319 = vmatpush.msrb.mxu2 %v2242_v15  ;;  %2301 = vmatpush.msrb.mxu1 %v2224_v13  ;;  %v2258_v15 = vld [vmem:[%s8017_s6 + $0x1b8] sm:$0xff] }
 0x146   :  { %2282 = vmatpush.msrb.mxu0 %v2207_v11  ;;  %2196 = vmatpush.msra.mxu3 %v2105_v54  ;;  %v2256_v11 = vld [vmem:[%s8017_s6 + $0x1a8] sm:$0xff] }
 0x147   :  { %2320 = vmatpush.msrb.mxu2 %v2241_v14  ;;  %2302 = vmatpush.msrb.mxu1 %v2223_v17  ;;  %v2255_v14 = vld [vmem:[%s8017_s6 + $0x1a0] sm:$0xff]  ;;  %v350_v17 = vperm.slane %v7445_v62, 3  ;;  %v5837_v54 = vld [vmem:[#allocation4 + $0x180] sm:$0xf] }
 0x148   :  { %2283 = vmatpush.msrb.mxu0 %v2206_v19  ;;  %2197 = vmatpush.msra.mxu3 %v2104_v57  ;;  %v2251_v62 = vld [vmem:[%s8017_s6 + $0x180] sm:$0xff] }
 0x149   :  { %2321 = vmatpush.msrb.mxu2 %v2240_v20  ;;  %2303 = vmatpush.msrb.mxu1 %v2222_v29  ;;  %v2253_v20 = vld [vmem:[%s8017_s6 + $0x190] sm:$0xff] }
 0x14a   :  { %2284 = vmatpush.msrb.mxu0 %v2205_v22  ;;  %2198 = vmatpush.msra.mxu3 %v2103_v59  ;;  %v2252_v22 = vld [vmem:[%s8017_s6 + $0x188] sm:$0xff] }
 0x14b   :  { %2322 = vmatpush.msrb.mxu2 %v2239_v23  ;;  %2304 = vmatpush.msrb.mxu1 %v2221_v24  ;;  %v7039_v59 = vld [vmem:[#allocation4 + $0x39c] sm:$0xf0] }
 0x14c   :  { %2285 = vmatpush.msrb.mxu0 %v2204_v30  ;;  %2331 = vmatpush.msrb.mxu3 %v2266_v61 }
 0x14d   :  { %2323 = vmatpush.msrb.mxu2 %v2238_v37  ;;  %2305 = vmatpush.msrb.mxu1 %v2220_v16  ;;  %v1917_v45 = vpop.f32.mrf.mxu1 }
 0x14e   :  { %2286 = vmatpush.msrb.mxu0 %v2203_v34  ;;  %2332 = vmatpush.msrb.mxu3 %v2265_v63 }
 0x14f   :  { %2324 = vmatpush.msrb.mxu2 %v2237_v38  ;;  %2306 = vmatpush.msrb.mxu1 %v2219_v42 }
 0x150   :  { %2287 = vmatmul.f32.vlgmr.msrb.gmra.mxu0 %v2051_v31  ;;  %2307 = vmatmul.f32.vlgmr.msrb.gmra.mxu1 %v2052_v7  ;;  %v1904_v31 = vpop.f32.mrf.mxu0 }
 0x151   :  { %2325 = vmatpush.msrb.mxu2 %v2236_v36  ;;  %v1905_v44 = vadd.f32 %v1904_v31, %v1892_v32  ;;  %2333 = vmatpush.msrb.mxu3 %v2264_v5  ;;  %v7111_v5 = vld [vmem:[#allocation4 + $0x5dc] sm:$0xf0] }
 0x152   :  { %5635 = vmatpush.msk.msra.mxu0 %vm2382_vm0, %v2374_v21  ;;  %v7185_v21 = vld [vmem:[%s8016_s5] ss:$0 sm:$0xff] }
 0x153   :  { %2326 = vmatpush.msrb.mxu2 %v2235_v41  ;;  %v1918_v7 = vadd.f32 %v1917_v45, %v1905_v44  ;;  %2334 = vmatpush.msrb.mxu3 %v2263_v0  ;;  %v7186_v45 = vld [vmem:[%s8018_s7] ss:$0 sm:$0xff]  ;;  %v6637_v0 = vld [vmem:[#allocation4 + $0x7c0] sm:$0xf] }
 0x154   :  { %v1930_v47 = vpop.f32.mrf.mxu2 }
 0x155   :  { %v1931_v49 = vadd.f32 %v1930_v47, %v1918_v7  ;;  %v1943_v50 = vpop.f32.mrf.mxu3  ;;  %v1919_v53 = vpop.f32.mrf.mxu1  ;;  %2335 = vmatpush.msrb.mxu3 %v2262_v8  ;;  %v2375_v7 = vld.sshfl [vmem:[#allocation1 + $0x8] sm:$0xff pattern:$0x75316420]  ;;  %v2376_v47 = vld.sshfl [vmem:[#allocation1 + $0x10] sm:$0xff pattern:$0x75316420] }
 0x156   :  { %5637 = vmatpush.msk.msra.mxu1 %vm2382_vm0, %v2375_v7  ;;  %v7047_v53 = vld [vmem:[#allocation4 + $0x3dc] sm:$0xf0] }
 0x157   :  { %v1944_v51 = vadd.f32 %v1943_v50, %v1931_v49  ;;  %2336 = vmatpush.msrb.mxu3 %v2261_v1  ;;  %v5869_v49 = vld [vmem:[#allocation4 + $0x1c0] sm:$0xf]  ;;  %v6126_v57 = vor.u32 %v7047_v53, %v6125_v43 }
 0x158   :  { %v1906_v55 = vpop.f32.mrf.mxu0  ;;  %v6983_v50 = vld [vmem:[#allocation4 + $0x1dc] sm:$0xf0] }
 0x159   :  { %v2053_v56 = vmax.f32 %v1944_v51, 0.0  ;;  %2337 = vmatpush.msrb.mxu3 %v2260_v2  ;;  %v5870_v55 = vor.u32 %v6983_v50, %v5869_v49  ;;  %v7175_v8 = vld [vmem:[#allocation4 + $0x7dc] sm:$0xf0]  ;;  %4042 = vmatpush.bf16.msrb.mxu1 %v6126_v57 }
 0x15a   :  { %v5997_v7 = vld [vmem:[#allocation4 + $0x2c0] sm:$0xf] }
 0x15b   :  { %2179 = vmatmul.f32.vlgmr.msra.gmra.mxu2 %v2053_v56  ;;  %2338 = vmatpush.msrb.mxu3 %v2259_v6  ;;  %v5805_v6 = vld [vmem:[#allocation4 + $0x140] sm:$0xf] }
 0x15c   :  { %v1932_v58 = vpop.f32.mrf.mxu2  ;;  %5639 = vmatpush.msk.msra.mxu2 %vm2382_vm0, %v2376_v47  ;;  %4029 = vmatpush.bf16.msrb.mxu0 %v5870_v55  ;;  %v7015_v47 = vld [vmem:[#allocation4 + $0x2dc] sm:$0xf0] }
 0x15d   :  { %v1945_v60 = vpop.f32.mrf.mxu3  ;;  %2339 = vmatpush.msrb.mxu3 %v2258_v15  ;;  %v6093_v58 = vld [vmem:[#allocation4 + $0x380] sm:$0xf]  ;;  %v5998_v57 = vor.u32 %v7015_v47, %v5997_v7  ;;  %v6383_v7 = vld [vmem:[#allocation4 + $0x5e0] sm:$0xf0] }
 0x15e   :  { %v6381_v60 = vld [vmem:[#allocation4 + $0x5c0] sm:$0xf]  ;;  %v6094_v2 = vor.u32 %v7039_v59, %v6093_v58  ;;  %v6095_v47 = vld [vmem:[#allocation4 + $0x3a0] sm:$0xf0] }
 0x15f   :  { %2340 = vmatpush.msrb.mxu3 %v2257_v25  ;;  %v6061_v15 = vld [vmem:[#allocation4 + $0x340] sm:$0xf] }
 0x160   :  { %v6349_v25 = vld [vmem:[#allocation4 + $0x580] sm:$0xf]  ;;  %4043 = vmatpush.bf16.msrb.mxu1 %v6094_v2 }
 0x161   :  { %2341 = vmatpush.msrb.mxu3 %v2256_v11  ;;  %v6253_v43 = vld [vmem:[#allocation4 + $0x4c0] sm:$0xf] }
 0x162   :  { %v7079_v55 = vld [vmem:[#allocation4 + $0x4dc] sm:$0xf0] }
 0x163   :  { %2327 = vmatmul.f32.vlgmr.msrb.gmra.mxu2 %v2053_v56  ;;  %2342 = vmatpush.msrb.mxu3 %v2255_v14  ;;  %v6975_v56 = vld [vmem:[#allocation4 + $0x19c] sm:$0xf0] }
 0x164   :  { %v5838_v63 = vor.u32 %v6975_v56, %v5837_v54  ;;  %v7167_v14 = vld [vmem:[#allocation4 + $0x79c] sm:$0xf0] }
 0x165   :  { %2343 = vmatpush.msrb.mxu3 %v2254_v18  ;;  %v6509_v53 = vld [vmem:[#allocation4 + $0x6c0] sm:$0xf] }
 0x166   :  { %4030 = vmatpush.bf16.msrb.mxu0 %v5838_v63  ;;  %v7143_v54 = vld [vmem:[#allocation4 + $0x6dc] sm:$0xf0] }
 0x167   :  { %2344 = vmatpush.msrb.mxu3 %v2253_v20  ;;  %v5709_v58 = vld [vmem:[#allocation4 + $0x80] sm:$0xf] }
 0x168   :  { %v6943_v59 = vld [vmem:[#allocation4 + $0x9c] sm:$0xf0] }
 0x169   :  { %2345 = vmatpush.msrb.mxu3 %v2252_v22  ;;  %v6959_v22 = vld [vmem:[#allocation4 + $0x11c] sm:$0xf0]  ;;  %v5710_v2 = vor.u32 %v6943_v59, %v5709_v58  ;;  %v5807_v58 = vld [vmem:[#allocation4 + $0x160] sm:$0xf0] }
 0x16a   :  { %v5965_v63 = vld [vmem:[#allocation4 + $0x280] sm:$0xf]  ;;  %v7099_v59 = vld [vmem:[#allocation4 + $0x584] sm:$0xf] }
 0x16b   :  { %2346 = vmatpush.msrb.mxu3 %v2251_v62 }
 0x16c   :  { %v1956_v3 = vpop.f32.mrf.mxu0 }
 0x16d   :  { %v1969_v4 = vpop.f32.mrf.mxu1  ;;  %v1957_v23 = vadd.f32 %v1956_v3, %v350_v17  ;;  %v6382_v3 = vor.u32 %v7111_v5, %v6381_v60  ;;  %v7007_v5 = vld [vmem:[#allocation4 + $0x29c] sm:$0xf0] }
 0x16f   :  { %v1970_v27 = vadd.f32 %v1969_v4, %v1957_v23  ;;  %v6638_v4 = vor.u32 %v7175_v8, %v6637_v0  ;;  %4055 = vmatpush.bf16.msrb.mxu2 %v6382_v3  ;;  %v6254_v0 = vor.u32 %v7079_v55, %v6253_v43  ;;  %v6510_v8 = vor.u32 %v7143_v54, %v6509_v53  ;;  %v7071_v3 = vld [vmem:[#allocation4 + $0x49c] sm:$0xf0]  ;;  %v7171_v43 = vld [vmem:[#allocation4 + $0x7c4] sm:$0xf] }
 0x170   :  { %v6963_v54 = vld [vmem:[#allocation4 + $0x144] sm:$0xf] }
 0x174   :  { %v1982_v9 = vpop.f32.mrf.mxu2  ;;  %v1958_v10 = vpop.f32.mrf.mxu0 }
 0x175   :  { %v1995_v13 = vpop.f32.mrf.mxu3  ;;  %v1971_v12 = vpop.f32.mrf.mxu1  ;;  %v1983_v28 = vadd.f32 %v1982_v9, %v1970_v27  ;;  %v6967_v9 = vld [vmem:[#allocation4 + $0x15c] sm:$0xf0] }
 0x176   :  { %v7103_v10 = vld [vmem:[#allocation4 + $0x59c] sm:$0xf0] }
 0x177   :  { %v1996_v24 = vadd.f32 %v1995_v13, %v1983_v28  ;;  %v7031_v13 = vld [vmem:[#allocation4 + $0x35c] sm:$0xf0]  ;;  %v6350_v11 = vor.u32 %v7103_v10, %v6349_v25 }
 0x178   :  { %v6605_v12 = vld [vmem:[#allocation4 + $0x780] sm:$0xf]  ;;  %v6062_v62 = vor.u32 %v7031_v13, %v6061_v15 }
 0x179   :  { %v6606_v20 = vor.u32 %v7167_v14, %v6605_v12  ;;  %v6317_v27 = vld [vmem:[#allocation4 + $0x540] sm:$0xf]  ;;  %4056 = vmatpush.bf16.msrb.mxu2 %v6350_v11  ;;  %v2351_v11 = vld [vmem:[%s8012_s1] sm:$0xff] }
 0x17a   :  { %v7095_v28 = vld [vmem:[#allocation4 + $0x55c] sm:$0xf0]  ;;  %4044 = vmatpush.bf16.msrb.mxu1 %v6062_v62 }
 0x17b   :  { %v5677_v15 = vld [vmem:[#allocation4 + $0x40] sm:$0xf] }
 0x17c   :  { %v1984_v19 = vpop.f32.mrf.mxu2  ;;  %v6935_v13 = vld [vmem:[#allocation4 + $0x5c] sm:$0xf0] }
 0x17d   :  { %v1997_v29 = vpop.f32.mrf.mxu3  ;;  %v5806_v19 = vor.u32 %v6967_v9, %v5805_v6  ;;  %v7135_v6 = vld [vmem:[#allocation4 + $0x69c] sm:$0xf0]  ;;  %v5966_v9 = vor.u32 %v7007_v5, %v5965_v63  ;;  %v7027_v5 = vld [vmem:[#allocation4 + $0x344] sm:$0xf] }
 0x17e   :  { %v5773_v29 = vld [vmem:[#allocation4 + $0x100] sm:$0xf] }
 0x17f   :  { %4031 = vmatpush.bf16.msrb.mxu0 %v5806_v19  ;;  %v6999_v10 = vld [vmem:[#allocation4 + $0x25c] sm:$0xf0] }
 0x180   :  { %v5645_v19 = vld [vmem:[#allocation4] sm:$0xf] }
 0x181   :  { %v6189_v62 = vld [vmem:[#allocation4 + $0x440] sm:$0xf] }
 0x18c   :  { %v2008_v35 = vpop.f32.mrf.mxu0 }
 0x18d   :  { %v2021_v30 = vpop.f32.mrf.mxu1  ;;  %v2009_v37 = vadd.f32 %v2008_v35, %v1996_v24  ;;  %v6573_v24 = vld [vmem:[#allocation4 + $0x740] sm:$0xf] }
 0x18e   :  { %v6029_v35 = vld [vmem:[#allocation4 + $0x300] sm:$0xf] }
 0x18f   :  { %v2022_v16 = vadd.f32 %v2021_v30, %v2009_v37  ;;  %v7023_v30 = vld [vmem:[#allocation4 + $0x31c] sm:$0xf0] }
 0x190   :  { %v7159_v37 = vld [vmem:[#allocation4 + $0x75c] sm:$0xf0]  ;;  %v6030_v52 = vor.u32 %v7023_v30, %v6029_v35  ;;  %v6979_v35 = vld [vmem:[#allocation4 + $0x1c4] sm:$0xf] }
 0x191   :  { %v5871_v30 = vld [vmem:[#allocation4 + $0x1e0] sm:$0xf0] }
 0x192   :  { %4045 = vmatpush.bf16.msrb.mxu1 %v6030_v52 }
 0x194   :  { %v2034_v33 = vpop.f32.mrf.mxu2  ;;  %v2010_v40 = vpop.f32.mrf.mxu0 }
 0x195   :  { %v2035_v34 = vadd.f32 %v2034_v33, %v2022_v16  ;;  %v2047_v38 = vpop.f32.mrf.mxu3  ;;  %v2023_v42 = vpop.f32.mrf.mxu1  ;;  %v6318_v33 = vor.u32 %v7095_v28, %v6317_v27  ;;  %v7063_v27 = vld [vmem:[#allocation4 + $0x45c] sm:$0xf0] }
 0x196   :  { %v5774_v42 = vor.u32 %v6959_v22, %v5773_v29  ;;  %4046 = vmatpush.bf16.msrb.mxu1 %v5998_v57  ;;  %v5901_v29 = vld [vmem:[#allocation4 + $0x200] sm:$0xf] }
 0x197   :  { %v2048_v36 = vadd.f32 %v2047_v38, %v2035_v34  ;;  %v6574_v34 = vor.u32 %v7159_v37, %v6573_v24  ;;  %v6285_v38 = vld [vmem:[#allocation4 + $0x500] sm:$0xf]  ;;  %4057 = vmatpush.bf16.msrb.mxu2 %v6318_v33  ;;  %v7043_v37 = vld [vmem:[#allocation4 + $0x3c4] sm:$0xf] }
 0x198   :  { %4032 = vmatpush.bf16.msrb.mxu0 %v5774_v42  ;;  %v7127_v33 = vld [vmem:[#allocation4 + $0x65c] sm:$0xf0]  ;;  %v6971_v42 = vld [vmem:[#allocation4 + $0x184] sm:$0xf] }
 0x199   :  { %v2054_v39 = vmax.f32 %v2048_v36, 0.0  ;;  %v7087_v36 = vld [vmem:[#allocation4 + $0x51c] sm:$0xf0] }
 0x19a   :  { %v6286_v49 = vor.u32 %v7087_v36, %v6285_v38  ;;  %4047 = vmatpush.bf16.msrb.mxu1 %v5966_v9  ;;  %v5775_v9 = vld [vmem:[#allocation4 + $0x120] sm:$0xf0] }
 0x19b   :  { %2199 = vmatmul.f32.vlgmr.msra.gmra.mxu3 %v2054_v39 }
 0x19c   :  { %v2036_v41 = vpop.f32.mrf.mxu2  ;;  %5641 = vmatpush.msk.msra.mxu3 %vm2382_vm0, %v2377_v48  ;;  %4058 = vmatpush.bf16.msrb.mxu2 %v6286_v49  ;;  %v7119_v49 = vld [vmem:[#allocation4 + $0x61c] sm:$0xf0] }
 0x19d   :  { %v2049_v32 = vpop.f32.mrf.mxu3  ;;  %v7151_v41 = vld [vmem:[#allocation4 + $0x71c] sm:$0xf0] }
 0x1a0   :  { %4059 = vmatpush.bf16.msrb.mxu2 %v6254_v0  ;;  %v6063_v0 = vld [vmem:[#allocation4 + $0x360] sm:$0xf0] }
 0x1a3   :  { %2347 = vmatmul.f32.vlgmr.msrb.gmra.mxu3 %v2054_v39  ;;  %v6541_v39 = vld [vmem:[#allocation4 + $0x700] sm:$0xf] }
 0x1a4   :  { %4068 = vmatpush.bf16.msrb.mxu3 %v6638_v4  ;;  %v6542_v50 = vor.u32 %v7151_v41, %v6541_v39  ;;  %v6477_v4 = vld [vmem:[#allocation4 + $0x680] sm:$0xf]  ;;  %v5874_v39 = vor.u32 %v6979_v35, %v5871_v30  ;;  %v5839_v41 = vld [vmem:[#allocation4 + $0x1a0] sm:$0xf0] }
 0x1a5   :  { %v6478_v14 = vor.u32 %v7135_v6, %v6477_v4  ;;  %v5842_v55 = vor.u32 %v6971_v42, %v5839_v41  ;;  %v6955_v4 = vld [vmem:[#allocation4 + $0x104] sm:$0xf]  ;;  %v6066_v6 = vor.u32 %v7027_v5, %v6063_v0 }
 0x1a6   :  { %v6939_v30 = vld [vmem:[#allocation4 + $0x84] sm:$0xf] }
 0x1a7   :  { %v7139_v42 = vld [vmem:[#allocation4 + $0x6c4] sm:$0xf] }
 0x1a8   :  { %4069 = vmatpush.bf16.msrb.mxu3 %v6606_v20  ;;  %v6927_v20 = vld [vmem:[#allocation4 + $0x1c] sm:$0xf0]  ;;  %v7123_v5 = vld [vmem:[#allocation4 + $0x644] sm:$0xf] }
 0x1a9   :  { %v5646_v38 = vor.u32 %v6927_v20, %v5645_v19  ;;  %v5743_v20 = vld [vmem:[#allocation4 + $0xe0] sm:$0xf0] }
 0x1aa   :  { %v6447_v0 = vld [vmem:[#allocation4 + $0x660] sm:$0xf0] }
 0x1ac   :  { %v7880_v31 = vpop.f32.mrf.mxu0  ;;  %4070 = vmatpush.bf16.msrb.mxu3 %v6574_v34 }
 0x1ad   :  { %v7887_v46 = vpop.f32.mrf.mxu1  ;;  %v2141_v60 = vadd.f32 %v7185_v21, %v7880_v31  ;;  %v5933_v31 = vld [vmem:[#allocation4 + $0x240] sm:$0xf]  ;;  %v7107_v21 = vld [vmem:[#allocation4 + $0x5c4] sm:$0xf] }
 0x1ae   :  { %v6386_v53 = vor.u32 %v7107_v21, %v6383_v7  ;;  %v5935_v7 = vld [vmem:[#allocation4 + $0x260] sm:$0xf0] }
 0x1af   :  { %v2161_v25 = vadd.f32 %v7887_v46, %v2141_v60  ;;  %v5934_v46 = vor.u32 %v6999_v10, %v5933_v31  ;;  %v6351_v60 = vld [vmem:[#allocation4 + $0x5a0] sm:$0xf0] }
 0x1b0   :  { %4071 = vmatpush.bf16.msrb.mxu3 %v6542_v50  ;;  %v7019_v31 = vld [vmem:[#allocation4 + $0x304] sm:$0xf] }
 0x1b1   :  { %4048 = vmatpush.bf16.msrb.mxu1 %v5934_v46  ;;  %v6031_v10 = vld [vmem:[#allocation4 + $0x320] sm:$0xf0] }
 0x1b2   :  { %v6034_v19 = vor.u32 %v7019_v31, %v6031_v10  ;;  %v5877_v10 = vld [vmem:[#allocation4 + $0x1c8] sm:$0xf] }
 0x1b4   :  { %4072 = vmatpush.bf16.msrb.mxu3 %v6510_v8  ;;  %v7163_v8 = vld [vmem:[#allocation4 + $0x784] sm:$0xf] }
 0x1b8   :  { %4073 = vmatpush.bf16.msrb.mxu3 %v6478_v14  ;;  %v5778_v14 = vor.u32 %v6955_v4, %v5775_v9  ;;  %v6415_v9 = vld [vmem:[#allocation4 + $0x620] sm:$0xf0] }
 0x1cd   :  { %v2288_v51 = vpop.f32.mrf.mxu0  ;;  %v2308_v17 = vpop.f32.mrf.mxu1 }
 0x1ce   :  { %v2289_v1 = vadd.f32 %v7186_v45, %v2288_v51  ;;  %v6951_v45 = vld [vmem:[#allocation4 + $0xdc] sm:$0xf0] }
 0x1cf   :  { %v5742_v51 = vor.u32 %v6951_v45, %v5741_v26  ;;  %v7035_v45 = vld [vmem:[#allocation4 + $0x384] sm:$0xf] }
 0x1d0   :  { %v2309_v23 = vadd.f32 %v2308_v17, %v2289_v1  ;;  %v6221_v1 = vld [vmem:[#allocation4 + $0x480] sm:$0xf] }
 0x1d1   :  { %4033 = vmatpush.bf16.msrb.mxu0 %v5742_v51  ;;  %v6222_v12 = vor.u32 %v7071_v3, %v6221_v1  ;;  %v6639_v51 = vld [vmem:[#allocation4 + $0x7e0] sm:$0xf0]  ;;  %v6354_v3 = vor.u32 %v7099_v59, %v6351_v60 }
 0x1d2   :  { %v6642_v63 = vor.u32 %v7171_v43, %v6639_v51  ;;  %v6607_v1 = vld [vmem:[#allocation4 + $0x7a0] sm:$0xf0] }
 0x1d3   :  { %4060 = vmatpush.bf16.msrb.mxu2 %v6222_v12  ;;  %v6575_v12 = vld [vmem:[#allocation4 + $0x760] sm:$0xf0] }
 0x1d4   :  { %v7131_v43 = vld [vmem:[#allocation4 + $0x684] sm:$0xf] }
 0x1d5   :  { %4034 = vmatpush.bf16.msrb.mxu0 %v5710_v2  ;;  %v5810_v2 = vor.u32 %v6963_v54, %v5807_v58  ;;  %v6479_v51 = vld [vmem:[#allocation4 + $0x6a0] sm:$0xf0] }
 0x1d6   :  { %v5647_v54 = vld [vmem:[#allocation4 + $0x20] sm:$0xf0] }
 0x1d7   :  { %v7059_v60 = vld [vmem:[#allocation4 + $0x444] sm:$0xf] }
 0x1de   :  { %v7882_v44 = vpop.f32.mrf.mxu2 }
 0x1df   :  { %v2181_v17 = vadd.f32 %v7882_v44, %v2161_v25  ;;  %v6127_v44 = vld [vmem:[#allocation4 + $0x3e0] sm:$0xf0]  ;;  %v6610_v25 = vor.u32 %v7163_v8, %v6607_v1  ;;  %v6450_v1 = vor.u32 %v7123_v5, %v6447_v0  ;;  %v7096_v5 = vld [vmem:[#allocation4 + $0x564] sm:$0xf0] }
 0x1e0   :  { %v6130_v52 = vor.u32 %v7043_v37, %v6127_v44  ;;  %v5711_v44 = vld [vmem:[#allocation4 + $0xa0] sm:$0xf0]  ;;  %v6581_v0 = vld [vmem:[#allocation4 + $0x748] sm:$0xf] }
 0x1e6   :  { %v2328_v18 = vpop.f32.mrf.mxu2 }
 0x1e7   :  { %v2329_v16 = vadd.f32 %v2328_v18, %v2309_v23  ;;  %v5678_v18 = vor.u32 %v6935_v13, %v5677_v15  ;;  %v6991_v23 = vld [vmem:[#allocation4 + $0x21c] sm:$0xf0]  ;;  %v7091_v15 = vld [vmem:[#allocation4 + $0x544] sm:$0xf] }
 0x1e8   :  { %v5902_v36 = vor.u32 %v6991_v23, %v5901_v29  ;;  %v6319_v13 = vld [vmem:[#allocation4 + $0x560] sm:$0xf0] }
 0x1e9   :  { %4035 = vmatpush.bf16.msrb.mxu0 %v5678_v18  ;;  %v6947_v18 = vld [vmem:[#allocation4 + $0xc4] sm:$0xf] }
 0x1ea   :  { %4049 = vmatpush.bf16.msrb.mxu1 %v5902_v36  ;;  %v7083_v29 = vld [vmem:[#allocation4 + $0x504] sm:$0xf] }
 0x1eb   :  { %v7011_v23 = vld [vmem:[#allocation4 + $0x2c4] sm:$0xf] }
 0x1ec   :  { %v6511_v36 = vld [vmem:[#allocation4 + $0x6e0] sm:$0xf0] }
 0x1ed   :  { %4036 = vmatpush.bf16.msrb.mxu0 %v5646_v38  ;;  %v7003_v38 = vld [vmem:[#allocation4 + $0x284] sm:$0xf] }
 0x21e   :  { %v7889_v61 = vpop.f32.mrf.mxu3 }
 0x21f   :  { %v2201_v28 = vadd.f32 %v7889_v61, %v2181_v17  ;;  %v7055_v61 = vld [vmem:[#allocation4 + $0x41c] sm:$0xf0]  ;;  %v6322_v17 = vor.u32 %v7091_v15, %v6319_v13  ;;  %v2359_v13 = vld [vmem:[%s8020_s9] sm:$0xf] }
 0x220   :  { %v2362_v31 = vperm.slane %v2359_v13, 1 }
 0x226   :  { %v2348_v40 = vpop.f32.mrf.mxu3 }
 0x227   :  { %v2349_v32 = vadd.f32 %v2348_v40, %v2329_v16  ;;  %v6445_v16 = vld [vmem:[#allocation4 + $0x640] sm:$0xf]  ;;  %v6190_v40 = vor.u32 %v7063_v27, %v6189_v62  ;;  %v5999_v62 = vld [vmem:[#allocation4 + $0x2e0] sm:$0xf0] }
 0x228   :  { %v6446_v26 = vor.u32 %v7127_v33, %v6445_v16  ;;  %v7147_v27 = vld [vmem:[#allocation4 + $0x704] sm:$0xf]  ;;  %v6002_v37 = vor.u32 %v7011_v23, %v5999_v62 }
 0x229   :  { %v2352_v48 = vmul.f32 0.5, %v2349_v32  ;;  %v6157_v32 = vld [vmem:[#allocation4 + $0x400] sm:$0xf]  ;;  %4061 = vmatpush.bf16.msrb.mxu2 %v6190_v40  ;;  %v7075_v16 = vld [vmem:[#allocation4 + $0x4c4] sm:$0xf] }
 0x22a   :  { %v6158_v50 = vor.u32 %v7055_v61, %v6157_v32  ;;  %4074 = vmatpush.bf16.msrb.mxu3 %v6446_v26  ;;  %v6255_v33 = vld [vmem:[#allocation4 + $0x4e0] sm:$0xf0]  ;;  %v6514_v61 = vor.u32 %v7139_v42, %v6511_v36  ;;  %v6968_v42 = vld [vmem:[#allocation4 + $0x164] sm:$0xf0] }
 0x22b   :  { %v2353_v56 = vmul.f32 1.442695, %v2352_v48  ;;  %v6413_v48 = vld [vmem:[#allocation4 + $0x600] sm:$0xf]  ;;  %v5967_v40 = vld [vmem:[#allocation4 + $0x2a0] sm:$0xf0]  ;;  %v6258_v41 = vor.u32 %v7075_v16, %v6255_v33 }
 0x22c   :  { %v6414_v57 = vor.u32 %v7119_v49, %v6413_v48  ;;  %v5970_v32 = vor.u32 %v7003_v38, %v5967_v40  ;;  %v5679_v26 = vld [vmem:[#allocation4 + $0x60] sm:$0xf0]  ;;  %v6645_v16 = vld [vmem:[#allocation4 + $0x7c8] sm:$0xf] }
 0x22d   :  { %7187 = vpow2.f32 %v2353_v56  ;;  %v6098_v56 = vor.u32 %v7035_v45, %v6095_v47  ;;  %4062 = vmatpush.bf16.msrb.mxu2 %v6158_v50  ;;  %v6995_v45 = vld [vmem:[#allocation4 + $0x244] sm:$0xf]  ;;  %v7176_v38 = vld [vmem:[#allocation4 + $0x7e4] sm:$0xf0] }
 0x22e   :  { %4075 = vmatpush.bf16.msrb.mxu3 %v6414_v57  ;;  %v5938_v47 = vor.u32 %v6995_v45, %v5935_v7  ;;  %v7067_v48 = vld [vmem:[#allocation4 + $0x484] sm:$0xf]  ;;  %v5813_v40 = vld [vmem:[#allocation4 + $0x148] sm:$0xf]  ;;  %v6646_v45 = vor.u32 %v7176_v38, %v6645_v16 }
 0x22f   :  { %v6223_v49 = vld [vmem:[#allocation4 + $0x4a0] sm:$0xf0]  ;;  %v6357_v7 = vld [vmem:[#allocation4 + $0x588] sm:$0xf] }
 0x230   :  { %v6226_v50 = vor.u32 %v7067_v48, %v6223_v49  ;;  %v5903_v57 = vld [vmem:[#allocation4 + $0x220] sm:$0xf0]  ;;  %v7072_v38 = vld [vmem:[#allocation4 + $0x4a4] sm:$0xf0] }
 0x233   :  { %v7188_v22 = vpop.eup %7187 }
 0x234   :  { %v2355_v24 = vmul.f32 %v7188_v22, %v2351_v11  ;;  %v7155_v11 = vld [vmem:[#allocation4 + $0x744] sm:$0xf] }
 0x235   :  { %v6287_v22 = vld [vmem:[#allocation4 + $0x520] sm:$0xf0]  ;;  %v6578_v46 = vor.u32 %v7155_v11, %v6575_v12  ;;  %v6984_v11 = vld [vmem:[#allocation4 + $0x1e4] sm:$0xf0] }
 0x236   :  { %v2356_v34 = vadd.f32 %v2355_v24, %v2201_v28  ;;  %v6543_v28 = vld [vmem:[#allocation4 + $0x720] sm:$0xf0]  ;;  %v5746_v24 = vor.u32 %v6947_v18, %v5743_v20  ;;  %v6290_v35 = vor.u32 %v7083_v29, %v6287_v22  ;;  %v6133_v12 = vld [vmem:[#allocation4 + $0x3c8] sm:$0xf]  ;;  %v5878_v29 = vor.u32 %v6984_v11, %v5877_v10 }
 0x238   :  { %5636 = vmatmul.msk.f32.vlgmr.msra.gmra.mxu0 %vm2378_vm1, %v2356_v34  ;;  %5638 = vmatmul.msk.f32.vlgmr.msra.gmra.mxu1 %vm2378_vm1, %v2356_v34 }
 0x239   :  { %5640 = vmatmul.msk.f32.vlgmr.msra.gmra.mxu2 %vm2378_vm1, %v2356_v34  ;;  %5642 = vmatmul.msk.f32.vlgmr.msra.gmra.mxu3 %vm2378_vm1, %v2356_v34  ;;  %v6546_v34 = vor.u32 %v7147_v27, %v6543_v28  ;;  %v6976_v27 = vld [vmem:[#allocation4 + $0x1a4] sm:$0xf0] }
 0x23a   :  { %4081 = vmatpush.bf16.msra.mxu0 %v5874_v39  ;;  %4094 = vmatpush.bf16.msra.mxu1 %v6130_v52  ;;  %v5714_v39 = vor.u32 %v6939_v30, %v5711_v44  ;;  %v6931_v52 = vld [vmem:[#allocation4 + $0x44] sm:$0xf]  ;;  %v6101_v28 = vld [vmem:[#allocation4 + $0x388] sm:$0xf]  ;;  %v2364_v30 = vperm.slane %v2359_v13, 3 }
 0x23b   :  { %4107 = vmatpush.bf16.msra.mxu2 %v6386_v53  ;;  %4120 = vmatpush.bf16.msra.mxu3 %v6642_v63  ;;  %v5682_v21 = vor.u32 %v6931_v52, %v5679_v26  ;;  %v6482_v53 = vor.u32 %v7131_v43, %v6479_v51  ;;  %v6191_v63 = vld [vmem:[#allocation4 + $0x460] sm:$0xf0]  ;;  %v7112_v44 = vld [vmem:[#allocation4 + $0x5e4] sm:$0xf0] }
 0x23c   :  { %v6194_v8 = vor.u32 %v7059_v60, %v6191_v63  ;;  %v6613_v43 = vld [vmem:[#allocation4 + $0x788] sm:$0xf] }
 0x23d   :  { %v7168_v51 = vld [vmem:[#allocation4 + $0x7a4] sm:$0xf0] }
 0x23e   :  { %4082 = vmatpush.bf16.msra.mxu0 %v5842_v55  ;;  %4095 = vmatpush.bf16.msra.mxu1 %v6098_v56  ;;  %v6923_v55 = vld [vmem:[#allocation4 + $0x4] sm:$0xf] }
 0x23f   :  { %4108 = vmatpush.bf16.msra.mxu2 %v6354_v3  ;;  %4121 = vmatpush.bf16.msra.mxu3 %v6610_v25  ;;  %v6987_v56 = vld [vmem:[#allocation4 + $0x204] sm:$0xf]  ;;  %v5650_v58 = vor.u32 %v6923_v55, %v5647_v54  ;;  %v2361_v25 = vperm.slane %v2359_v13, 0  ;;  %v5781_v55 = vld [vmem:[#allocation4 + $0x108] sm:$0xf] }
 0x240   :  { %v5906_v59 = vor.u32 %v6987_v56, %v5903_v57  ;;  %v6159_v3 = vld [vmem:[#allocation4 + $0x420] sm:$0xf0]  ;;  %v6037_v54 = vld [vmem:[#allocation4 + $0x308] sm:$0xf] }
 0x241   :  { %v7024_v56 = vld [vmem:[#allocation4 + $0x324] sm:$0xf0] }
 0x242   :  { %4083 = vmatpush.bf16.msra.mxu0 %v5810_v2  ;;  %4096 = vmatpush.bf16.msra.mxu1 %v6066_v6  ;;  %v7051_v2 = vld [vmem:[#allocation4 + $0x404] sm:$0xf]  ;;  %v6038_v63 = vor.u32 %v7024_v56, %v6037_v54 }
 0x243   :  { %4109 = vmatpush.bf16.msra.mxu2 %v6322_v17  ;;  %4122 = vmatpush.bf16.msra.mxu3 %v6578_v46  ;;  %v6162_v4 = vor.u32 %v7051_v2, %v6159_v3  ;;  %v7115_v6 = vld [vmem:[#allocation4 + $0x604] sm:$0xf]  ;;  %v5845_v46 = vld [vmem:[#allocation4 + $0x188] sm:$0xf] }
 0x244   :  { %v6418_v15 = vor.u32 %v7115_v6, %v6415_v9  ;;  %v5846_v33 = vor.u32 %v6976_v27, %v5845_v46  ;;  %v6952_v2 = vld [vmem:[#allocation4 + $0xe4] sm:$0xf0] }
 0x245   :  { %v6005_v3 = vld [vmem:[#allocation4 + $0x2c8] sm:$0xf] }
 0x246   :  { %4084 = vmatpush.bf16.msra.mxu0 %v5778_v14  ;;  %4097 = vmatpush.bf16.msra.mxu1 %v6034_v19  ;;  %v7048_v14 = vld [vmem:[#allocation4 + $0x3e4] sm:$0xf0] }
 0x247   :  { %4110 = vmatpush.bf16.msra.mxu2 %v6290_v35  ;;  %4123 = vmatpush.bf16.msra.mxu3 %v6546_v34  ;;  %v6134_v22 = vor.u32 %v7048_v14, %v6133_v12  ;;  %v2363_v35 = vperm.slane %v2359_v13, 2  ;;  %v7088_v13 = vld [vmem:[#allocation4 + $0x524] sm:$0xf0] }
 0x248   :  { %v5717_v12 = vld [vmem:[#allocation4 + $0x88] sm:$0xf] }
 0x249   :  { %v6944_v14 = vld [vmem:[#allocation4 + $0xa4] sm:$0xf0] }
 0x24a   :  { %4085 = vmatpush.bf16.msra.mxu0 %v5746_v24  ;;  %4098 = vmatpush.bf16.msra.mxu1 %v6002_v37  ;;  %v7040_v24 = vld [vmem:[#allocation4 + $0x3a4] sm:$0xf0] }
 0x24b   :  { %4111 = vmatpush.bf16.msra.mxu2 %v6258_v41  ;;  %4124 = vmatpush.bf16.msra.mxu3 %v6514_v61  ;;  %v6389_v37 = vld [vmem:[#allocation4 + $0x5c8] sm:$0xf]  ;;  %v6102_v34 = vor.u32 %v7040_v24, %v6101_v28  ;;  %v5718_v28 = vor.u32 %v6944_v14, %v5717_v12  ;;  %v5815_v14 = vld [vmem:[#allocation4 + $0x168] sm:$0xf0] }
 0x24c   :  { %v6069_v41 = vld [vmem:[#allocation4 + $0x348] sm:$0xf]  ;;  %v6390_v26 = vor.u32 %v7112_v44, %v6389_v37 }
 0x24d   :  { %v6517_v46 = vld [vmem:[#allocation4 + $0x6c8] sm:$0xf] }
 0x24e   :  { %4086 = vmatpush.bf16.msra.mxu0 %v5714_v39  ;;  %4099 = vmatpush.bf16.msra.mxu1 %v5970_v32  ;;  %v7032_v32 = vld [vmem:[#allocation4 + $0x364] sm:$0xf0] }
 0x24f   :  { %4112 = vmatpush.bf16.msra.mxu2 %v6226_v50  ;;  %4125 = vmatpush.bf16.msra.mxu3 %v6482_v53  ;;  %v6070_v50 = vor.u32 %v7032_v32, %v6069_v41  ;;  %v6960_v53 = vld [vmem:[#allocation4 + $0x124] sm:$0xf0] }
 0x250   :  { %v5782_v60 = vor.u32 %v6960_v53, %v5781_v55  ;;  %v7144_v27 = vld [vmem:[#allocation4 + $0x6e4] sm:$0xf0] }
 0x251   :  { %v5941_v37 = vld [vmem:[#allocation4 + $0x248] sm:$0xf] }
 0x252   :  { %4087 = vmatpush.bf16.msra.mxu0 %v5682_v21  ;;  %4100 = vmatpush.bf16.msra.mxu1 %v5938_v47  ;;  %v5814_v21 = vor.u32 %v6968_v42, %v5813_v40  ;;  %v7104_v47 = vld [vmem:[#allocation4 + $0x5a4] sm:$0xf0] }
 0x253   :  { %4113 = vmatpush.bf16.msra.mxu2 %v6194_v8  ;;  %4126 = vmatpush.bf16.msra.mxu3 %v6450_v1  ;;  %v6358_v57 = vor.u32 %v7104_v47, %v6357_v7  ;;  %v7160_v8 = vld [vmem:[#allocation4 + $0x764] sm:$0xf0]  ;;  %v7044_v47 = vld [vmem:[#allocation4 + $0x3cc] sm:$0xf] }
 0x254   :  { %v5749_v1 = vld [vmem:[#allocation4 + $0xc8] sm:$0xf]  ;;  %v6582_v9 = vor.u32 %v7160_v8, %v6581_v0  ;;  %v6103_v8 = vld [vmem:[#allocation4 + $0x3a8] sm:$0xf0] }
 0x255   :  { %v5750_v10 = vor.u32 %v6952_v2, %v5749_v1  ;;  %v7000_v44 = vld [vmem:[#allocation4 + $0x264] sm:$0xf0] }
 0x256   :  { %4088 = vmatpush.bf16.msra.mxu0 %v5650_v58  ;;  %4101 = vmatpush.bf16.msra.mxu1 %v5906_v59  ;;  %v6614_v58 = vor.u32 %v7168_v51, %v6613_v43  ;;  %v6325_v59 = vld [vmem:[#allocation4 + $0x548] sm:$0xf] }
 0x257   :  { %4114 = vmatpush.bf16.msra.mxu2 %v6162_v4  ;;  %4127 = vmatpush.bf16.msra.mxu3 %v6418_v15  ;;  %v7016_v4 = vld [vmem:[#allocation4 + $0x2e4] sm:$0xf0]  ;;  %v6326_v6 = vor.u32 %v7096_v5, %v6325_v59  ;;  %v6972_v59 = vld [vmem:[#allocation4 + $0x18c] sm:$0xf] }
 0x258   :  { %v6293_v15 = vld [vmem:[#allocation4 + $0x508] sm:$0xf]  ;;  %v6006_v11 = vor.u32 %v7016_v4, %v6005_v3 }
 0x259   :  { %v6485_v40 = vld [vmem:[#allocation4 + $0x688] sm:$0xf] }
 0x25a   :  { %v7136_v42 = vld [vmem:[#allocation4 + $0x6a4] sm:$0xf0] }
 0x25b   :  { %v5653_v41 = vld [vmem:[#allocation4 + $0x8] sm:$0xf]  ;;  %v6486_v7 = vor.u32 %v7136_v42, %v6485_v40  ;;  %v7156_v40 = vld [vmem:[#allocation4 + $0x74c] sm:$0xf] }
 0x25c   :  { %v6928_v32 = vld [vmem:[#allocation4 + $0x24] sm:$0xf0]  ;;  %v6583_v42 = vld [vmem:[#allocation4 + $0x768] sm:$0xf0] }
 0x25d   :  { %v6197_v43 = vld [vmem:[#allocation4 + $0x448] sm:$0xf]  ;;  %v5654_v54 = vor.u32 %v6928_v32, %v5653_v41  ;;  %v6948_v41 = vld [vmem:[#allocation4 + $0xcc] sm:$0xf] }
 0x25e   :  { %v7064_v51 = vld [vmem:[#allocation4 + $0x464] sm:$0xf0]  ;;  %v5751_v32 = vld [vmem:[#allocation4 + $0xe8] sm:$0xf0] }
 0x25f   :  { %v6453_v55 = vld [vmem:[#allocation4 + $0x648] sm:$0xf]  ;;  %v6198_v5 = vor.u32 %v7064_v51, %v6197_v43  ;;  %v5754_v43 = vor.u32 %v6948_v41, %v5751_v32  ;;  %v7052_v41 = vld [vmem:[#allocation4 + $0x40c] sm:$0xf] }
 0x260   :  { %v7128_v53 = vld [vmem:[#allocation4 + $0x664] sm:$0xf0]  ;;  %v6167_v32 = vld [vmem:[#allocation4 + $0x428] sm:$0xf0] }
 0x261   :  { %v6454_v0 = vor.u32 %v7128_v53, %v6453_v55  ;;  %v6165_v1 = vld [vmem:[#allocation4 + $0x408] sm:$0xf]  ;;  %v6940_v55 = vld [vmem:[#allocation4 + $0x8c] sm:$0xf] }
 0x262   :  { %v7056_v2 = vld [vmem:[#allocation4 + $0x424] sm:$0xf0]  ;;  %v5719_v53 = vld [vmem:[#allocation4 + $0xa8] sm:$0xf0] }
 0x263   :  { %v6421_v3 = vld [vmem:[#allocation4 + $0x608] sm:$0xf] }
 0x264   :  { %v7120_v4 = vld [vmem:[#allocation4 + $0x624] sm:$0xf0] }
 0x265   :  { %v6422_v12 = vor.u32 %v7120_v4, %v6421_v3  ;;  %v6996_v3 = vld [vmem:[#allocation4 + $0x24c] sm:$0xf] }
 0x266   :  { %v5943_v4 = vld [vmem:[#allocation4 + $0x268] sm:$0xf0] }
 0x2b5   :  { %v2408_v17 = vpop.f32.mrf.mxu0  ;;  %v2428_v18 = vpop.f32.mrf.mxu1 }
 0x2b6   :  { %v2409_v19 = vadd.f32 %v2408_v17, %v2361_v25  ;;  %v2429_v20 = vadd.f32 %v2428_v18, %v2362_v31  ;;  %v6549_v25 = vld [vmem:[#allocation4 + $0x708] sm:$0xf] }
 0x2b7   :  { %v7152_v31 = vld [vmem:[#allocation4 + $0x724] sm:$0xf0] }
 0x2b8   :  { %v7908_v23 = vpack.c.bf16 %v2409_v19, %v2409_v19  ;;  %v7910_v62 = vpack.c.bf16 %v2429_v20, %v2429_v20  ;;  %v5973_v17 = vld [vmem:[#allocation4 + $0x288] sm:$0xf]  ;;  %v6294_v19 = vor.u32 %v7088_v13, %v6293_v15  ;;  %v6550_v20 = vor.u32 %v7152_v31, %v6549_v25  ;;  %v7172_v15 = vld [vmem:[#allocation4 + $0x7cc] sm:$0xf] }
 0x2b9   :  { %v7008_v18 = vld [vmem:[#allocation4 + $0x2a4] sm:$0xf0]  ;;  %v6647_v13 = vld [vmem:[#allocation4 + $0x7e8] sm:$0xf0] }
 0x2ba   :  { %4037 = vmatmul.bf16.vlgmr.msrb.gmra.mxu0 %v7908_v23  ;;  %4050 = vmatmul.bf16.vlgmr.msrb.gmra.mxu1 %v7910_v62  ;;  %v5974_v24 = vor.u32 %v7008_v18, %v5973_v17  ;;  %v7028_v17 = vld [vmem:[#allocation4 + $0x34c] sm:$0xf] }
 0x2bb   :  { %4133 = vmatpush.bf16.msrb.mxu0 %v5878_v29  ;;  %4146 = vmatpush.bf16.msrb.mxu1 %v6134_v22  ;;  %v6261_v29 = vld [vmem:[#allocation4 + $0x4c8] sm:$0xf]  ;;  %v6071_v18 = vld [vmem:[#allocation4 + $0x368] sm:$0xf0] }
 0x2bc   :  { %v2448_v36 = vpop.f32.mrf.mxu2  ;;  %v2468_v39 = vpop.f32.mrf.mxu3  ;;  %v7080_v22 = vld [vmem:[#allocation4 + $0x4e4] sm:$0xf0] }
 0x2bd   :  { %v2449_v61 = vadd.f32 %v2448_v36, %v2363_v35  ;;  %v2469_v52 = vadd.f32 %v2468_v39, %v2364_v30  ;;  %v5685_v35 = vld [vmem:[#allocation4 + $0x48] sm:$0xf]  ;;  %v6262_v16 = vor.u32 %v7080_v22, %v6261_v29  ;;  %v5942_v39 = vor.u32 %v7000_v44, %v5941_v37  ;;  %v7100_v29 = vld [vmem:[#allocation4 + $0x58c] sm:$0xf] }
 0x2be   :  { %v6936_v30 = vld [vmem:[#allocation4 + $0x64] sm:$0xf0]  ;;  %v6359_v22 = vld [vmem:[#allocation4 + $0x5a8] sm:$0xf0] }
 0x2bf   :  { %v7914_v48 = vpack.c.bf16 %v2449_v61, %v2449_v61  ;;  %v7916_v49 = vpack.c.bf16 %v2469_v52, %v2469_v52  ;;  %4134 = vmatpush.bf16.msrb.mxu0 %v5846_v33  ;;  %4147 = vmatpush.bf16.msrb.mxu1 %v6102_v34  ;;  %v6518_v33 = vor.u32 %v7144_v27, %v6517_v46  ;;  %v6229_v34 = vld [vmem:[#allocation4 + $0x488] sm:$0xf]  ;;  %v7164_v46 = vld [vmem:[#allocation4 + $0x78c] sm:$0xf] }
 0x2c0   :  { %v5686_v36 = vor.u32 %v6936_v30, %v5685_v35  ;;  %v5909_v61 = vld [vmem:[#allocation4 + $0x208] sm:$0xf]  ;;  %v6615_v27 = vld [vmem:[#allocation4 + $0x7a8] sm:$0xf0] }
 0x2c1   :  { %4063 = vmatmul.bf16.vlgmr.msrb.gmra.mxu2 %v7914_v48  ;;  %4076 = vmatmul.bf16.vlgmr.msrb.gmra.mxu3 %v7916_v49  ;;  %v6992_v52 = vld [vmem:[#allocation4 + $0x224] sm:$0xf0]  ;;  %v6956_v35 = vld [vmem:[#allocation4 + $0x10c] sm:$0xf] }
 0x2c2   :  { %4159 = vmatpush.bf16.msrb.mxu2 %v6390_v26  ;;  %4172 = vmatpush.bf16.msrb.mxu3 %v6646_v45  ;;  %v6980_v26 = vld [vmem:[#allocation4 + $0x1cc] sm:$0xf]  ;;  %v5910_v56 = vor.u32 %v6992_v52, %v5909_v61 }
 0x2c3   :  { %4135 = vmatpush.bf16.msrb.mxu0 %v5814_v21  ;;  %4148 = vmatpush.bf16.msrb.mxu1 %v6070_v50  ;;  %v5879_v45 = vld [vmem:[#allocation4 + $0x1e8] sm:$0xf0]  ;;  %v6230_v21 = vor.u32 %v7072_v38, %v6229_v34 }
 0x2c4   :  { %v6135_v50 = vld [vmem:[#allocation4 + $0x3e8] sm:$0xf0] }
 0x2c5   :  { %v5783_v30 = vld [vmem:[#allocation4 + $0x128] sm:$0xf0] }
 0x2c6   :  { %4160 = vmatpush.bf16.msrb.mxu2 %v6358_v57  ;;  %4173 = vmatpush.bf16.msrb.mxu3 %v6614_v58  ;;  %v5882_v57 = vor.u32 %v6980_v26, %v5879_v45  ;;  %v6138_v58 = vor.u32 %v7044_v47, %v6135_v50  ;;  %v7020_v37 = vld [vmem:[#allocation4 + $0x30c] sm:$0xf]  ;;  %v6586_v45 = vor.u32 %v7156_v40, %v6583_v42  ;;  %v6109_v40 = vld [vmem:[#allocation4 + $0x390] sm:$0xf] }
 0x2c7   :  { %4136 = vmatpush.bf16.msrb.mxu0 %v5782_v60  ;;  %4149 = vmatpush.bf16.msrb.mxu1 %v6038_v63  ;;  %v5847_v60 = vld [vmem:[#allocation4 + $0x1a8] sm:$0xf0] }
 0x2c8   :  { %v7036_v63 = vld [vmem:[#allocation4 + $0x38c] sm:$0xf]  ;;  %v5850_v25 = vor.u32 %v6972_v59, %v5847_v60 }
 0x2c9   :  { %v6106_v31 = vor.u32 %v7036_v63, %v6103_v8  ;;  %v6039_v44 = vld [vmem:[#allocation4 + $0x328] sm:$0xf0] }
 0x2ca   :  { %4161 = vmatpush.bf16.msrb.mxu2 %v6326_v6  ;;  %4174 = vmatpush.bf16.msrb.mxu3 %v6582_v9  ;;  %v7108_v6 = vld [vmem:[#allocation4 + $0x5cc] sm:$0xf] }
 0x2cb   :  { %4089 = vmatmul.bf16.vlgmr.msra.gmra.mxu0 %v7908_v23  ;;  %4102 = vmatmul.bf16.vlgmr.msra.gmra.mxu1 %v7910_v62  ;;  %v6391_v9 = vld [vmem:[#allocation4 + $0x5e8] sm:$0xf0] }
 0x2cc   :  { %4137 = vmatpush.bf16.msrb.mxu0 %v5750_v10  ;;  %4150 = vmatpush.bf16.msrb.mxu1 %v6006_v11  ;;  %v6964_v10 = vld [vmem:[#allocation4 + $0x14c] sm:$0xf]  ;;  %v6166_v11 = vor.u32 %v7056_v2, %v6165_v1 }
 0x2cd   :  { %v7092_v34 = vld [vmem:[#allocation4 + $0x54c] sm:$0xf] }
 0x2ce   :  { %4162 = vmatpush.bf16.msrb.mxu2 %v6294_v19  ;;  %4175 = vmatpush.bf16.msrb.mxu3 %v6550_v20  ;;  %v6394_v19 = vor.u32 %v7108_v6, %v6391_v9  ;;  %v6650_v20 = vor.u32 %v7172_v15, %v6647_v13  ;;  %v6327_v38 = vld [vmem:[#allocation4 + $0x568] sm:$0xf0] }
 0x2cf   :  { %v7012_v61 = vld [vmem:[#allocation4 + $0x2cc] sm:$0xf]  ;;  %v6330_v26 = vor.u32 %v7092_v34, %v6327_v38  ;;  %v5853_v34 = vld [vmem:[#allocation4 + $0x190] sm:$0xf] }
 0x2d0   :  { %4138 = vmatpush.bf16.msrb.mxu0 %v5718_v28  ;;  %4151 = vmatpush.bf16.msrb.mxu1 %v5974_v24  ;;  %v5818_v28 = vor.u32 %v6964_v10, %v5815_v14  ;;  %v6074_v24 = vor.u32 %v7028_v17, %v6071_v18  ;;  %v6007_v52 = vld [vmem:[#allocation4 + $0x2e8] sm:$0xf0]  ;;  %v6977_v38 = vld [vmem:[#allocation4 + $0x1ac] sm:$0xf0] }
 0x2d1   :  { %4115 = vmatmul.bf16.vlgmr.msra.gmra.mxu2 %v7914_v48  ;;  %4128 = vmatmul.bf16.vlgmr.msra.gmra.mxu3 %v7916_v49  ;;  %v7148_v47 = vld [vmem:[#allocation4 + $0x70c] sm:$0xf]  ;;  %v6010_v51 = vor.u32 %v7012_v61, %v6007_v52 }
 0x2d2   :  { %4163 = vmatpush.bf16.msrb.mxu2 %v6262_v16  ;;  %4176 = vmatpush.bf16.msrb.mxu3 %v6518_v33  ;;  %v6362_v16 = vor.u32 %v7100_v29, %v6359_v22  ;;  %v6618_v33 = vor.u32 %v7164_v46, %v6615_v27  ;;  %v6551_v50 = vld [vmem:[#allocation4 + $0x728] sm:$0xf0]  ;;  %v6141_v46 = vld [vmem:[#allocation4 + $0x3d0] sm:$0xf] }
 0x2d3   :  { %v7076_v59 = vld [vmem:[#allocation4 + $0x4cc] sm:$0xf]  ;;  %v7049_v27 = vld [vmem:[#allocation4 + $0x3ec] sm:$0xf0] }
 0x2d4   :  { %4139 = vmatpush.bf16.msrb.mxu0 %v5686_v36  ;;  %4152 = vmatpush.bf16.msrb.mxu1 %v5942_v39  ;;  %v5786_v36 = vor.u32 %v6956_v35, %v5783_v30  ;;  %v6042_v39 = vor.u32 %v7020_v37, %v6039_v44  ;;  %v6263_v60 = vld [vmem:[#allocation4 + $0x4e8] sm:$0xf0] }
 0x2d5   :  { %v7140_v63 = vld [vmem:[#allocation4 + $0x6cc] sm:$0xf]  ;;  %v6266_v6 = vor.u32 %v7076_v59, %v6263_v60  ;;  %v6365_v59 = vld [vmem:[#allocation4 + $0x590] sm:$0xf] }
 0x2d6   :  { %4164 = vmatpush.bf16.msrb.mxu2 %v6230_v21  ;;  %4177 = vmatpush.bf16.msrb.mxu3 %v6486_v7  ;;  %v7084_v21 = vld [vmem:[#allocation4 + $0x50c] sm:$0xf]  ;;  %v7105_v60 = vld [vmem:[#allocation4 + $0x5ac] sm:$0xf0] }
 0x2d7   :  { %v6295_v7 = vld [vmem:[#allocation4 + $0x528] sm:$0xf0] }
 0x2d8   :  { %4140 = vmatpush.bf16.msrb.mxu0 %v5654_v54  ;;  %4153 = vmatpush.bf16.msrb.mxu1 %v5910_v56  ;;  %v7004_v54 = vld [vmem:[#allocation4 + $0x28c] sm:$0xf] }
 0x2d9   :  { %v5975_v56 = vld [vmem:[#allocation4 + $0x2a8] sm:$0xf0] }
 0x2da   :  { %4165 = vmatpush.bf16.msrb.mxu2 %v6198_v5  ;;  %4178 = vmatpush.bf16.msrb.mxu3 %v6454_v0  ;;  %v6519_v5 = vld [vmem:[#allocation4 + $0x6e8] sm:$0xf0]  ;;  %v5722_v0 = vor.u32 %v6940_v55, %v5719_v53  ;;  %v5978_v8 = vor.u32 %v7004_v54, %v5975_v56  ;;  %v5821_v55 = vld [vmem:[#allocation4 + $0x150] sm:$0xf] }
 0x2db   :  { %4141 = vmatmul.bf16.vlgmr.msrb.gmra.mxu0 %v7908_v23  ;;  %4154 = vmatmul.bf16.vlgmr.msrb.gmra.mxu1 %v7910_v62  ;;  %v6932_v1 = vld [vmem:[#allocation4 + $0x4c] sm:$0xf]  ;;  %v6522_v9 = vor.u32 %v7140_v63, %v6519_v5  ;;  %v6969_v53 = vld [vmem:[#allocation4 + $0x16c] sm:$0xf0] }
 0x2dc   :  { %4185 = vmatpush.bf16.msra.mxu0 %v5882_v57  ;;  %4198 = vmatpush.bf16.msra.mxu1 %v6138_v58  ;;  %v6298_v57 = vor.u32 %v7084_v21, %v6295_v7  ;;  %v6554_v58 = vor.u32 %v7148_v47, %v6551_v50  ;;  %v5687_v2 = vld [vmem:[#allocation4 + $0x68] sm:$0xf0]  ;;  %v6653_v21 = vld [vmem:[#allocation4 + $0x7d0] sm:$0xf]  ;;  %v5854_v47 = vor.u32 %v6977_v38, %v5853_v34 }
 0x2dd   :  { %v7068_v15 = vld [vmem:[#allocation4 + $0x48c] sm:$0xf]  ;;  %v5690_v10 = vor.u32 %v6932_v1, %v5687_v2  ;;  %v7177_v7 = vld [vmem:[#allocation4 + $0x7ec] sm:$0xf0] }
 0x2de   :  { %4166 = vmatpush.bf16.msrb.mxu2 %v6166_v11  ;;  %4179 = vmatpush.bf16.msrb.mxu3 %v6422_v12  ;;  %v6231_v13 = vld [vmem:[#allocation4 + $0x4a8] sm:$0xf0]  ;;  %v5946_v11 = vor.u32 %v6996_v3, %v5943_v4  ;;  %v6654_v56 = vor.u32 %v7177_v7, %v6653_v21  ;;  %v6621_v63 = vld [vmem:[#allocation4 + $0x790] sm:$0xf]  ;;  %v6366_v3 = vor.u32 %v7105_v60, %v6365_v59  ;;  %v6981_v59 = vld [vmem:[#allocation4 + $0x1d4] sm:$0xf] }
 0x2df   :  { %v6924_v12 = vld [vmem:[#allocation4 + $0xc] sm:$0xf]  ;;  %v6234_v29 = vor.u32 %v7068_v15, %v6231_v13  ;;  %v7169_v5 = vld [vmem:[#allocation4 + $0x7ac] sm:$0xf0]  ;;  %v5887_v60 = vld [vmem:[#allocation4 + $0x1f0] sm:$0xf0] }
 0x2e0   :  { %4186 = vmatpush.bf16.msra.mxu0 %v5850_v25  ;;  %4199 = vmatpush.bf16.msra.mxu1 %v6106_v31  ;;  %v7132_v25 = vld [vmem:[#allocation4 + $0x68c] sm:$0xf]  ;;  %v5789_v1 = vld [vmem:[#allocation4 + $0x110] sm:$0xf]  ;;  %v6622_v4 = vor.u32 %v7169_v5, %v6621_v63  ;;  %v7045_v63 = vld [vmem:[#allocation4 + $0x3d4] sm:$0xf] }
 0x2e1   :  { %4167 = vmatmul.bf16.vlgmr.msrb.gmra.mxu2 %v7914_v48  ;;  %4180 = vmatmul.bf16.vlgmr.msrb.gmra.mxu3 %v7916_v49  ;;  %v6487_v31 = vld [vmem:[#allocation4 + $0x6a8] sm:$0xf0]  ;;  %v6961_v2 = vld [vmem:[#allocation4 + $0x12c] sm:$0xf0]  ;;  %v6143_v5 = vld [vmem:[#allocation4 + $0x3f0] sm:$0xf0] }
 0x2e2   :  { %4211 = vmatpush.bf16.msra.mxu2 %v6394_v19  ;;  %4224 = vmatpush.bf16.msra.mxu3 %v6650_v20  ;;  %v5655_v14 = vld [vmem:[#allocation4 + $0x28] sm:$0xf0]  ;;  %v5885_v19 = vld [vmem:[#allocation4 + $0x1d0] sm:$0xf]  ;;  %v6490_v22 = vor.u32 %v7132_v25, %v6487_v31 }
 0x2e3   :  { %v6988_v17 = vld [vmem:[#allocation4 + $0x20c] sm:$0xf]  ;;  %v6985_v20 = vld [vmem:[#allocation4 + $0x1ec] sm:$0xf0]  ;;  %v5658_v37 = vor.u32 %v6924_v12, %v5655_v14 }
 0x2e4   :  { %4187 = vmatpush.bf16.msra.mxu0 %v5818_v28  ;;  %4200 = vmatpush.bf16.msra.mxu1 %v6074_v24  ;;  %v5911_v18 = vld [vmem:[#allocation4 + $0x228] sm:$0xf0]  ;;  %v6333_v15 = vld [vmem:[#allocation4 + $0x550] sm:$0xf] }
 0x2e5   :  { %v7060_v28 = vld [vmem:[#allocation4 + $0x44c] sm:$0xf]  ;;  %v5914_v44 = vor.u32 %v6988_v17, %v5911_v18  ;;  %v7097_v13 = vld [vmem:[#allocation4 + $0x56c] sm:$0xf0] }
 0x2e6   :  { %4212 = vmatpush.bf16.msra.mxu2 %v6362_v16  ;;  %4225 = vmatpush.bf16.msra.mxu3 %v6618_v33  ;;  %v6199_v24 = vld [vmem:[#allocation4 + $0x468] sm:$0xf0]  ;;  %v5886_v16 = vor.u32 %v6985_v20, %v5885_v19  ;;  %v6142_v33 = vor.u32 %v7049_v27, %v6141_v46  ;;  %v6589_v25 = vld [vmem:[#allocation4 + $0x750] sm:$0xf]  ;;  %v6334_v17 = vor.u32 %v7097_v13, %v6333_v15  ;;  %v6973_v15 = vld [vmem:[#allocation4 + $0x194] sm:$0xf] }
 0x2e7   :  { %v7124_v35 = vld [vmem:[#allocation4 + $0x64c] sm:$0xf]  ;;  %v6202_v42 = vor.u32 %v7060_v28, %v6199_v24  ;;  %v7161_v31 = vld [vmem:[#allocation4 + $0x76c] sm:$0xf0]  ;;  %v5855_v13 = vld [vmem:[#allocation4 + $0x1b0] sm:$0xf0] }
 0x2e8   :  { %4188 = vmatpush.bf16.msra.mxu0 %v5786_v36  ;;  %4201 = vmatpush.bf16.msra.mxu1 %v6042_v39  ;;  %v6455_v30 = vld [vmem:[#allocation4 + $0x668] sm:$0xf0]  ;;  %v7041_v39 = vld [vmem:[#allocation4 + $0x3ac] sm:$0xf0]  ;;  %v6590_v18 = vor.u32 %v7161_v31, %v6589_v25  ;;  %v7037_v25 = vld [vmem:[#allocation4 + $0x394] sm:$0xf] }
 0x2e9   :  { %v6458_v36 = vor.u32 %v7124_v35, %v6455_v30  ;;  %v7116_v61 = vld [vmem:[#allocation4 + $0x60c] sm:$0xf]  ;;  %v6110_v50 = vor.u32 %v7041_v39, %v6109_v40  ;;  %v5757_v12 = vld [vmem:[#allocation4 + $0xd0] sm:$0xf] }
 0x2ea   :  { %4213 = vmatpush.bf16.msra.mxu2 %v6330_v26  ;;  %4226 = vmatpush.bf16.msra.mxu3 %v6586_v45  ;;  %v6423_v52 = vld [vmem:[#allocation4 + $0x628] sm:$0xf0]  ;;  %v6397_v26 = vld [vmem:[#allocation4 + $0x5d0] sm:$0xf] }
 0x2eb   :  { %v7113_v45 = vld [vmem:[#allocation4 + $0x5ec] sm:$0xf0] }
 0x2ec   :  { %4189 = vmatpush.bf16.msra.mxu0 %v5754_v43  ;;  %4202 = vmatpush.bf16.msra.mxu1 %v6010_v51  ;;  %v6170_v43 = vor.u32 %v7052_v41, %v6167_v32  ;;  %v6426_v51 = vor.u32 %v7116_v61, %v6423_v52  ;;  %v6398_v54 = vor.u32 %v7113_v45, %v6397_v26  ;;  %v6953_v14 = vld [vmem:[#allocation4 + $0xec] sm:$0xf0] }
 0x2ed   :  { %v6013_v19 = vld [vmem:[#allocation4 + $0x2d0] sm:$0xf]  ;;  %v5758_v28 = vor.u32 %v6953_v14, %v5757_v12 }
 0x2ee   :  { %4214 = vmatpush.bf16.msra.mxu2 %v6298_v57  ;;  %4227 = vmatpush.bf16.msra.mxu3 %v6554_v58  ;;  %v6077_v57 = vld [vmem:[#allocation4 + $0x350] sm:$0xf] }
 0x2ef   :  { %v7033_v58 = vld [vmem:[#allocation4 + $0x36c] sm:$0xf0] }
 0x2f0   :  { %4190 = vmatpush.bf16.msra.mxu0 %v5722_v0  ;;  %4203 = vmatpush.bf16.msra.mxu1 %v5978_v8  ;;  %v5822_v0 = vor.u32 %v6969_v53, %v5821_v55  ;;  %v6078_v8 = vor.u32 %v7033_v58, %v6077_v57  ;;  %v7017_v20 = vld [vmem:[#allocation4 + $0x2ec] sm:$0xf0] }
 0x2f1   :  { %v6557_v46 = vld [vmem:[#allocation4 + $0x710] sm:$0xf]  ;;  %v6014_v24 = vor.u32 %v7017_v20, %v6013_v19  ;;  %v7109_v19 = vld [vmem:[#allocation4 + $0x5d4] sm:$0xf] }
 0x2f2   :  { %4215 = vmatpush.bf16.msra.mxu2 %v6266_v6  ;;  %4228 = vmatpush.bf16.msra.mxu3 %v6522_v9  ;;  %v6045_v6 = vld [vmem:[#allocation4 + $0x310] sm:$0xf]  ;;  %v6399_v20 = vld [vmem:[#allocation4 + $0x5f0] sm:$0xf0] }
 0x2f3   :  { %v7025_v9 = vld [vmem:[#allocation4 + $0x32c] sm:$0xf0] }
 0x2f4   :  { %4191 = vmatpush.bf16.msra.mxu0 %v5690_v10  ;;  %4204 = vmatpush.bf16.msra.mxu1 %v5946_v11  ;;  %v5790_v10 = vor.u32 %v6961_v2, %v5789_v1  ;;  %v6046_v11 = vor.u32 %v7025_v9, %v6045_v6  ;;  %v7153_v27 = vld [vmem:[#allocation4 + $0x72c] sm:$0xf0]  ;;  %v5890_v6 = vor.u32 %v6981_v59, %v5887_v60  ;;  %v7085_v59 = vld [vmem:[#allocation4 + $0x514] sm:$0xf] }
 0x2f5   :  { %v5725_v35 = vld [vmem:[#allocation4 + $0x90] sm:$0xf]  ;;  %v6146_v9 = vor.u32 %v7045_v63, %v6143_v5  ;;  %v6303_v60 = vld [vmem:[#allocation4 + $0x530] sm:$0xf0] }
 0x2f6   :  { %4216 = vmatpush.bf16.msra.mxu2 %v6234_v29  ;;  %4229 = vmatpush.bf16.msra.mxu3 %v6490_v22  ;;  %v6301_v29 = vld [vmem:[#allocation4 + $0x510] sm:$0xf]  ;;  %v7149_v63 = vld [vmem:[#allocation4 + $0x714] sm:$0xf] }
 0x2f7   :  { %v7089_v22 = vld [vmem:[#allocation4 + $0x52c] sm:$0xf0]  ;;  %v6559_v5 = vld [vmem:[#allocation4 + $0x730] sm:$0xf0] }
 0x2f8   :  { %4192 = vmatpush.bf16.msra.mxu0 %v5658_v37  ;;  %4205 = vmatpush.bf16.msra.mxu1 %v5914_v44  ;;  %v6945_v30 = vld [vmem:[#allocation4 + $0xac] sm:$0xf0]  ;;  %v6302_v37 = vor.u32 %v7089_v22, %v6301_v29  ;;  %v6558_v44 = vor.u32 %v7153_v27, %v6557_v46  ;;  %v7173_v29 = vld [vmem:[#allocation4 + $0x7d4] sm:$0xf]  ;;  %v5858_v46 = vor.u32 %v6973_v15, %v5855_v13 }
 0x2f9   :  { %v6269_v34 = vld [vmem:[#allocation4 + $0x4d0] sm:$0xf]  ;;  %v6655_v22 = vld [vmem:[#allocation4 + $0x7f0] sm:$0xf0] }
 0x2fa   :  { %4217 = vmatpush.bf16.msra.mxu2 %v6202_v42  ;;  %4230 = vmatpush.bf16.msra.mxu3 %v6458_v36  ;;  %v7081_v38 = vld [vmem:[#allocation4 + $0x4ec] sm:$0xf0]  ;;  %v5726_v36 = vor.u32 %v6945_v30, %v5725_v35  ;;  %v6965_v35 = vld [vmem:[#allocation4 + $0x154] sm:$0xf] }
 0x2fb   :  { %4193 = vmatmul.bf16.vlgmr.msra.gmra.mxu0 %v7908_v23  ;;  %4206 = vmatmul.bf16.vlgmr.msra.gmra.mxu1 %v7910_v62  ;;  %v6525_v40 = vld [vmem:[#allocation4 + $0x6d0] sm:$0xf]  ;;  %v6270_v61 = vor.u32 %v7081_v38, %v6269_v34  ;;  %v5823_v30 = vld [vmem:[#allocation4 + $0x170] sm:$0xf0] }
 0x2fc   :  { %4237 = vmatpush.bf16.msrb.mxu0 %v5886_v16  ;;  %4250 = vmatpush.bf16.msrb.mxu1 %v6142_v33  ;;  %v5981_v16 = vld [vmem:[#allocation4 + $0x290] sm:$0xf]  ;;  %v7101_v34 = vld [vmem:[#allocation4 + $0x594] sm:$0xf] }
 0x2fd   :  { %v7009_v33 = vld [vmem:[#allocation4 + $0x2ac] sm:$0xf0]  ;;  %v6367_v38 = vld [vmem:[#allocation4 + $0x5b0] sm:$0xf0] }
 0x2fe   :  { %4218 = vmatpush.bf16.msra.mxu2 %v6170_v43  ;;  %4231 = vmatpush.bf16.msra.mxu3 %v6426_v51  ;;  %v7145_v42 = vld [vmem:[#allocation4 + $0x6ec] sm:$0xf0]  ;;  %v5982_v39 = vor.u32 %v7009_v33, %v5981_v16  ;;  %v7029_v16 = vld [vmem:[#allocation4 + $0x354] sm:$0xf] }
 0x2ff   :  { %v5693_v41 = vld [vmem:[#allocation4 + $0x50] sm:$0xf]  ;;  %v6526_v52 = vor.u32 %v7145_v42, %v6525_v40  ;;  %v6079_v33 = vld [vmem:[#allocation4 + $0x370] sm:$0xf0] }
 0x300   :  { %4238 = vmatpush.bf16.msrb.mxu0 %v5854_v47  ;;  %4251 = vmatpush.bf16.msrb.mxu1 %v6110_v50  ;;  %v6937_v32 = vld [vmem:[#allocation4 + $0x6c] sm:$0xf0]  ;;  %v7165_v40 = vld [vmem:[#allocation4 + $0x794] sm:$0xf] }
 0x301   :  { %4219 = vmatmul.bf16.vlgmr.msra.gmra.mxu2 %v7914_v48  ;;  %4232 = vmatmul.bf16.vlgmr.msra.gmra.mxu3 %v7916_v49  ;;  %v5949_v26 = vld [vmem:[#allocation4 + $0x250] sm:$0xf]  ;;  %v5694_v43 = vor.u32 %v6937_v32, %v5693_v41  ;;  %v6623_v42 = vld [vmem:[#allocation4 + $0x7b0] sm:$0xf0] }
 0x302   :  { %4263 = vmatpush.bf16.msrb.mxu2 %v6398_v54  ;;  %4276 = vmatpush.bf16.msrb.mxu3 %v6654_v56  ;;  %v7001_v45 = vld [vmem:[#allocation4 + $0x26c] sm:$0xf0]  ;;  %v6957_v41 = vld [vmem:[#allocation4 + $0x114] sm:$0xf] }
 0x303   :  { %v6237_v21 = vld [vmem:[#allocation4 + $0x490] sm:$0xf]  ;;  %v5950_v51 = vor.u32 %v7001_v45, %v5949_v26  ;;  %v5791_v32 = vld [vmem:[#allocation4 + $0x130] sm:$0xf0] }
 0x304   :  { %4239 = vmatpush.bf16.msrb.mxu0 %v5822_v0  ;;  %4252 = vmatpush.bf16.msrb.mxu1 %v6078_v8  ;;  %v7073_v7 = vld [vmem:[#allocation4 + $0x4ac] sm:$0xf0]  ;;  %v7021_v26 = vld [vmem:[#allocation4 + $0x314] sm:$0xf] }
 0x305   :  { %v6493_v47 = vld [vmem:[#allocation4 + $0x690] sm:$0xf]  ;;  %v6238_v56 = vor.u32 %v7073_v7, %v6237_v21  ;;  %v6047_v45 = vld [vmem:[#allocation4 + $0x330] sm:$0xf0] }
 0x306   :  { %4264 = vmatpush.bf16.msrb.mxu2 %v6366_v3  ;;  %4277 = vmatpush.bf16.msrb.mxu3 %v6622_v4  ;;  %v7137_v50 = vld [vmem:[#allocation4 + $0x6ac] sm:$0xf0]  ;;  %v7093_v21 = vld [vmem:[#allocation4 + $0x554] sm:$0xf] }
 0x307   :  { %v5661_v55 = vld [vmem:[#allocation4 + $0x10] sm:$0xf]  ;;  %v6494_v57 = vor.u32 %v7137_v50, %v6493_v47  ;;  %v6335_v7 = vld [vmem:[#allocation4 + $0x570] sm:$0xf0] }
 0x308   :  { %4240 = vmatpush.bf16.msrb.mxu0 %v5790_v10  ;;  %4253 = vmatpush.bf16.msrb.mxu1 %v6046_v11  ;;  %v6929_v53 = vld [vmem:[#allocation4 + $0x2c] sm:$0xf0]  ;;  %v6111_v11 = vld [vmem:[#allocation4 + $0x3b0] sm:$0xf0] }
 0x309   :  { %v5917_v54 = vld [vmem:[#allocation4 + $0x210] sm:$0xf]  ;;  %v5662_v3 = vor.u32 %v6929_v53, %v5661_v55  ;;  %v6114_v27 = vor.u32 %v7037_v25, %v6111_v11  ;;  %v7157_v47 = vld [vmem:[#allocation4 + $0x754] sm:$0xf] }
 0x30a   :  { %4265 = vmatpush.bf16.msrb.mxu2 %v6334_v17  ;;  %4278 = vmatpush.bf16.msrb.mxu3 %v6590_v18  ;;  %v6993_v58 = vld [vmem:[#allocation4 + $0x22c] sm:$0xf0]  ;;  %v6591_v50 = vld [vmem:[#allocation4 + $0x770] sm:$0xf0] }
 0x30b   :  { %v6205_v0 = vld [vmem:[#allocation4 + $0x450] sm:$0xf]  ;;  %v5918_v4 = vor.u32 %v6993_v58, %v5917_v54  ;;  %v6949_v55 = vld [vmem:[#allocation4 + $0xd4] sm:$0xf]  ;;  %v6338_v54 = vor.u32 %v7093_v21, %v6335_v7  ;;  %v5861_v21 = vld [vmem:[#allocation4 + $0x198] sm:$0xf] }
 0x30c   :  { %4241 = vmatpush.bf16.msrb.mxu0 %v5758_v28  ;;  %4254 = vmatpush.bf16.msrb.mxu1 %v6014_v24  ;;  %v7065_v8 = vld [vmem:[#allocation4 + $0x46c] sm:$0xf0]  ;;  %v5759_v53 = vld [vmem:[#allocation4 + $0xf0] sm:$0xf0]  ;;  %v6978_v7 = vld [vmem:[#allocation4 + $0x1b4] sm:$0xf0] }
 0x30d   :  { %v6461_v1 = vld [vmem:[#allocation4 + $0x650] sm:$0xf]  ;;  %v6206_v31 = vor.u32 %v7065_v8, %v6205_v0  ;;  %v6015_v58 = vld [vmem:[#allocation4 + $0x2f0] sm:$0xf0]  ;;  %v5762_v0 = vor.u32 %v6949_v55, %v5759_v53 }
 0x30e   :  { %4266 = vmatpush.bf16.msrb.mxu2 %v6302_v37  ;;  %4279 = vmatpush.bf16.msrb.mxu3 %v6558_v44  ;;  %v7129_v2 = vld [vmem:[#allocation4 + $0x66c] sm:$0xf0]  ;;  %v6402_v37 = vor.u32 %v7109_v19, %v6399_v20  ;;  %v6658_v44 = vor.u32 %v7173_v29, %v6655_v22  ;;  %v7077_v15 = vld [vmem:[#allocation4 + $0x4d4] sm:$0xf] }
 0x30f   :  { %v6462_v10 = vor.u32 %v7129_v2, %v6461_v1  ;;  %v6173_v12 = vld [vmem:[#allocation4 + $0x410] sm:$0xf]  ;;  %v6941_v1 = vld [vmem:[#allocation4 + $0x94] sm:$0xf] }
 0x310   :  { %4242 = vmatpush.bf16.msrb.mxu0 %v5726_v36  ;;  %4255 = vmatpush.bf16.msrb.mxu1 %v5982_v39  ;;  %v7057_v14 = vld [vmem:[#allocation4 + $0x42c] sm:$0xf0]  ;;  %v5826_v36 = vor.u32 %v6965_v35, %v5823_v30  ;;  %v6082_v39 = vor.u32 %v7029_v16, %v6079_v33  ;;  %v5727_v2 = vld [vmem:[#allocation4 + $0xb0] sm:$0xf0] }
 0x311   :  { %v6429_v17 = vld [vmem:[#allocation4 + $0x610] sm:$0xf]  ;;  %v6174_v28 = vor.u32 %v7057_v14, %v6173_v12  ;;  %v6271_v13 = vld [vmem:[#allocation4 + $0x4f0] sm:$0xf0] }
 0x312   :  { %4267 = vmatpush.bf16.msrb.mxu2 %v6270_v61  ;;  %4280 = vmatpush.bf16.msrb.mxu3 %v6526_v52  ;;  %v7121_v18 = vld [vmem:[#allocation4 + $0x62c] sm:$0xf0]  ;;  %v6370_v61 = vor.u32 %v7101_v34, %v6367_v38  ;;  %v6626_v52 = vor.u32 %v7165_v40, %v6623_v42  ;;  %v7141_v25 = vld [vmem:[#allocation4 + $0x6d4] sm:$0xf]  ;;  %v5893_v34 = vld [vmem:[#allocation4 + $0x1d8] sm:$0xf] }
 0x313   :  { %v6430_v24 = vor.u32 %v7121_v18, %v6429_v17  ;;  %v6933_v12 = vld [vmem:[#allocation4 + $0x54] sm:$0xf]  ;;  %v6274_v17 = vor.u32 %v7077_v15, %v6271_v13  ;;  %v6986_v38 = vld [vmem:[#allocation4 + $0x1f4] sm:$0xf0] }
 0x314   :  { %4243 = vmatpush.bf16.msrb.mxu0 %v5694_v43  ;;  %4256 = vmatpush.bf16.msrb.mxu1 %v5950_v51  ;;  %v5794_v43 = vor.u32 %v6957_v41, %v5791_v32  ;;  %v6050_v51 = vor.u32 %v7021_v26, %v6047_v45  ;;  %v5695_v14 = vld [vmem:[#allocation4 + $0x70] sm:$0xf0]  ;;  %v6149_v40 = vld [vmem:[#allocation4 + $0x3d8] sm:$0xf]  ;;  %v5894_v26 = vor.u32 %v6986_v38, %v5893_v34 }
 0x315   :  { %v6997_v19 = vld [vmem:[#allocation4 + $0x254] sm:$0xf]  ;;  %v7050_v42 = vld [vmem:[#allocation4 + $0x3f4] sm:$0xf0] }
 0x316   :  { %4268 = vmatpush.bf16.msrb.mxu2 %v6238_v56  ;;  %4281 = vmatpush.bf16.msrb.mxu3 %v6494_v57  ;;  %v6594_v56 = vor.u32 %v7157_v47, %v6591_v50  ;;  %v7013_v57 = vld [vmem:[#allocation4 + $0x2d4] sm:$0xf]  ;;  %v6150_v45 = vor.u32 %v7050_v42, %v6149_v40  ;;  %v6117_v47 = vld [vmem:[#allocation4 + $0x398] sm:$0xf] }
 0x317   :  { %v6018_v8 = vor.u32 %v7013_v57, %v6015_v58  ;;  %v5951_v20 = vld [vmem:[#allocation4 + $0x270] sm:$0xf0]  ;;  %v6405_v57 = vld [vmem:[#allocation4 + $0x5d8] sm:$0xf] }
 0x318   :  { %4244 = vmatpush.bf16.msrb.mxu0 %v5662_v3  ;;  %4257 = vmatpush.bf16.msrb.mxu1 %v5918_v4  ;;  %v6306_v3 = vor.u32 %v7085_v59, %v6303_v60  ;;  %v6562_v4 = vor.u32 %v7149_v63, %v6559_v5  ;;  %v7069_v29 = vld [vmem:[#allocation4 + $0x494] sm:$0xf]  ;;  %v7114_v58 = vld [vmem:[#allocation4 + $0x5f4] sm:$0xf0]  ;;  %v5862_v63 = vor.u32 %v6978_v7, %v5861_v21 }
 0x319   :  { %v6239_v22 = vld [vmem:[#allocation4 + $0x4b0] sm:$0xf0]  ;;  %v6661_v59 = vld [vmem:[#allocation4 + $0x7d8] sm:$0xf] }
 0x31a   :  { %4269 = vmatpush.bf16.msrb.mxu2 %v6206_v31  ;;  %4282 = vmatpush.bf16.msrb.mxu3 %v6462_v10  ;;  %v6527_v31 = vld [vmem:[#allocation4 + $0x6f0] sm:$0xf0]  ;;  %v5730_v10 = vor.u32 %v6941_v1, %v5727_v2  ;;  %v7178_v60 = vld [vmem:[#allocation4 + $0x7f4] sm:$0xf0] }
 0x31b   :  { %4245 = vmatmul.bf16.vlgmr.msrb.gmra.mxu0 %v7908_v23  ;;  %4258 = vmatmul.bf16.vlgmr.msrb.gmra.mxu1 %v7910_v62  ;;  %v6530_v18 = vor.u32 %v7141_v25, %v6527_v31  ;;  %v6925_v35 = vld [vmem:[#allocation4 + $0x14] sm:$0xf]  ;;  %v5829_v1 = vld [vmem:[#allocation4 + $0x158] sm:$0xf] }
 0x31c   :  { %4289 = vmatpush.bf16.msra.mxu0 %v5890_v6  ;;  %4302 = vmatpush.bf16.msra.mxu1 %v6146_v9  ;;  %v7005_v6 = vld [vmem:[#allocation4 + $0x294] sm:$0xf]  ;;  %v6970_v2 = vld [vmem:[#allocation4 + $0x174] sm:$0xf0] }
 0x31d   :  { %v5983_v9 = vld [vmem:[#allocation4 + $0x2b0] sm:$0xf0]  ;;  %v6373_v15 = vld [vmem:[#allocation4 + $0x598] sm:$0xf] }
 0x31e   :  { %4270 = vmatpush.bf16.msrb.mxu2 %v6174_v28  ;;  %4283 = vmatpush.bf16.msrb.mxu3 %v6430_v24  ;;  %v5986_v11 = vor.u32 %v7005_v6, %v5983_v9  ;;  %v5698_v28 = vor.u32 %v6933_v12, %v5695_v14  ;;  %v5954_v24 = vor.u32 %v6997_v19, %v5951_v20  ;;  %v5663_v30 = vld [vmem:[#allocation4 + $0x30] sm:$0xf0]  ;;  %v6085_v6 = vld [vmem:[#allocation4 + $0x358] sm:$0xf] }
 0x31f   :  { %v5919_v33 = vld [vmem:[#allocation4 + $0x230] sm:$0xf0]  ;;  %v7034_v9 = vld [vmem:[#allocation4 + $0x374] sm:$0xf0] }
 0x320   :  { %4290 = vmatpush.bf16.msra.mxu0 %v5858_v46  ;;  %4303 = vmatpush.bf16.msra.mxu1 %v6114_v27  ;;  %v7133_v46 = vld [vmem:[#allocation4 + $0x694] sm:$0xf]  ;;  %v7106_v13 = vld [vmem:[#allocation4 + $0x5b4] sm:$0xf0] }
 0x321   :  { %4271 = vmatmul.bf16.vlgmr.msrb.gmra.mxu2 %v7914_v48  ;;  %4284 = vmatmul.bf16.vlgmr.msrb.gmra.mxu3 %v7916_v49  ;;  %v6495_v27 = vld [vmem:[#allocation4 + $0x6b0] sm:$0xf0]  ;;  %v6629_v25 = vld [vmem:[#allocation4 + $0x798] sm:$0xf]  ;;  %v6374_v20 = vor.u32 %v7106_v13, %v6373_v15 }
 0x322   :  { %4315 = vmatpush.bf16.msra.mxu2 %v6402_v37  ;;  %4328 = vmatpush.bf16.msra.mxu3 %v6658_v44  ;;  %v6989_v37 = vld [vmem:[#allocation4 + $0x214] sm:$0xf]  ;;  %v6242_v44 = vor.u32 %v7069_v29, %v6239_v22  ;;  %v6498_v16 = vor.u32 %v7133_v46, %v6495_v27  ;;  %v7170_v31 = vld [vmem:[#allocation4 + $0x7b4] sm:$0xf0] }
 0x323   :  { %v7125_v41 = vld [vmem:[#allocation4 + $0x654] sm:$0xf]  ;;  %v7941_v12 = vld [vmem:[%s8022_s11] sm:$0xff]  ;;  %v6630_v29 = vor.u32 %v7170_v31, %v6629_v25 }
 0x324   :  { %4291 = vmatpush.bf16.msra.mxu0 %v5826_v36  ;;  %4304 = vmatpush.bf16.msra.mxu1 %v6082_v39  ;;  %v7061_v36 = vld [vmem:[#allocation4 + $0x454] sm:$0xf]  ;;  %v6962_v19 = vld [vmem:[#allocation4 + $0x134] sm:$0xf0] }
 0x325   :  { %v6207_v39 = vld [vmem:[#allocation4 + $0x470] sm:$0xf0]  ;;  %v6053_v22 = vld [vmem:[#allocation4 + $0x318] sm:$0xf] }
 0x326   :  { %4316 = vmatpush.bf16.msra.mxu2 %v6370_v61  ;;  %4329 = vmatpush.bf16.msra.mxu3 %v6626_v52  ;;  %v6463_v32 = vld [vmem:[#allocation4 + $0x670] sm:$0xf0]  ;;  %v5666_v61 = vor.u32 %v6925_v35, %v5663_v30  ;;  %v5922_v52 = vor.u32 %v6989_v37, %v5919_v33  ;;  %v6210_v50 = vor.u32 %v7061_v36, %v6207_v39  ;;  %v7026_v46 = vld [vmem:[#allocation4 + $0x334] sm:$0xf0]  ;;  %v2733_v30 = vperm.slane %v7941_v12, 0 }
 0x327   :  { %v7053_v55 = vld [vmem:[#allocation4 + $0x414] sm:$0xf]  ;;  %v6341_v27 = vld [vmem:[#allocation4 + $0x558] sm:$0xf] }
 0x328   :  { %4292 = vmatpush.bf16.msra.mxu0 %v5794_v43  ;;  %4305 = vmatpush.bf16.msra.mxu1 %v6050_v51  ;;  %v6466_v43 = vor.u32 %v7125_v41, %v6463_v32  ;;  %v7042_v51 = vld [vmem:[#allocation4 + $0x3b4] sm:$0xf0]  ;;  %v6175_v53 = vld [vmem:[#allocation4 + $0x430] sm:$0xf0] }
 0x329   :  { %v6118_v5 = vor.u32 %v7042_v51, %v6117_v47  ;;  %v7162_v35 = vld [vmem:[#allocation4 + $0x774] sm:$0xf0] }
 0x32a   :  { %4317 = vmatpush.bf16.msra.mxu2 %v6338_v54  ;;  %4330 = vmatpush.bf16.msra.mxu3 %v6594_v56  ;;  %v7117_v54 = vld [vmem:[#allocation4 + $0x614] sm:$0xf]  ;;  %v6954_v33 = vld [vmem:[#allocation4 + $0xf4] sm:$0xf0] }
 0x32b   :  { %v6431_v56 = vld [vmem:[#allocation4 + $0x630] sm:$0xf0]  ;;  %v6021_v40 = vld [vmem:[#allocation4 + $0x2d8] sm:$0xf] }
 0x32c   :  { %4293 = vmatpush.bf16.msra.mxu0 %v5762_v0  ;;  %4306 = vmatpush.bf16.msra.mxu1 %v6018_v8  ;;  %v6178_v0 = vor.u32 %v7053_v55, %v6175_v53  ;;  %v6434_v8 = vor.u32 %v7117_v54, %v6431_v56  ;;  %v7018_v42 = vld [vmem:[#allocation4 + $0x2f4] sm:$0xf0] }
 0x32d   :  { %v6309_v36 = vld [vmem:[#allocation4 + $0x518] sm:$0xf] }
 0x32e   :  { %4318 = vmatpush.bf16.msra.mxu2 %v6306_v3  ;;  %4331 = vmatpush.bf16.msra.mxu3 %v6562_v4  ;;  %v6406_v3 = vor.u32 %v7114_v58, %v6405_v57  ;;  %v6662_v4 = vor.u32 %v7178_v60, %v6661_v59  ;;  %v7090_v39 = vld [vmem:[#allocation4 + $0x534] sm:$0xf0] }
 0x32f   :  { %v6565_v41 = vld [vmem:[#allocation4 + $0x718] sm:$0xf] }
 0x330   :  { %4294 = vmatpush.bf16.msra.mxu0 %v5730_v10  ;;  %4307 = vmatpush.bf16.msra.mxu1 %v5986_v11  ;;  %v5830_v10 = vor.u32 %v6970_v2, %v5829_v1  ;;  %v6086_v11 = vor.u32 %v7034_v9, %v6085_v6  ;;  %v7154_v32 = vld [vmem:[#allocation4 + $0x734] sm:$0xf0] }
 0x331   :  { %v5733_v7 = vld [vmem:[#allocation4 + $0x98] sm:$0xf] }
 0x332   :  { %4319 = vmatpush.bf16.msra.mxu2 %v6274_v17  ;;  %4332 = vmatpush.bf16.msra.mxu3 %v6530_v18  ;;  %v5797_v18 = vld [vmem:[#allocation4 + $0x118] sm:$0xf] }
 0x333   :  { %v5798_v37 = vor.u32 %v6962_v19, %v5797_v18  ;;  %v6946_v47 = vld [vmem:[#allocation4 + $0xb4] sm:$0xf0] }
 0x334   :  { %4295 = vmatpush.bf16.msra.mxu0 %v5698_v28  ;;  %4308 = vmatpush.bf16.msra.mxu1 %v5954_v24  ;;  %v7098_v28 = vld [vmem:[#allocation4 + $0x574] sm:$0xf0]  ;;  %v5734_v59 = vor.u32 %v6946_v47, %v5733_v7  ;;  %v6119_v7 = vld [vmem:[#allocation4 + $0x3b8] sm:$0xf0] }
 0x335   :  { %v6597_v24 = vld [vmem:[#allocation4 + $0x758] sm:$0xf]  ;;  %v6342_v34 = vor.u32 %v7098_v28, %v6341_v27  ;;  %v6982_v27 = vld [vmem:[#allocation4 + $0x1dc] sm:$0xf] }
 0x336   :  { %4320 = vmatpush.bf16.msra.mxu2 %v6242_v44  ;;  %4333 = vmatpush.bf16.msra.mxu3 %v6498_v16  ;;  %v6054_v44 = vor.u32 %v7026_v46, %v6053_v22  ;;  %v5765_v16 = vld [vmem:[#allocation4 + $0xd8] sm:$0xf]  ;;  %v6598_v38 = vor.u32 %v7162_v35, %v6597_v24  ;;  %v5895_v28 = vld [vmem:[#allocation4 + $0x1f8] sm:$0xf0] }
 0x337   :  { %v4038_v14 = vpop.f32.mrf.mxu0  ;;  %v4051_v17 = vpop.f32.mrf.mxu1  ;;  %v5989_v51 = vld [vmem:[#allocation4 + $0x298] sm:$0xf]  ;;  %v7046_v24 = vld [vmem:[#allocation4 + $0x3dc] sm:$0xf] }
 0x338   :  { %4296 = vmatpush.bf16.msra.mxu0 %v5666_v61  ;;  %4309 = vmatpush.bf16.msra.mxu1 %v5922_v52  ;;  %v4039_v61 = vadd.f32 %v4038_v14, %v2733_v30  ;;  %v5766_v52 = vor.u32 %v6954_v33, %v5765_v16  ;;  %v7010_v55 = vld [vmem:[#allocation4 + $0x2b4] sm:$0xf0]  ;;  %v6151_v30 = vld [vmem:[#allocation4 + $0x3f8] sm:$0xf0] }
 0x339   :  { %v6277_v53 = vld [vmem:[#allocation4 + $0x4d8] sm:$0xf]  ;;  %v5990_v60 = vor.u32 %v7010_v55, %v5989_v51  ;;  %v7110_v55 = vld [vmem:[#allocation4 + $0x5dc] sm:$0xf] }
 0x33a   :  { %4321 = vmatpush.bf16.msra.mxu2 %v6210_v50  ;;  %4334 = vmatpush.bf16.msra.mxu3 %v6466_v43  ;;  %v6310_v50 = vor.u32 %v7090_v39, %v6309_v36  ;;  %v6566_v43 = vor.u32 %v7154_v32, %v6565_v41  ;;  %v7082_v54 = vld [vmem:[#allocation4 + $0x4f4] sm:$0xf0]  ;;  %v4052_v58 = vadd.f32 %v4051_v17, %v4039_v61  ;;  %v6974_v61 = vld [vmem:[#allocation4 + $0x19c] sm:$0xf] }
 0x33b   :  { %4297 = vmatmul.bf16.vlgmr.msra.gmra.mxu0 %v7908_v23  ;;  %4310 = vmatmul.bf16.vlgmr.msra.gmra.mxu1 %v7910_v62  ;;  %v6533_v56 = vld [vmem:[#allocation4 + $0x6d8] sm:$0xf]  ;;  %v6278_v1 = vor.u32 %v7082_v54, %v6277_v53  ;;  %v5898_v41 = vor.u32 %v6982_v27, %v5895_v28  ;;  %v6154_v32 = vor.u32 %v7046_v24, %v6151_v30  ;;  %v6407_v54 = vld [vmem:[#allocation4 + $0x5f8] sm:$0xf0] }
 0x33c   :  { %4341 = vmatpush.bf16.msrb.mxu0 %v5894_v26  ;;  %4354 = vmatpush.bf16.msrb.mxu1 %v6150_v45  ;;  %v6022_v26 = vor.u32 %v7018_v42, %v6021_v40  ;;  %v7146_v57 = vld [vmem:[#allocation4 + $0x6f4] sm:$0xf0]  ;;  %v7022_v28 = vld [vmem:[#allocation4 + $0x31c] sm:$0xf] }
 0x33d   :  { %v6534_v2 = vor.u32 %v7146_v57, %v6533_v56  ;;  %v6245_v6 = vld [vmem:[#allocation4 + $0x498] sm:$0xf]  ;;  %v7174_v56 = vld [vmem:[#allocation4 + $0x7dc] sm:$0xf] }
 0x33e   :  { %4322 = vmatpush.bf16.msra.mxu2 %v6178_v0  ;;  %4335 = vmatpush.bf16.msra.mxu3 %v6434_v8  ;;  %v7074_v15 = vld [vmem:[#allocation4 + $0x4b4] sm:$0xf0]  ;;  %v6663_v57 = vld [vmem:[#allocation4 + $0x7f8] sm:$0xf0] }
 0x33f   :  { %v4040_v45 = vpop.f32.mrf.mxu0  ;;  %v4053_v21 = vpop.f32.mrf.mxu1  ;;  %v6501_v13 = vld [vmem:[#allocation4 + $0x698] sm:$0xf]  ;;  %v6246_v22 = vor.u32 %v7074_v15, %v6245_v6  ;;  %v6087_v6 = vld [vmem:[#allocation4 + $0x378] sm:$0xf0] }
 0x340   :  { %4342 = vmatpush.bf16.msrb.mxu0 %v5862_v63  ;;  %4355 = vmatpush.bf16.msrb.mxu1 %v6118_v5  ;;  %v5701_v63 = vld [vmem:[#allocation4 + $0x58] sm:$0xf]  ;;  %v6055_v24 = vld [vmem:[#allocation4 + $0x338] sm:$0xf0] }
 0x341   :  { %4323 = vmatmul.bf16.vlgmr.msra.gmra.mxu2 %v7914_v48  ;;  %4336 = vmatmul.bf16.vlgmr.msra.gmra.mxu3 %v7916_v49  ;;  %v6938_v5 = vld [vmem:[#allocation4 + $0x74] sm:$0xf0] }
 0x342   :  { %4367 = vmatpush.bf16.msrb.mxu2 %v6406_v3  ;;  %4380 = vmatpush.bf16.msrb.mxu3 %v6662_v4  ;;  %v5957_v3 = vld [vmem:[#allocation4 + $0x258] sm:$0xf] }
 0x343   :  { %v7002_v4 = vld [vmem:[#allocation4 + $0x274] sm:$0xf0] }
 0x344   :  { %4343 = vmatpush.bf16.msrb.mxu0 %v5830_v10  ;;  %4356 = vmatpush.bf16.msrb.mxu1 %v6086_v11  ;;  %v4064_v0 = vpop.f32.mrf.mxu2  ;;  %v4077_v8 = vpop.f32.mrf.mxu3  ;;  %v7138_v25 = vld [vmem:[#allocation4 + $0x6b4] sm:$0xf0]  ;;  %v5702_v11 = vor.u32 %v6938_v5, %v5701_v63  ;;  %v5958_v14 = vor.u32 %v7002_v4, %v5957_v3  ;;  %v6666_v3 = vor.u32 %v7174_v56, %v6663_v57  ;;  %v7030_v4 = vld [vmem:[#allocation4 + $0x35c] sm:$0xf] }
 0x345   :  { %v4065_v9 = vadd.f32 %v4064_v0, %v4052_v58  ;;  %v5669_v31 = vld [vmem:[#allocation4 + $0x18] sm:$0xf]  ;;  %v6502_v46 = vor.u32 %v7138_v25, %v6501_v13  ;;  %v6375_v25 = vld [vmem:[#allocation4 + $0x5b8] sm:$0xf0] }
 0x346   :  { %4368 = vmatpush.bf16.msrb.mxu2 %v6374_v20  ;;  %4381 = vmatpush.bf16.msrb.mxu3 %v6630_v29  ;;  %v6930_v17 = vld [vmem:[#allocation4 + $0x34] sm:$0xf0] }
 0x347   :  { %v4078_v10 = vadd.f32 %v4077_v8, %v4065_v9  ;;  %v5925_v18 = vld [vmem:[#allocation4 + $0x218] sm:$0xf]  ;;  %v5670_v40 = vor.u32 %v6930_v17, %v5669_v31  ;;  %v6966_v8 = vld [vmem:[#allocation4 + $0x15c] sm:$0xf] }
 0x348   :  { %4344 = vmatpush.bf16.msrb.mxu0 %v5798_v37  ;;  %4357 = vmatpush.bf16.msrb.mxu1 %v6054_v44  ;;  %v6994_v19 = vld [vmem:[#allocation4 + $0x234] sm:$0xf0]  ;;  %v4090_v20 = vpop.f32.mrf.mxu0  ;;  %v4103_v29 = vpop.f32.mrf.mxu1  ;;  %v7102_v9 = vld [vmem:[#allocation4 + $0x59c] sm:$0xf] }
 0x349   :  { %v4445_v35 = vsub.f32 0.0, %v4078_v10  ;;  %v6213_v37 = vld [vmem:[#allocation4 + $0x458] sm:$0xf]  ;;  %v5926_v42 = vor.u32 %v6994_v19, %v5925_v18  ;;  %v7166_v31 = vld [vmem:[#allocation4 + $0x79c] sm:$0xf] }
 0x34a   :  { %4369 = vmatpush.bf16.msrb.mxu2 %v6342_v34  ;;  %4382 = vmatpush.bf16.msrb.mxu3 %v6598_v38  ;;  %v7066_v44 = vld [vmem:[#allocation4 + $0x474] sm:$0xf0]  ;;  %v2734_v38 = vperm.slane %v7941_v12, 1  ;;  %v6631_v10 = vld [vmem:[#allocation4 + $0x7b8] sm:$0xf0] }
 0x34b   :  { %v6469_v16 = vld [vmem:[#allocation4 + $0x658] sm:$0xf]  ;;  %v4453_v34 = vmul.f32 1.442695, %v4445_v35  ;;  %v6214_v45 = vor.u32 %v7066_v44, %v6213_v37  ;;  %v6634_v27 = vor.u32 %v7166_v31, %v6631_v10  ;;  %v7094_v35 = vld [vmem:[#allocation4 + $0x55c] sm:$0xf] }
 0x34c   :  { %4345 = vmatpush.bf16.msrb.mxu0 %v5766_v52  ;;  %4358 = vmatpush.bf16.msrb.mxu1 %v6022_v26  ;;  %v7130_v33 = vld [vmem:[#allocation4 + $0x674] sm:$0xf0]  ;;  %v4066_v36 = vpop.f32.mrf.mxu2  ;;  %v4079_v39 = vpop.f32.mrf.mxu3  ;;  %v5863_v52 = vld [vmem:[#allocation4 + $0x1b8] sm:$0xf0]  ;;  %v4091_v53 = vadd.f32 %v4090_v20, %v2734_v38  ;;  %v6090_v20 = vor.u32 %v7030_v4, %v6087_v6 }
 0x34d   :  { %v7038_v26 = vld [vmem:[#allocation4 + $0x39c] sm:$0xf]  ;;  %7189 = vpow2.f32 %v4453_v34  ;;  %v6470_v21 = vor.u32 %v7130_v33, %v6469_v16  ;;  %v6181_v47 = vld [vmem:[#allocation4 + $0x418] sm:$0xf]  ;;  %v6058_v36 = vor.u32 %v7022_v28, %v6055_v24 }
 0x34e   :  { %4370 = vmatpush.bf16.msrb.mxu2 %v6310_v50  ;;  %4383 = vmatpush.bf16.msrb.mxu3 %v6566_v43  ;;  %v7058_v50 = vld [vmem:[#allocation4 + $0x434] sm:$0xf0]  ;;  %v6122_v63 = vor.u32 %v7038_v26, %v6119_v7  ;;  %v4104_v13 = vadd.f32 %v4103_v29, %v4091_v53  ;;  %v6378_v29 = vor.u32 %v7102_v9, %v6375_v25  ;;  %v6343_v37 = vld [vmem:[#allocation4 + $0x578] sm:$0xf0] }
 0x34f   :  { %v6437_v43 = vld [vmem:[#allocation4 + $0x618] sm:$0xf]  ;;  %v6182_v5 = vor.u32 %v7058_v50, %v6181_v47  ;;  %v7158_v44 = vld [vmem:[#allocation4 + $0x75c] sm:$0xf] }
 0x350   :  { %4346 = vmatpush.bf16.msrb.mxu0 %v5734_v59  ;;  %4359 = vmatpush.bf16.msrb.mxu1 %v5990_v60  ;;  %v7122_v51 = vld [vmem:[#allocation4 + $0x634] sm:$0xf0]  ;;  %v4092_v58 = vpop.f32.mrf.mxu0  ;;  %v4105_v59 = vpop.f32.mrf.mxu1  ;;  %v5866_v60 = vor.u32 %v6974_v61, %v5863_v52  ;;  %v6599_v16 = vld [vmem:[#allocation4 + $0x778] sm:$0xf0] }
 0x351   :  { %v6438_v0 = vor.u32 %v7122_v51, %v6437_v43  ;;  %v6950_v38 = vld [vmem:[#allocation4 + $0xdc] sm:$0xf]  ;;  %v6602_v61 = vor.u32 %v7158_v44, %v6599_v16  ;;  %v2735_v43 = vperm.slane %v7941_v12, 2 }
 0x352   :  { %4371 = vmatpush.bf16.msrb.mxu2 %v6278_v1  ;;  %4384 = vmatpush.bf16.msrb.mxu3 %v6534_v2  ;;  %v5831_v1 = vld [vmem:[#allocation4 + $0x178] sm:$0xf0]  ;;  %v6410_v2 = vor.u32 %v7110_v55, %v6407_v54 }
 0x353   :  { %v7190_v15 = vpop.eup %7189  ;;  %v5834_v19 = vor.u32 %v6966_v8, %v5831_v1  ;;  %v5767_v39 = vld [vmem:[#allocation4 + $0xf8] sm:$0xf0] }
 0x354   :  { %4347 = vmatpush.bf16.msrb.mxu0 %v5702_v11  ;;  %4360 = vmatpush.bf16.msrb.mxu1 %v5958_v14  ;;  %v7949_v11 = vadd.f32 1.0, %v7190_v15  ;;  %v4116_v14 = vpop.f32.mrf.mxu2  ;;  %v4129_v17 = vpop.f32.mrf.mxu3  ;;  %v6023_v52 = vld [vmem:[#allocation4 + $0x2f8] sm:$0xf0]  ;;  %v5770_v56 = vor.u32 %v6950_v38, %v5767_v39 }
 0x355   :  { %v4117_v18 = vadd.f32 %v4116_v14, %v4104_v13  ;;  %v7086_v26 = vld [vmem:[#allocation4 + $0x51c] sm:$0xf] }
 0x356   :  { %4372 = vmatpush.bf16.msrb.mxu2 %v6246_v22  ;;  %4385 = vmatpush.bf16.msrb.mxu3 %v6502_v46  ;;  %v6958_v22 = vld [vmem:[#allocation4 + $0x11c] sm:$0xf]  ;;  %7191 = vrcp.f32 %v7949_v11  ;;  %v4488_v4 = vand.u32 2147483648, %v7949_v11  ;;  %v4486_v31 = vand.u32 2147483647, %v7949_v11  ;;  %vm4482_vm3 = vweird.f32 %v7949_v11 }
 0x357   :  { %v5799_v46 = vld [vmem:[#allocation4 + $0x138] sm:$0xf0]  ;;  %v4130_v30 = vadd.f32 %v4129_v17, %v4117_v18 }
 0x358   :  { %4348 = vmatpush.bf16.msrb.mxu0 %v5670_v40  ;;  %4361 = vmatpush.bf16.msrb.mxu1 %v5926_v42  ;;  %v4142_v33 = vpop.f32.mrf.mxu0  ;;  %v7954_v34 = vpop.f32.mrf.mxu1  ;;  %v5802_v42 = vor.u32 %v6958_v22, %v5799_v46  ;;  %v7150_v7 = vld [vmem:[#allocation4 + $0x71c] sm:$0xf]  ;;  %vm4487_vm5 = vcmp.eq.f32.partialorder %v4486_v31, 8.507059e+37 }
 0x359   :  { %v4446_v40 = vsub.f32 0.0, %v4130_v30  ;;  %v6567_v47 = vld [vmem:[#allocation4 + $0x738] sm:$0xf0]  ;;  %v4143_v10 = vadd.f32 %v4142_v33, %v2735_v43  ;;  %v4489_v30 = vor.u32 1.1754944e-38, %v4488_v4 }
 0x35a   :  { %4373 = vmatpush.bf16.msrb.mxu2 %v6214_v45  ;;  %4386 = vmatpush.bf16.msrb.mxu3 %v6470_v21  ;;  %v6311_v45 = vld [vmem:[#allocation4 + $0x538] sm:$0xf0] }
 0x35b   :  { %4349 = vmatmul.bf16.vlgmr.msrb.gmra.mxu0 %v7908_v23  ;;  %4362 = vmatmul.bf16.vlgmr.msrb.gmra.mxu1 %v7910_v62  ;;  %v4455_v21 = vmul.f32 1.442695, %v4446_v40  ;;  %v6942_v53 = vld [vmem:[#allocation4 + $0x9c] sm:$0xf]  ;;  %v4156_v33 = vadd.f32 %v7954_v34, %v4143_v10 }
 0x35c   :  { %4393 = vmatpush.bf16.msra.mxu0 %v5898_v41  ;;  %4406 = vmatpush.bf16.msra.mxu1 %v6154_v32  ;;  %v7014_v41 = vld [vmem:[#allocation4 + $0x2dc] sm:$0xf]  ;;  %v6346_v32 = vor.u32 %v7094_v35, %v6343_v37  ;;  %v7956_v50 = vpop.eup %7191  ;;  %v4118_v51 = vpop.f32.mrf.mxu2 }
 0x35d   :  { %v4131_v55 = vpop.f32.mrf.mxu3  ;;  %v4478_v54 = vmul.f32 %v7956_v50, %v7949_v11  ;;  %7193 = vpow2.f32 %v4455_v21  ;;  %v6026_v57 = vor.u32 %v7014_v41, %v6023_v52  ;;  %v5735_v58 = vld [vmem:[#allocation4 + $0xb8] sm:$0xf0]  ;;  %vm4483_vm2 = vweird.f32 %v7956_v50 }
 0x35e   :  { %4374 = vmatpush.bf16.msrb.mxu2 %v6182_v5  ;;  %4387 = vmatpush.bf16.msrb.mxu3 %v6438_v0  ;;  %v7006_v59 = vld [vmem:[#allocation4 + $0x29c] sm:$0xf]  ;;  %v6570_v5 = vor.u32 %v7150_v7, %v6567_v47  ;;  %v5738_v15 = vor.u32 %v6942_v53, %v5735_v58  ;;  %vm4484_vm4 = vmor %vm4482_vm3, %vm4483_vm2 }
 0x35f   :  { %v7078_v0 = vld [vmem:[#allocation4 + $0x4dc] sm:$0xf]  ;;  %v4479_v1 = vsub.f32 1.0, %v4478_v54 }
 0x360   :  { %4394 = vmatpush.bf16.msra.mxu0 %v5866_v60  ;;  %4407 = vmatpush.bf16.msra.mxu1 %v6122_v63  ;;  %v5991_v60 = vld [vmem:[#allocation4 + $0x2b8] sm:$0xf0]  ;;  %v6314_v63 = vor.u32 %v7086_v26, %v6311_v45  ;;  %v4144_v6 = vpop.f32.mrf.mxu0  ;;  %v4157_v9 = vpop.f32.mrf.mxu1 }
 0x361   :  { %4375 = vmatmul.bf16.vlgmr.msrb.gmra.mxu2 %v7914_v48  ;;  %4388 = vmatmul.bf16.vlgmr.msrb.gmra.mxu3 %v7916_v49  ;;  %v6279_v8 = vld [vmem:[#allocation4 + $0x4f8] sm:$0xf0]  ;;  %v5994_v13 = vor.u32 %v7006_v59, %v5991_v60  ;;  %v4480_v25 = vmul.f32 %v7956_v50, %v4479_v1 }
 0x362   :  { %4419 = vmatpush.bf16.msra.mxu2 %v6410_v2  ;;  %4432 = vmatpush.bf16.msra.mxu3 %v6666_v3  ;;  %v7142_v2 = vld [vmem:[#allocation4 + $0x6dc] sm:$0xf]  ;;  %v6282_v18 = vor.u32 %v7078_v0, %v6279_v8 }
 0x363   :  { %v6535_v3 = vld [vmem:[#allocation4 + $0x6f8] sm:$0xf0] }
 0x364   :  { %4395 = vmatpush.bf16.msra.mxu0 %v5834_v19  ;;  %4408 = vmatpush.bf16.msra.mxu1 %v6090_v20  ;;  %v6934_v14 = vld [vmem:[#allocation4 + $0x5c] sm:$0xf]  ;;  %v6538_v19 = vor.u32 %v7142_v2, %v6535_v3  ;;  %v4168_v38 = vpop.f32.mrf.mxu2 }
 0x365   :  { %v5703_v17 = vld [vmem:[#allocation4 + $0x78] sm:$0xf0]  ;;  %v4181_v40 = vpop.f32.mrf.mxu3  ;;  %v4169_v34 = vadd.f32 %v4168_v38, %v4156_v33 }
 0x366   :  { %4420 = vmatpush.bf16.msra.mxu2 %v6378_v29  ;;  %4433 = vmatpush.bf16.msra.mxu3 %v6634_v27  ;;  %v6998_v20 = vld [vmem:[#allocation4 + $0x25c] sm:$0xf]  ;;  %v7194_v29 = vpop.eup %7193  ;;  %v4481_v27 = vadd.f32 %v7956_v50, %v4480_v25  ;;  %v5706_v44 = vor.u32 %v6934_v14, %v5703_v17  ;;  %v2736_v14 = vperm.slane %v7941_v12, 3 }
 0x367   :  { %v5959_v22 = vld [vmem:[#allocation4 + $0x278] sm:$0xf0]  ;;  %v7969_v37 = vadd.f32 1.0, %v7194_v29  ;;  %v4182_v47 = vadd.f32 %v4181_v40, %v4169_v34 }
 0x368   :  { %4396 = vmatpush.bf16.msra.mxu0 %v5802_v42  ;;  %4409 = vmatpush.bf16.msra.mxu1 %v6058_v36  ;;  %v7070_v46 = vld [vmem:[#allocation4 + $0x49c] sm:$0xf]  ;;  %v4485_v16 = vsel %vm4484_vm4, %v7956_v50, %v4481_v27  ;;  %v5962_v11 = vor.u32 %v6998_v20, %v5959_v22 }
 0x369   :  { %v6247_v28 = vld [vmem:[#allocation4 + $0x4b8] sm:$0xf0]  ;;  %v4490_v39 = vsel %vm4487_vm5, %v4489_v30, %v4485_v16  ;;  %7195 = vrcp.f32 %v7969_v37  ;;  %v4503_v3 = vand.u32 2147483648, %v7969_v37  ;;  %v4501_v6 = vand.u32 2147483647, %v7969_v37 }
 0x36a   :  { %4421 = vmatpush.bf16.msra.mxu2 %v6346_v32  ;;  %4434 = vmatpush.bf16.msra.mxu3 %v6602_v61  ;;  %v7134_v24 = vld [vmem:[#allocation4 + $0x69c] sm:$0xf]  ;;  %v6250_v41 = vor.u32 %v7070_v46, %v6247_v28  ;;  %4597 = vst [vmem:[%s8023_s12] sm:$0xff] %v4490_v39  ;;  %vm4497_vm7 = vweird.f32 %v7969_v37 }
 0x36b   :  { %v6503_v35 = vld [vmem:[#allocation4 + $0x6b8] sm:$0xf0]  ;;  %vm4502_vm9 = vcmp.eq.f32.partialorder %v4501_v6, 8.507059e+37  ;;  %v2738_v6 = vperm.slane %v7941_v12, 5 }
 0x36c   :  { %4397 = vmatpush.bf16.msra.mxu0 %v5770_v56  ;;  %4410 = vmatpush.bf16.msra.mxu1 %v6026_v57  ;;  %v6926_v42 = vld [vmem:[#allocation4 + $0x1c] sm:$0xf]  ;;  %v6506_v32 = vor.u32 %v7134_v24, %v6503_v35  ;;  %v4447_v56 = vsub.f32 0.0, %v4182_v47 }
 0x36d   :  { %v5671_v36 = vld [vmem:[#allocation4 + $0x38] sm:$0xf0]  ;;  %v4183_v0 = vpop.f32.mrf.mxu3 }
 0x36e   :  { %4422 = vmatpush.bf16.msra.mxu2 %v6314_v63  ;;  %4435 = vmatpush.bf16.msra.mxu3 %v6570_v5  ;;  %v6990_v61 = vld [vmem:[#allocation4 + $0x21c] sm:$0xf]  ;;  %v5674_v50 = vor.u32 %v6926_v42, %v5671_v36  ;;  %v4457_v63 = vmul.f32 1.442695, %v4447_v56  ;;  %v4170_v5 = vpop.f32.mrf.mxu2 }
 0x36f   :  { %v5927_v52 = vld [vmem:[#allocation4 + $0x238] sm:$0xf0]  ;;  %v7196_v59 = vpop.eup %7195 }
 0x370   :  { %4398 = vmatpush.bf16.msra.mxu0 %v5738_v15  ;;  %4411 = vmatpush.bf16.msra.mxu1 %v5994_v13  ;;  %v7062_v26 = vld [vmem:[#allocation4 + $0x45c] sm:$0xf]  ;;  %v5930_v43 = vor.u32 %v6990_v61, %v5927_v52  ;;  %v4493_v60 = vmul.f32 %v7196_v59, %v7969_v37  ;;  %7197 = vpow2.f32 %v4457_v63  ;;  %vm4498_vm6 = vweird.f32 %v7196_v59 }
 0x371   :  { %v6215_v45 = vld [vmem:[#allocation4 + $0x478] sm:$0xf0]  ;;  %vm4499_vm8 = vmor %vm4497_vm7, %vm4498_vm6  ;;  %v4504_v15 = vor.u32 1.1754944e-38, %v4503_v3  ;;  %v2737_v61 = vperm.slane %v7941_v12, 4 }
 0x372   :  { %4423 = vmatpush.bf16.msra.mxu2 %v6282_v18  ;;  %4436 = vmatpush.bf16.msra.mxu3 %v6538_v19  ;;  %v7126_v21 = vld [vmem:[#allocation4 + $0x65c] sm:$0xf]  ;;  %v6218_v51 = vor.u32 %v7062_v26, %v6215_v45  ;;  %v4494_v2 = vsub.f32 1.0, %v4493_v60 }
 0x373   :  { %v6471_v7 = vld [vmem:[#allocation4 + $0x678] sm:$0xf0] }
 0x374   :  { %4399 = vmatpush.bf16.msra.mxu0 %v5706_v44  ;;  %4412 = vmatpush.bf16.msra.mxu1 %v5962_v11  ;;  %v6474_v55 = vor.u32 %v7126_v21, %v6471_v7  ;;  %v7054_v53 = vld [vmem:[#allocation4 + $0x41c] sm:$0xf]  ;;  %v4495_v4 = vmul.f32 %v7196_v59, %v4494_v2 }
 0x375   :  { %v6183_v54 = vld [vmem:[#allocation4 + $0x438] sm:$0xf0] }
 0x376   :  { %4424 = vmatpush.bf16.msra.mxu2 %v6250_v41  ;;  %4437 = vmatpush.bf16.msra.mxu3 %v6506_v32  ;;  %v7118_v57 = vld [vmem:[#allocation4 + $0x61c] sm:$0xf]  ;;  %v6186_v8 = vor.u32 %v7054_v53, %v6183_v54  ;;  %v4496_v9 = vadd.f32 %v7196_v59, %v4495_v4  ;;  %v7198_v13 = vpop.eup %7197 }
 0x377   :  { %v6439_v58 = vld [vmem:[#allocation4 + $0x638] sm:$0xf0]  ;;  %v4471_v10 = vadd.f32 1.0, %v7198_v13 }
 0x378   :  { %4400 = vmatpush.bf16.msra.mxu0 %v5674_v50  ;;  %4413 = vmatpush.bf16.msra.mxu1 %v5930_v43  ;;  %v6442_v1 = vor.u32 %v7118_v57, %v6439_v58  ;;  %v4500_v25 = vsel %vm4499_vm8, %v7196_v59, %v4496_v9 }
 0x379   :  { %v4505_v31 = vsel %vm4502_vm9, %v4504_v15, %v4500_v25  ;;  %7199 = vrcp.f32 %v4471_v10  ;;  %v4518_v27 = vand.u32 2147483648, %v4471_v10  ;;  %v4516_v35 = vand.u32 2147483647, %v4471_v10 }
 0x37a   :  { %4425 = vmatpush.bf16.msra.mxu2 %v6218_v51  ;;  %4438 = vmatpush.bf16.msra.mxu3 %v6474_v55  ;;  %4598 = vst [vmem:[%s8023_s12 + $0x8] sm:$0xff] %v4505_v31  ;;  %vm4512_vm11 = vweird.f32 %v4471_v10 }
 0x37b   :  { %4401 = vmatmul.bf16.vlgmr.msra.gmra.mxu0 %v7908_v23  ;;  %4414 = vmatmul.bf16.vlgmr.msra.gmra.mxu1 %v7910_v62  ;;  %v4194_v23 = vpop.f32.mrf.mxu0  ;;  %v4207_v62 = vpop.f32.mrf.mxu1  ;;  %v4519_v44 = vor.u32 1.1754944e-38, %v4518_v27  ;;  %vm4517_vm13 = vcmp.eq.f32.partialorder %v4516_v35, 8.507059e+37 }
 0x37c   :  { %v4195_v17 = vadd.f32 %v4194_v23, %v2736_v14 }
 0x37e   :  { %4426 = vmatpush.bf16.msra.mxu2 %v6186_v8  ;;  %4439 = vmatpush.bf16.msra.mxu3 %v6442_v1  ;;  %v4208_v46 = vadd.f32 %v4207_v62, %v4195_v17 }
 0x37f   :  { %v7200_v20 = vpop.eup %7199 }
 0x380   :  { %v4508_v22 = vmul.f32 %v7200_v20, %v4471_v10  ;;  %vm4513_vm10 = vweird.f32 %v7200_v20 }
 0x381   :  { %4427 = vmatmul.bf16.vlgmr.msra.gmra.mxu2 %v7914_v48  ;;  %4440 = vmatmul.bf16.vlgmr.msra.gmra.mxu3 %v7916_v49  ;;  %vm4514_vm12 = vmor %vm4512_vm11, %vm4513_vm10 }
 0x382   :  { %v4509_v48 = vsub.f32 1.0, %v4508_v22 }
 0x383   :  { %v4196_v18 = vpop.f32.mrf.mxu0  ;;  %v4209_v19 = vpop.f32.mrf.mxu1 }
 0x384   :  { %v4220_v29 = vpop.f32.mrf.mxu2  ;;  %v4233_v49 = vpop.f32.mrf.mxu3  ;;  %v4510_v24 = vmul.f32 %v7200_v20, %v4509_v48 }
 0x385   :  { %v4221_v28 = vadd.f32 %v4220_v29, %v4208_v46 }
 0x386   :  { %v4511_v37 = vadd.f32 %v7200_v20, %v4510_v24 }
 0x387   :  { %v4234_v30 = vadd.f32 %v4233_v49, %v4221_v28 }
 0x388   :  { %v4515_v33 = vsel %vm4514_vm12, %v7200_v20, %v4511_v37 }
 0x389   :  { %v4448_v16 = vsub.f32 0.0, %v4234_v30  ;;  %v4520_v38 = vsel %vm4517_vm13, %v4519_v44, %v4515_v33  ;;  %v2739_v33 = vperm.slane %v7941_v12, 6 }
 0x38a   :  { %4599 = vst [vmem:[%s8023_s12 + $0x10] sm:$0xff] %v4520_v38 }
 0x38b   :  { %v4459_v40 = vmul.f32 1.442695, %v4448_v16 }
 0x38c   :  { %v4222_v11 = vpop.f32.mrf.mxu2  ;;  %v4235_v42 = vpop.f32.mrf.mxu3 }
 0x38d   :  { %7201 = vpow2.f32 %v4459_v40 }
 0x393   :  { %v7202_v36 = vpop.eup %7201 }
 0x394   :  { %v4472_v39 = vadd.f32 1.0, %v7202_v36 }
 0x396   :  { %7203 = vrcp.f32 %v4472_v39  ;;  %v4533_v47 = vand.u32 2147483648, %v4472_v39  ;;  %v4531_v43 = vand.u32 2147483647, %v4472_v39  ;;  %vm4527_vm15 = vweird.f32 %v4472_v39 }
 0x398   :  { %v4246_v41 = vpop.f32.mrf.mxu0  ;;  %v4259_v32 = vpop.f32.mrf.mxu1  ;;  %v4534_v57 = vor.u32 1.1754944e-38, %v4533_v47  ;;  %vm4532_vm1 = vcmp.eq.f32.partialorder %v4531_v43, 8.507059e+37 }
 0x399   :  { %v4247_v34 = vadd.f32 %v4246_v41, %v2737_v61 }
 0x39b   :  { %v4260_v51 = vadd.f32 %v4259_v32, %v4247_v34 }
 0x39c   :  { %v7204_v52 = vpop.eup %7203 }
 0x39d   :  { %v4523_v26 = vmul.f32 %v7204_v52, %v4472_v39  ;;  %vm4528_vm14 = vweird.f32 %v7204_v52 }
 0x39e   :  { %vm4529_vm0 = vmor %vm4527_vm15, %vm4528_vm14 }
 0x39f   :  { %v4524_v7 = vsub.f32 1.0, %v4523_v26 }
 0x3a0   :  { %v4248_v45 = vpop.f32.mrf.mxu0  ;;  %v4261_v21 = vpop.f32.mrf.mxu1 }
 0x3a1   :  { %v4525_v50 = vmul.f32 %v7204_v52, %v4524_v7 }
 0x3a3   :  { %v4526_v54 = vadd.f32 %v7204_v52, %v4525_v50 }
 0x3a4   :  { %v4272_v55 = vpop.f32.mrf.mxu2  ;;  %v4285_v53 = vpop.f32.mrf.mxu3 }
 0x3a5   :  { %v4273_v56 = vadd.f32 %v4272_v55, %v4260_v51  ;;  %v4530_v58 = vsel %vm4529_vm0, %v7204_v52, %v4526_v54 }
 0x3a6   :  { %v4535_v60 = vsel %vm4532_vm1, %v4534_v57, %v4530_v58 }
 0x3a7   :  { %v4286_v59 = vadd.f32 %v4285_v53, %v4273_v56  ;;  %4600 = vst [vmem:[%s8023_s12 + $0x18] sm:$0xff] %v4535_v60  ;;  %v2740_v60 = vperm.slane %v7941_v12, 7 }
 0x3a9   :  { %v4449_v63 = vsub.f32 0.0, %v4286_v59 }
 0x3ab   :  { %v4461_v5 = vmul.f32 1.442695, %v4449_v63 }
 0x3ac   :  { %v4274_v0 = vpop.f32.mrf.mxu2  ;;  %v4287_v8 = vpop.f32.mrf.mxu3 }
 0x3ad   :  { %7205 = vpow2.f32 %v4461_v5 }
 0x3b3   :  { %v7206_v1 = vpop.eup %7205 }
 0x3b4   :  { %v4473_v2 = vadd.f32 1.0, %v7206_v1 }
 0x3b6   :  { %7207 = vrcp.f32 %v4473_v2  ;;  %v4548_v31 = vand.u32 2147483648, %v4473_v2  ;;  %v4546_v14 = vand.u32 2147483647, %v4473_v2  ;;  %vm4542_vm3 = vweird.f32 %v4473_v2 }
 0x3b8   :  { %v4298_v3 = vpop.f32.mrf.mxu0  ;;  %v4311_v4 = vpop.f32.mrf.mxu1  ;;  %v4549_v46 = vor.u32 1.1754944e-38, %v4548_v31  ;;  %vm4547_vm5 = vcmp.eq.f32.partialorder %v4546_v14, 8.507059e+37 }
 0x3b9   :  { %v4299_v13 = vadd.f32 %v4298_v3, %v2738_v6 }
 0x3bb   :  { %v4312_v17 = vadd.f32 %v4311_v4, %v4299_v13 }
 0x3bc   :  { %v7208_v9 = vpop.eup %7207 }
 0x3bd   :  { %v4538_v15 = vmul.f32 %v7208_v9, %v4473_v2  ;;  %vm4543_vm2 = vweird.f32 %v7208_v9 }
 0x3be   :  { %vm4544_vm4 = vmor %vm4542_vm3, %vm4543_vm2 }
 0x3bf   :  { %v4539_v62 = vsub.f32 1.0, %v4538_v15 }
 0x3c0   :  { %v4300_v25 = vpop.f32.mrf.mxu0  ;;  %v4313_v23 = vpop.f32.mrf.mxu1 }
 0x3c1   :  { %v4540_v10 = vmul.f32 %v7208_v9, %v4539_v62 }
 0x3c3   :  { %v4541_v20 = vadd.f32 %v7208_v9, %v4540_v10 }
 0x3c4   :  { %v4324_v18 = vpop.f32.mrf.mxu2  ;;  %v4337_v19 = vpop.f32.mrf.mxu3 }
 0x3c5   :  { %v4325_v22 = vadd.f32 %v4324_v18, %v4312_v17  ;;  %v4545_v48 = vsel %vm4544_vm4, %v7208_v9, %v4541_v20 }
 0x3c6   :  { %v4550_v49 = vsel %vm4547_vm5, %v4549_v46, %v4545_v48 }
 0x3c7   :  { %v4338_v29 = vadd.f32 %v4337_v19, %v4325_v22  ;;  %4601 = vst [vmem:[%s8023_s12 + $0x20] sm:$0xff] %v4550_v49 }
 0x3c9   :  { %v4450_v27 = vsub.f32 0.0, %v4338_v29 }
 0x3cb   :  { %v4463_v28 = vmul.f32 1.442695, %v4450_v27 }
 0x3cc   :  { %v4326_v24 = vpop.f32.mrf.mxu2  ;;  %v4339_v35 = vpop.f32.mrf.mxu3 }
 0x3cd   :  { %7209 = vpow2.f32 %v4463_v28 }
 0x3d3   :  { %v7210_v30 = vpop.eup %7209 }
 0x3d4   :  { %v4474_v37 = vadd.f32 1.0, %v7210_v30 }
 0x3d6   :  { %7211 = vrcp.f32 %v4474_v37  ;;  %v4563_v41 = vand.u32 2147483648, %v4474_v37  ;;  %v4561_v61 = vand.u32 2147483647, %v4474_v37  ;;  %vm4557_vm7 = vweird.f32 %v4474_v37 }
 0x3d8   :  { %v4350_v44 = vpop.f32.mrf.mxu0  ;;  %v4363_v16 = vpop.f32.mrf.mxu1  ;;  %v4564_v7 = vor.u32 1.1754944e-38, %v4563_v41  ;;  %vm4562_vm9 = vcmp.eq.f32.partialorder %v4561_v61, 8.507059e+37 }
 0x3d9   :  { %v4351_v11 = vadd.f32 %v4350_v44, %v2739_v33 }
 0x3db   :  { %v4364_v52 = vadd.f32 %v4363_v16, %v4351_v11 }
 0x3dc   :  { %v7212_v38 = vpop.eup %7211 }
 0x3dd   :  { %v4553_v40 = vmul.f32 %v7212_v38, %v4474_v37  ;;  %vm4558_vm6 = vweird.f32 %v7212_v38 }
 0x3de   :  { %vm4559_vm8 = vmor %vm4557_vm7, %vm4558_vm6 }
 0x3df   :  { %v4554_v39 = vsub.f32 1.0, %v4553_v40 }
 0x3e0   :  { %v4352_v42 = vpop.f32.mrf.mxu0  ;;  %v4365_v36 = vpop.f32.mrf.mxu1 }
 0x3e1   :  { %v4555_v32 = vmul.f32 %v7212_v38, %v4554_v39 }
 0x3e3   :  { %v4556_v45 = vadd.f32 %v7212_v38, %v4555_v32 }
 0x3e4   :  { %v4376_v26 = vpop.f32.mrf.mxu2  ;;  %v4389_v34 = vpop.f32.mrf.mxu3 }
 0x3e5   :  { %v4377_v21 = vadd.f32 %v4376_v26, %v4364_v52  ;;  %v4560_v47 = vsel %vm4559_vm8, %v7212_v38, %v4556_v45 }
 0x3e6   :  { %v4565_v43 = vsel %vm4562_vm9, %v4564_v7, %v4560_v47 }
 0x3e7   :  { %v4390_v50 = vadd.f32 %v4389_v34, %v4377_v21  ;;  %4602 = vst [vmem:[%s8023_s12 + $0x28] sm:$0xff] %v4565_v43 }
 0x3e9   :  { %v4451_v51 = vsub.f32 0.0, %v4390_v50 }
 0x3eb   :  { %v4465_v55 = vmul.f32 1.442695, %v4451_v51 }
 0x3ec   :  { %v4378_v53 = vpop.f32.mrf.mxu2  ;;  %v4391_v54 = vpop.f32.mrf.mxu3 }
 0x3ed   :  { %7213 = vpow2.f32 %v4465_v55 }
 0x3f3   :  { %v7214_v56 = vpop.eup %7213 }
 0x3f4   :  { %v4475_v57 = vadd.f32 1.0, %v7214_v56 }
 0x3f6   :  { %7215 = vrcp.f32 %v4475_v57  ;;  %v4578_v3 = vand.u32 2147483648, %v4475_v57  ;;  %v4576_v9 = vand.u32 2147483647, %v4475_v57  ;;  %vm4572_vm11 = vweird.f32 %v4475_v57 }
 0x3f8   :  { %v4402_v58 = vpop.f32.mrf.mxu0  ;;  %v4415_v59 = vpop.f32.mrf.mxu1  ;;  %v4579_v62 = vor.u32 1.1754944e-38, %v4578_v3  ;;  %vm4577_vm13 = vcmp.eq.f32.partialorder %v4576_v9, 8.507059e+37 }
 0x3f9   :  { %v4403_v5 = vadd.f32 %v4402_v58, %v2740_v60 }
 0x3fb   :  { %v4416_v4 = vadd.f32 %v4415_v59, %v4403_v5 }
 0x3fc   :  { %v7216_v63 = vpop.eup %7215 }
 0x3fd   :  { %v4568_v0 = vmul.f32 %v7216_v63, %v4475_v57  ;;  %vm4573_vm10 = vweird.f32 %v7216_v63 }
 0x3fe   :  { %vm4574_vm12 = vmor %vm4572_vm11, %vm4573_vm10 }
 0x3ff   :  { %v4569_v2 = vsub.f32 1.0, %v4568_v0 }
 0x400   :  { %v4404_v8 = vpop.f32.mrf.mxu0  ;;  %v4417_v1 = vpop.f32.mrf.mxu1 }
 0x401   :  { %v4570_v6 = vmul.f32 %v7216_v63, %v4569_v2 }
 0x403   :  { %v4571_v23 = vadd.f32 %v7216_v63, %v4570_v6 }
 0x404   :  { %v4428_v15 = vpop.f32.mrf.mxu2  ;;  %v4441_v13 = vpop.f32.mrf.mxu3 }
 0x405   :  { %v4429_v25 = vadd.f32 %v4428_v15, %v4416_v4  ;;  %v4575_v12 = vsel %vm4574_vm12, %v7216_v63, %v4571_v23 }
 0x406   :  { %v4580_v10 = vsel %vm4577_vm13, %v4579_v62, %v4575_v12 }
 0x407   :  { %v4442_v31 = vadd.f32 %v4441_v13, %v4429_v25  ;;  %4603 = vst [vmem:[%s8023_s12 + $0x30] sm:$0xff] %v4580_v10 }
 0x409   :  { %v4452_v14 = vsub.f32 0.0, %v4442_v31 }
 0x40b   :  { %v4467_v17 = vmul.f32 1.442695, %v4452_v14 }
 0x40c   :  { %v4430_v18 = vpop.f32.mrf.mxu2  ;;  %v4443_v19 = vpop.f32.mrf.mxu3 }
 0x40d   :  { %7217 = vpow2.f32 %v4467_v17 }
 0x413   :  { %v7218_v20 = vpop.eup %7217 }
 0x414   :  { %v4476_v22 = vadd.f32 1.0, %v7218_v20 }
 0x416   :  { %7219 = vrcp.f32 %v4476_v22  ;;  %v4593_v49 = vand.u32 2147483648, %v4476_v22  ;;  %v4591_v28 = vand.u32 2147483647, %v4476_v22  ;;  %vm4587_vm15 = vweird.f32 %v4476_v22 }
 0x418   :  { %v4594_v35 = vor.u32 1.1754944e-38, %v4593_v49  ;;  %vm4592_vm1 = vcmp.eq.f32.partialorder %v4591_v28, 8.507059e+37 }
 0x41c   :  { %v7220_v46 = vpop.eup %7219 }
 0x41d   :  { %v4583_v48 = vmul.f32 %v7220_v46, %v4476_v22  ;;  %vm4588_vm14 = vweird.f32 %v7220_v46 }
 0x41e   :  { %vm4589_vm0 = vmor %vm4587_vm15, %vm4588_vm14 }
 0x41f   :  { %v4584_v29 = vsub.f32 1.0, %v4583_v48 }
 0x421   :  { %v4585_v27 = vmul.f32 %v7220_v46, %v4584_v29 }
 0x423   :  { %v4586_v24 = vadd.f32 %v7220_v46, %v4585_v27 }
 0x425   :  { %v4590_v30 = vsel %vm4589_vm0, %v7220_v46, %v4586_v24 }
 0x426   :  { %v4595_v37 = vsel %vm4592_vm1, %v4594_v35, %v4590_v30 }
 0x427   :  { %4604 = vst [vmem:[%s8023_s12 + $0x38] sm:$0xff] %v4595_v37 }
 0x428   :  { %4609 = vsyncpa [#allocation3], 1 }
 0x429   :  { %4610 = vsyncpa [#allocation5], 1 }

</bundles_post_ra>
